<compile_context>
chip_gen: v7x
topology: tpu7x:2x2x1
jax: 0.10.0
libtpu: 0.0.40
codegen_flags: <defaults>
</compile_context>

<pallas_src>
import math
from functools import partial

import numpy as np
import jax
import jax.numpy as jnp
from jax.experimental import pallas as pl
from jax.experimental.pallas import tpu as pltpu


# ------------------------------ Fused kernel -------------------------------- #

def _fused_forward_kernel(
    x0_ref, patches_ref, patch_w_ref, patch_b_ref, trg_ref, pad_ref,
    sa_qkv_w_ref, sa_qkv_b_ref, sa_out_w_ref, sa_out_b_ref,
    ca_qkv_w_ref, ca_qkv_b_ref, ca_out_w_ref, ca_out_b_ref,
    ff1_w_ref, ff1_b_ref, ff2_w_ref, ff2_b_ref,
    ln1_g_ref, ln1_b_ref, ln2_g_ref, ln2_b_ref, ln3_g_ref, ln3_b_ref,
    out_w_ref, out_b_ref,
    logits_ref,
    x_vmem, mem_vmem, mask_vmem,
    *, B, T, S, E, H, n_layers, eps):
    """One grid step == one TransformerDecoder layer.

    Residual stream (f32), encoder memory (bf16) and the combined additive
    self-attention mask live in VMEM scratch across all grid steps.
    """
    d = E // H
    scale = 1.0 / math.sqrt(d)
    layer = pl.program_id(0)

    # ---- layer 0: load decoder input, build encoder memory and self-mask ----
    @pl.when(layer == 0)
    def _init():
        x_vmem[...] = x0_ref[...]                               # (B*T, E) f32
        p = patches_ref[...].astype(jnp.bfloat16)               # (B*S, PD)
        mem = jnp.dot(p, patch_w_ref[...],
                      preferred_element_type=jnp.float32) + patch_b_ref[...]
        mem_vmem[...] = mem.astype(jnp.bfloat16)                # (B*S, E) bf16
        # causal (T,T) + key-padding (B,T) -> additive (B,T,T), built once
        mask_vmem[...] = trg_ref[...][None, :, :] + pad_ref[...][:, None, :]

    x = x_vmem[...]                                             # (B*T, E) f32
    mem_bf = mem_vmem[...]                                      # (B*S, E) bf16
    self_mask = mask_vmem[...]                                  # (B, T, T) f32

    def layer_norm(h, g, b):
        mu = jnp.mean(h, axis=-1, keepdims=True)
        var = jnp.mean((h - mu) ** 2, axis=-1, keepdims=True)
        return (h - mu) * jax.lax.rsqrt(var + eps) * g + b

    def softmax(s):
        m = jnp.max(s, axis=-1, keepdims=True)
        p = jnp.exp(s - m)
        return p * pl.reciprocal(jnp.sum(p, axis=-1, keepdims=True), approx=True)

    def mha(q_src_bf, kv_src_bf, Tq, Tk, w_ref, b_ref, wo_ref, bo_ref, mask):
        """Multi-head attention with pre-split per-head weights.

        w_ref : (3H, E, d)  head h uses [h]=Q, [H+h]=K, [2H+h]=V  (no lane slicing)
        b_ref : (3H, 1, d);  wo_ref : (H, d, E);  bo_ref : (1, E)
        Output projection accumulated per head (no lane-axis concatenate).
        """
        out = jnp.zeros((B * Tq, E), jnp.float32)
        for h in range(H):
            qh = (jnp.dot(q_src_bf, w_ref[h],
                          preferred_element_type=jnp.float32) + b_ref[h]
                  ).reshape(B, Tq, d)
            kh = (jnp.dot(kv_src_bf, w_ref[H + h],
                          preferred_element_type=jnp.float32) + b_ref[H + h]
                  ).reshape(B, Tk, d)
            vh = (jnp.dot(kv_src_bf, w_ref[2 * H + h],
                          preferred_element_type=jnp.float32) + b_ref[2 * H + h]
                  ).reshape(B, Tk, d)
            s = jnp.einsum('bqd,bkd->bqk', qh.astype(jnp.bfloat16),
                           kh.astype(jnp.bfloat16),
                           preferred_element_type=jnp.float32) * scale
            if mask is not None:
                s = s + mask
            p = softmax(s).astype(jnp.bfloat16)
            oh = jnp.einsum('bqk,bkd->bqd', p, vh.astype(jnp.bfloat16),
                            preferred_element_type=jnp.float32)
            out = out + jnp.dot(oh.reshape(B * Tq, d).astype(jnp.bfloat16),
                                wo_ref[h], preferred_element_type=jnp.float32)
        return out + bo_ref[...]

    # ---- self-attention block (post-norm, residual) ----
    x_bf = x.astype(jnp.bfloat16)                               # single cast, shared
    sa = mha(x_bf, x_bf, T, T, sa_qkv_w_ref, sa_qkv_b_ref,
             sa_out_w_ref, sa_out_b_ref, self_mask)
    x2 = layer_norm(x + sa, ln1_g_ref[...], ln1_b_ref[...])

    # ---- cross-attention block (memory mask = None, as in the reference) ----
    ca = mha(x2.astype(jnp.bfloat16), mem_bf, T, S,
             ca_qkv_w_ref, ca_qkv_b_ref, ca_out_w_ref, ca_out_b_ref, None)
    x3 = layer_norm(x2 + ca, ln2_g_ref[...], ln2_b_ref[...])

    # ---- feed-forward block (ReLU) ----
    h1 = jnp.dot(x3.astype(jnp.bfloat16), ff1_w_ref[...],
                 preferred_element_type=jnp.float32) + ff1_b_ref[...]
    h1 = jnp.maximum(h1, 0.0)
    h2 = jnp.dot(h1.astype(jnp.bfloat16), ff2_w_ref[...],
                 preferred_element_type=jnp.float32) + ff2_b_ref[...]
    x4 = layer_norm(x3 + h2, ln3_g_ref[...], ln3_b_ref[...])

    x_vmem[...] = x4

    # ---- last layer: fused vocab head, lane-dense (B*T, Vp) output ----
    @pl.when(layer == n_layers - 1)
    def _final():
        logits_ref[...] = jnp.dot(x4.astype(jnp.bfloat16), out_w_ref[...],
                                  preferred_element_type=jnp.float32) + out_b_ref[...]


# ------------------------------ Model pieces -------------------------------- #

def build_pe(max_seq_len, embed_dim):
    """Exact reproduction of PositionalEmbedding's (slightly unusual) formula."""
    pe = np.zeros((max_seq_len, embed_dim), dtype=np.float32)
    for pos in range(max_seq_len):
        for i in range(0, embed_dim, 2):
            pe[pos, i] = math.sin(pos / 10000 ** (2 * i / embed_dim))
            if i + 1 < embed_dim:
                pe[pos, i + 1] = math.cos(pos / 10000 ** (2 * (i + 1) / embed_dim))
    return jnp.asarray(pe)


def patchify(img, patch):
    """NCHW image -> (B, S, C*P*P) patches (ViT-style im2col, layout prep in XLA)."""
    B, C, Hh, Ww = img.shape
    x = img.reshape(B, C, Hh // patch, patch, Ww // patch, patch)
    x = x.transpose(0, 2, 4, 1, 3, 5)
    return x.reshape(B, (Hh // patch) * (Ww // patch), C * patch * patch)


def visual_transformer_forward(params, pe, img, tgt, trg_mask, padding_masks,
                               *, n_heads, patch, vocab_size):
    L = params['sa_qkv_w'].shape[0]
    E = params['out_w'].shape[0]
    Vp = params['out_w'].shape[1]
    B, T = tgt.shape

    # word embedding: O(B*T*E) gather; scale + positional embedding in XLA prologue
    emb_x = jnp.take(params['emb'], tgt, axis=0)                      # (B, T, E) f32
    x0 = (emb_x * math.sqrt(E) + pe[:T][None, :, :]).reshape(B * T, E)

    # encoder stand-in inputs: patch extraction in XLA, projection inside kernel
    patches = patchify(img, patch)                                    # (B, S, PD)
    S = patches.shape[1]
    patches2d = patches.reshape(B * S, -1)

    # additive key-padding mask (B, T); causal trg_mask is already additive (T, T)
    pad_add = jnp.where(padding_masks, -1e9, 0.0).astype(jnp.float32)

    kernel = partial(_fused_forward_kernel, B=B, T=T, S=S, E=E, H=n_heads,
                     n_layers=L, eps=1e-5)

    def resident(shape):
        # constant across the layer grid (block == full array)
        zeros = (0,) * len(shape)
        return pl.BlockSpec(tuple(shape), lambda l: zeros)

    def per_layer(shape):
        # stacked (L, ...) weights; leading layer axis squeezed out of the kernel ref
        rest = tuple(shape[1:])
        zeros = (0,) * len(rest)
        return pl.BlockSpec((pl.Squeezed(),) + rest, lambda l: (l,) + zeros)

    in_specs = [
        resident(x0.shape),                      # decoder input (layer 0 only)
        resident(patches2d.shape),               # patches       (layer 0 only)
        resident(params['patch_w'].shape),       # patch_w
        resident(params['patch_b'].shape),       # patch_b
        resident(trg_mask.shape),                # causal mask
        resident(pad_add.shape),                 # key-padding mask
        per_layer(params['sa_qkv_w'].shape), per_layer(params['sa_qkv_b'].shape),
        per_layer(params['sa_out_w'].shape), per_layer(params['sa_out_b'].shape),
        per_layer(params['ca_qkv_w'].shape), per_layer(params['ca_qkv_b'].shape),
        per_layer(params['ca_out_w'].shape), per_layer(params['ca_out_b'].shape),
        per_layer(params['ff1_w'].shape),    per_layer(params['ff1_b'].shape),
        per_layer(params['ff2_w'].shape),    per_layer(params['ff2_b'].shape),
        per_layer(params['ln1_g'].shape),    per_layer(params['ln1_b'].shape),
        per_layer(params['ln2_g'].shape),    per_layer(params['ln2_b'].shape),
        per_layer(params['ln3_g'].shape),    per_layer(params['ln3_b'].shape),
        resident(params['out_w'].shape),         # vocab head (last layer only)
        resident(params['out_b'].shape),
    ]

    logits = pl.pallas_call(
        kernel,
        out_shape=jax.ShapeDtypeStruct((B * T, Vp), jnp.float32),
        grid_spec=pltpu.PrefetchScalarGridSpec(
            num_scalar_prefetch=0,
            grid=(L,),                                   # sequential over layers
            in_specs=in_specs,
            out_specs=pl.BlockSpec((B * T, Vp), lambda l: (0, 0)),
            scratch_shapes=[pltpu.VMEM((B * T, E), jnp.float32),   # residual stream
                            pltpu.VMEM((B * S, E), jnp.bfloat16),  # encoder memory (bf16)
                            pltpu.VMEM((B, T, T), jnp.float32)],   # self-attn mask
        ),
        compiler_params=pltpu.CompilerParams(
            dimension_semantics=("arbitrary",),          # layer axis is a dependency chain
            vmem_limit_bytes=48 * 1024 * 1024),
    )(x0, patches2d, params['patch_w'], params['patch_b'], trg_mask, pad_add,
      params['sa_qkv_w'], params['sa_qkv_b'], params['sa_out_w'], params['sa_out_b'],
      params['ca_qkv_w'], params['ca_qkv_b'], params['ca_out_w'], params['ca_out_b'],
      params['ff1_w'], params['ff1_b'], params['ff2_w'], params['ff2_b'],
      params['ln1_g'], params['ln1_b'], params['ln2_g'], params['ln2_b'],
      params['ln3_g'], params['ln3_b'],
      params['out_w'], params['out_b'])

    # strip vocab padding and permute to (B, V, T) in the XLA consumer
    out = logits[:, :vocab_size].reshape(B, T, vocab_size).transpose(0, 2, 1)
    return out


# ------------------------------ Parameter init ------------------------------ #

def init_params(key, *, V, E, H, num_layers, dim_ff, C, patch):
    d = E // H
    L = num_layers
    PD = C * patch * patch
    Vp = ((V + 127) // 128) * 128          # lane-dense vocab head
    ks = iter(jax.random.split(key, 24))

    def nrm(shape):
        return 0.02 * jax.random.normal(next(ks), shape, dtype=jnp.float32)

    params = {
        'emb': nrm((V, E)),                                           # f32 (gathered)
        'patch_w': nrm((PD, E)).astype(jnp.bfloat16),
        'patch_b': jnp.zeros((1, E), jnp.float32),
        'out_w': jnp.pad(nrm((E, V)), ((0, 0), (0, Vp - V))).astype(jnp.bfloat16),
        'out_b': jnp.zeros((1, Vp), jnp.float32),
        # per-head pre-split attention weights (leading dim = layer)
        'sa_qkv_w': nrm((L, 3 * H, E, d)).astype(jnp.bfloat16),
        'sa_qkv_b': jnp.zeros((L, 3 * H, 1, d), jnp.float32),
        'sa_out_w': nrm((L, H, d, E)).astype(jnp.bfloat16),
        'sa_out_b': jnp.zeros((L, 1, E), jnp.float32),
        'ca_qkv_w': nrm((L, 3 * H, E, d)).astype(jnp.bfloat16),
        'ca_qkv_b': jnp.zeros((L, 3 * H, 1, d), jnp.float32),
        'ca_out_w': nrm((L, H, d, E)).astype(jnp.bfloat16),
        'ca_out_b': jnp.zeros((L, 1, E), jnp.float32),
        'ff1_w': nrm((L, E, dim_ff)).astype(jnp.bfloat16),
        'ff1_b': jnp.zeros((L, 1, dim_ff), jnp.float32),
        'ff2_w': nrm((L, dim_ff, E)).astype(jnp.bfloat16),
        'ff2_b': jnp.zeros((L, 1, E), jnp.float32),
        'ln1_g': jnp.ones((L, 1, E), jnp.float32), 'ln1_b': jnp.zeros((L, 1, E), jnp.float32),
        'ln2_g': jnp.ones((L, 1, E), jnp.float32), 'ln2_b': jnp.zeros((L, 1, E), jnp.float32),
        'ln3_g': jnp.ones((L, 1, E), jnp.float32), 'ln3_b': jnp.zeros((L, 1, E), jnp.float32),
    }
    return params


# ----------------------------------- Main ------------------------------------ #

if __name__ == "__main__":
    # small shapes consistent with the module's forward
    B, C, Hi, Wi = 2, 3, 16, 16     # image NCHW
    PATCH = 4                       # -> S = 16 memory tokens
    E = 32                          # embed_dim
    N_HEADS = 4
    NUM_LAYERS = 2
    T = 8                           # seq_length
    V = 40                          # target_vocab_size
    DIM_FF = 2048                   # nn.TransformerDecoderLayer default (expansion_factor unused)

    key = jax.random.PRNGKey(0)
    k_img, k_tgt, k_par = jax.random.split(key, 3)

    img = jax.random.normal(k_img, (B, C, Hi, Wi), dtype=jnp.float32)
    tgt = jax.random.randint(k_tgt, (B, T), 0, V)
    idx = jnp.arange(T)
    trg_mask = jnp.where(idx[None, :] <= idx[:, None], 0.0, -1e9).astype(jnp.float32)  # causal
    padding_masks = jnp.zeros((B, T), dtype=bool).at[1, T - 1].set(True)               # True = pad

    params = init_params(k_par, V=V, E=E, H=N_HEADS, num_layers=NUM_LAYERS,
                         dim_ff=DIM_FF, C=C, patch=PATCH)
    pe = build_pe(T, E)

    fwd = jax.jit(partial(visual_transformer_forward,
                          n_heads=N_HEADS, patch=PATCH, vocab_size=V))
    out = jax.block_until_ready(fwd(params, pe, img, tgt, trg_mask, padding_masks))

    assert out.shape == (B, V, T), out.shape
    assert out.dtype == jnp.float32
    assert bool(jnp.all(jnp.isfinite(out)))
    print("KERNEL_OK")
</pallas_src>

<mosaic_0001>
module attributes {stable_mosaic.version = 11 : i64} {
  func.func @_fused_forward_kernel(%arg0: i32, %arg1: memref<16x32xf32, #tpu.memory_space<vmem>>, %arg2: memref<32x48xf32, #tpu.memory_space<vmem>>, %arg3: memref<48x32xbf16, #tpu.memory_space<vmem>>, %arg4: memref<1x32xf32, #tpu.memory_space<vmem>>, %arg5: memref<8x8xf32, #tpu.memory_space<vmem>>, %arg6: memref<2x8xf32, #tpu.memory_space<vmem>>, %arg7: memref<1x12x32x8xbf16, #tpu.memory_space<vmem>>, %arg8: memref<1x12x1x8xf32, #tpu.memory_space<vmem>>, %arg9: memref<1x4x8x32xbf16, #tpu.memory_space<vmem>>, %arg10: memref<1x1x32xf32, #tpu.memory_space<vmem>>, %arg11: memref<1x12x32x8xbf16, #tpu.memory_space<vmem>>, %arg12: memref<1x12x1x8xf32, #tpu.memory_space<vmem>>, %arg13: memref<1x4x8x32xbf16, #tpu.memory_space<vmem>>, %arg14: memref<1x1x32xf32, #tpu.memory_space<vmem>>, %arg15: memref<1x32x2048xbf16, #tpu.memory_space<vmem>>, %arg16: memref<1x1x2048xf32, #tpu.memory_space<vmem>>, %arg17: memref<1x2048x32xbf16, #tpu.memory_space<vmem>>, %arg18: memref<1x1x32xf32, #tpu.memory_space<vmem>>, %arg19: memref<1x1x32xf32, #tpu.memory_space<vmem>>, %arg20: memref<1x1x32xf32, #tpu.memory_space<vmem>>, %arg21: memref<1x1x32xf32, #tpu.memory_space<vmem>>, %arg22: memref<1x1x32xf32, #tpu.memory_space<vmem>>, %arg23: memref<1x1x32xf32, #tpu.memory_space<vmem>>, %arg24: memref<1x1x32xf32, #tpu.memory_space<vmem>>, %arg25: memref<32x128xbf16, #tpu.memory_space<vmem>>, %arg26: memref<1x128xf32, #tpu.memory_space<vmem>>, %arg27: memref<16x128xf32, #tpu.memory_space<vmem>>, %arg28: memref<16x32xf32, #tpu.memory_space<vmem>>, %arg29: memref<32x32xbf16, #tpu.memory_space<vmem>>, %arg30: memref<2x8x8xf32, #tpu.memory_space<vmem>>) attributes {dimension_semantics = [#tpu.dimension_semantics<arbitrary>], iteration_bounds = array<i64: 2>, scalar_prefetch = 0 : i64, scratch_operands = 3 : i64, tpu.core_type = #tpu.core_type<tc>, window_params = [{pipeline_mode = #tpu.pipeline_mode<synchronous>, transform_indices = @transform_0, window_bounds = array<i64: 16, 32>}, {pipeline_mode = #tpu.pipeline_mode<synchronous>, transform_indices = @transform_1, window_bounds = array<i64: 32, 48>}, {pipeline_mode = #tpu.pipeline_mode<synchronous>, transform_indices = @transform_2, window_bounds = array<i64: 48, 32>}, {pipeline_mode = #tpu.pipeline_mode<synchronous>, transform_indices = @transform_3, window_bounds = array<i64: 1, 32>}, {pipeline_mode = #tpu.pipeline_mode<synchronous>, transform_indices = @transform_4, window_bounds = array<i64: 8, 8>}, {pipeline_mode = #tpu.pipeline_mode<synchronous>, transform_indices = @transform_5, window_bounds = array<i64: 2, 8>}, {transform_indices = @transform_6, window_bounds = array<i64: 1, 12, 32, 8>}, {transform_indices = @transform_7, window_bounds = array<i64: 1, 12, 1, 8>}, {transform_indices = @transform_8, window_bounds = array<i64: 1, 4, 8, 32>}, {transform_indices = @transform_9, window_bounds = array<i64: 1, 1, 32>}, {transform_indices = @transform_10, window_bounds = array<i64: 1, 12, 32, 8>}, {transform_indices = @transform_11, window_bounds = array<i64: 1, 12, 1, 8>}, {transform_indices = @transform_12, window_bounds = array<i64: 1, 4, 8, 32>}, {transform_indices = @transform_13, window_bounds = array<i64: 1, 1, 32>}, {transform_indices = @transform_14, window_bounds = array<i64: 1, 32, 2048>}, {transform_indices = @transform_15, window_bounds = array<i64: 1, 1, 2048>}, {transform_indices = @transform_16, window_bounds = array<i64: 1, 2048, 32>}, {transform_indices = @transform_17, window_bounds = array<i64: 1, 1, 32>}, {transform_indices = @transform_18, window_bounds = array<i64: 1, 1, 32>}, {transform_indices = @transform_19, window_bounds = array<i64: 1, 1, 32>}, {transform_indices = @transform_20, window_bounds = array<i64: 1, 1, 32>}, {transform_indices = @transform_21, window_bounds = array<i64: 1, 1, 32>}, {transform_indices = @transform_22, window_bounds = array<i64: 1, 1, 32>}, {transform_indices = @transform_23, window_bounds = array<i64: 1, 1, 32>}, {pipeline_mode = #tpu.pipeline_mode<synchronous>, transform_indices = @transform_24, window_bounds = array<i64: 32, 128>}, {pipeline_mode = #tpu.pipeline_mode<synchronous>, transform_indices = @transform_25, window_bounds = array<i64: 1, 128>}, {pipeline_mode = #tpu.pipeline_mode<synchronous>, transform_indices = @transform_26, window_bounds = array<i64: 16, 128>}]} {
    %c0_i32 = arith.constant 0 : i32
    %0 = arith.cmpi eq, %arg0, %c0_i32 : i32
    %1 = arith.extui %0 : i1 to i32
    %c0_i32_0 = arith.constant 0 : i32
    %2 = arith.cmpi ne, %1, %c0_i32_0 : i32
    scf.if %2 {
      %c0_350 = arith.constant 0 : index
      %c0_351 = arith.constant 0 : index
      %509 = vector.load %arg1[%c0_350, %c0_351] : memref<16x32xf32, #tpu.memory_space<vmem>>, vector<16x32xf32>
      %c0_352 = arith.constant 0 : index
      %c0_353 = arith.constant 0 : index
      %510 = vector.load %arg28[%c0_352, %c0_353] : memref<16x32xf32, #tpu.memory_space<vmem>>, vector<16x32xf32>
      tpu.vector_store %arg28[%c0_352, %c0_353], %509 {strides = array<i32>} : memref<16x32xf32, #tpu.memory_space<vmem>>, vector<16x32xf32>,
      %c0_354 = arith.constant 0 : index
      %c0_355 = arith.constant 0 : index
      %511 = vector.load %arg2[%c0_354, %c0_355] : memref<32x48xf32, #tpu.memory_space<vmem>>, vector<32x48xf32>
      %512 = arith.truncf %511 : vector<32x48xf32> to vector<32x48xbf16>
      %c0_356 = arith.constant 0 : index
      %c0_357 = arith.constant 0 : index
      %513 = vector.load %arg3[%c0_356, %c0_357] : memref<48x32xbf16, #tpu.memory_space<vmem>>, vector<48x32xbf16>
      %cst_358 = arith.constant dense<0.000000e+00> : vector<32x32xf32>
      %514 = tpu.matmul %512, %513, %cst_358 {dimension_numbers = #tpu.dot_dimension_numbers<[1], [0], [0], [1], [0, 0, 1, 1], [], []>} : vector<32x48xbf16>, vector<48x32xbf16>, vector<32x32xf32> -> vector<32x32xf32>
      %c0_359 = arith.constant 0 : index
      %c0_360 = arith.constant 0 : index
      %515 = vector.load %arg4[%c0_359, %c0_360] : memref<1x32xf32, #tpu.memory_space<vmem>>, vector<1x32xf32>
      %516 = vector.broadcast %515 : vector<1x32xf32> to vector<32x32xf32>
      %517 = arith.addf %514, %516 : vector<32x32xf32>
      %518 = arith.truncf %517 : vector<32x32xf32> to vector<32x32xbf16>
      %c0_361 = arith.constant 0 : index
      %c0_362 = arith.constant 0 : index
      %519 = vector.load %arg29[%c0_361, %c0_362] : memref<32x32xbf16, #tpu.memory_space<vmem>>, vector<32x32xbf16>
      tpu.vector_store %arg29[%c0_361, %c0_362], %518 {strides = array<i32>} : memref<32x32xbf16, #tpu.memory_space<vmem>>, vector<32x32xbf16>,
      %c0_363 = arith.constant 0 : index
      %c0_364 = arith.constant 0 : index
      %520 = vector.load %arg5[%c0_363, %c0_364] : memref<8x8xf32, #tpu.memory_space<vmem>>, vector<8x8xf32>
      %521 = vector.shape_cast %520 : vector<8x8xf32> to vector<1x8x8xf32>
      %c0_365 = arith.constant 0 : index
      %c0_366 = arith.constant 0 : index
      %522 = vector.load %arg6[%c0_365, %c0_366] : memref<2x8xf32, #tpu.memory_space<vmem>>, vector<2x8xf32>
      %523 = vector.shape_cast %522 : vector<2x8xf32> to vector<2x1x8xf32>
      %524 = vector.broadcast %521 : vector<1x8x8xf32> to vector<2x8x8xf32>
      %525 = vector.broadcast %523 : vector<2x1x8xf32> to vector<2x8x8xf32>
      %526 = arith.addf %524, %525 : vector<2x8x8xf32>
      %c0_367 = arith.constant 0 : index
      %c0_368 = arith.constant 0 : index
      %c0_369 = arith.constant 0 : index
      %527 = vector.load %arg30[%c0_367, %c0_368, %c0_369] : memref<2x8x8xf32, #tpu.memory_space<vmem>>, vector<2x8x8xf32>
      tpu.vector_store %arg30[%c0_367, %c0_368, %c0_369], %526 {strides = array<i32>} : memref<2x8x8xf32, #tpu.memory_space<vmem>>, vector<2x8x8xf32>,
    } else {
    }
    %c0 = arith.constant 0 : index
    %c0_1 = arith.constant 0 : index
    %3 = vector.load %arg28[%c0, %c0_1] : memref<16x32xf32, #tpu.memory_space<vmem>>, vector<16x32xf32>
    %c0_2 = arith.constant 0 : index
    %c0_3 = arith.constant 0 : index
    %4 = vector.load %arg29[%c0_2, %c0_3] : memref<32x32xbf16, #tpu.memory_space<vmem>>, vector<32x32xbf16>
    %c0_4 = arith.constant 0 : index
    %c0_5 = arith.constant 0 : index
    %c0_6 = arith.constant 0 : index
    %5 = vector.load %arg30[%c0_4, %c0_5, %c0_6] : memref<2x8x8xf32, #tpu.memory_space<vmem>>, vector<2x8x8xf32>
    %6 = arith.truncf %3 : vector<16x32xf32> to vector<16x32xbf16>
    %cst = arith.constant 0.000000e+00 : f32
    %7 = vector.broadcast %cst : f32 to vector<16x32xf32>
    %c0_7 = arith.constant 0 : index
    %c0_8 = arith.constant 0 : index
    %c0_9 = arith.constant 0 : index
    %c0_10 = arith.constant 0 : index
    %8 = vector.load %arg7[%c0_7, %c0_8, %c0_9, %c0_10] : memref<1x12x32x8xbf16, #tpu.memory_space<vmem>>, vector<1x1x32x8xbf16>
    %9 = vector.shape_cast %8 : vector<1x1x32x8xbf16> to vector<32x8xbf16>
    %cst_11 = arith.constant dense<0.000000e+00> : vector<16x8xf32>
    %10 = tpu.matmul %6, %9, %cst_11 {dimension_numbers = #tpu.dot_dimension_numbers<[1], [0], [0], [1], [0, 0, 1, 1], [], []>} : vector<16x32xbf16>, vector<32x8xbf16>, vector<16x8xf32> -> vector<16x8xf32>
    %c0_12 = arith.constant 0 : index
    %c0_13 = arith.constant 0 : index
    %c0_14 = arith.constant 0 : index
    %c0_15 = arith.constant 0 : index
    %11 = vector.load %arg8[%c0_12, %c0_13, %c0_14, %c0_15] : memref<1x12x1x8xf32, #tpu.memory_space<vmem>>, vector<1x1x1x8xf32>
    %12 = vector.shape_cast %11 : vector<1x1x1x8xf32> to vector<1x8xf32>
    %13 = vector.broadcast %12 : vector<1x8xf32> to vector<16x8xf32>
    %14 = arith.addf %10, %13 : vector<16x8xf32>
    %15 = vector.shape_cast %14 : vector<16x8xf32> to vector<2x8x8xf32>
    %c0_16 = arith.constant 0 : index
    %c4 = arith.constant 4 : index
    %c0_17 = arith.constant 0 : index
    %c0_18 = arith.constant 0 : index
    %16 = vector.load %arg7[%c0_16, %c4, %c0_17, %c0_18] : memref<1x12x32x8xbf16, #tpu.memory_space<vmem>>, vector<1x1x32x8xbf16>
    %17 = vector.shape_cast %16 : vector<1x1x32x8xbf16> to vector<32x8xbf16>
    %cst_19 = arith.constant dense<0.000000e+00> : vector<16x8xf32>
    %18 = tpu.matmul %6, %17, %cst_19 {dimension_numbers = #tpu.dot_dimension_numbers<[1], [0], [0], [1], [0, 0, 1, 1], [], []>} : vector<16x32xbf16>, vector<32x8xbf16>, vector<16x8xf32> -> vector<16x8xf32>
    %c0_20 = arith.constant 0 : index
    %c4_21 = arith.constant 4 : index
    %c0_22 = arith.constant 0 : index
    %c0_23 = arith.constant 0 : index
    %19 = vector.load %arg8[%c0_20, %c4_21, %c0_22, %c0_23] : memref<1x12x1x8xf32, #tpu.memory_space<vmem>>, vector<1x1x1x8xf32>
    %20 = vector.shape_cast %19 : vector<1x1x1x8xf32> to vector<1x8xf32>
    %21 = vector.broadcast %20 : vector<1x8xf32> to vector<16x8xf32>
    %22 = arith.addf %18, %21 : vector<16x8xf32>
    %23 = vector.shape_cast %22 : vector<16x8xf32> to vector<2x8x8xf32>
    %c0_24 = arith.constant 0 : index
    %c8 = arith.constant 8 : index
    %c0_25 = arith.constant 0 : index
    %c0_26 = arith.constant 0 : index
    %24 = vector.load %arg7[%c0_24, %c8, %c0_25, %c0_26] : memref<1x12x32x8xbf16, #tpu.memory_space<vmem>>, vector<1x1x32x8xbf16>
    %25 = vector.shape_cast %24 : vector<1x1x32x8xbf16> to vector<32x8xbf16>
    %cst_27 = arith.constant dense<0.000000e+00> : vector<16x8xf32>
    %26 = tpu.matmul %6, %25, %cst_27 {dimension_numbers = #tpu.dot_dimension_numbers<[1], [0], [0], [1], [0, 0, 1, 1], [], []>} : vector<16x32xbf16>, vector<32x8xbf16>, vector<16x8xf32> -> vector<16x8xf32>
    %c0_28 = arith.constant 0 : index
    %c8_29 = arith.constant 8 : index
    %c0_30 = arith.constant 0 : index
    %c0_31 = arith.constant 0 : index
    %27 = vector.load %arg8[%c0_28, %c8_29, %c0_30, %c0_31] : memref<1x12x1x8xf32, #tpu.memory_space<vmem>>, vector<1x1x1x8xf32>
    %28 = vector.shape_cast %27 : vector<1x1x1x8xf32> to vector<1x8xf32>
    %29 = vector.broadcast %28 : vector<1x8xf32> to vector<16x8xf32>
    %30 = arith.addf %26, %29 : vector<16x8xf32>
    %31 = vector.shape_cast %30 : vector<16x8xf32> to vector<2x8x8xf32>
    %32 = arith.truncf %15 : vector<2x8x8xf32> to vector<2x8x8xbf16>
    %33 = arith.truncf %23 : vector<2x8x8xf32> to vector<2x8x8xbf16>
    "tpu.trace_start"() <{level = 10 : i32, message = "bqd,bkd->bqk"}> : () -> ()
    %cst_32 = arith.constant dense<0.000000e+00> : vector<2x8x8xf32>
    %34 = tpu.matmul %32, %33, %cst_32 {dimension_numbers = #tpu.dot_dimension_numbers<[2], [2], [1], [1], [0, 0, 0, 1, 1, 1], [0], [0]>} : vector<2x8x8xbf16>, vector<2x8x8xbf16>, vector<2x8x8xf32> -> vector<2x8x8xf32>
    "tpu.trace_stop"() : () -> ()
    %cst_33 = arith.constant 0.353553385 : f32
    %35 = vector.broadcast %cst_33 : f32 to vector<2x8x8xf32>
    %36 = arith.mulf %34, %35 : vector<2x8x8xf32>
    %37 = arith.addf %36, %5 : vector<2x8x8xf32>
    %cst_34 = arith.constant dense<0xFF800000> : vector<2x8xf32>
    %38 = vector.multi_reduction <maximumf>, %37, %cst_34 [2] : vector<2x8x8xf32> to vector<2x8xf32>
    %39 = vector.shape_cast %38 : vector<2x8xf32> to vector<2x8x1xf32>
    %40 = vector.broadcast %39 : vector<2x8x1xf32> to vector<2x8x8xf32>
    %41 = arith.subf %37, %40 : vector<2x8x8xf32>
    %42 = math.exp %41 : vector<2x8x8xf32>
    %cst_35 = arith.constant dense<0.000000e+00> : vector<2x8xf32>
    %43 = vector.multi_reduction <add>, %42, %cst_35 [2] : vector<2x8x8xf32> to vector<2x8xf32>
    %44 = vector.shape_cast %43 : vector<2x8xf32> to vector<2x8x1xf32>
    %45 = tpu.reciprocal %44 {approx = true} : vector<2x8x1xf32> -> vector<2x8x1xf32>
    %46 = vector.broadcast %45 : vector<2x8x1xf32> to vector<2x8x8xf32>
    %47 = arith.mulf %42, %46 : vector<2x8x8xf32>
    %48 = arith.truncf %47 : vector<2x8x8xf32> to vector<2x8x8xbf16>
    %49 = arith.truncf %31 : vector<2x8x8xf32> to vector<2x8x8xbf16>
    "tpu.trace_start"() <{level = 10 : i32, message = "bqk,bkd->bqd"}> : () -> ()
    %cst_36 = arith.constant dense<0.000000e+00> : vector<2x8x8xf32>
    %50 = tpu.matmul %48, %49, %cst_36 {dimension_numbers = #tpu.dot_dimension_numbers<[2], [1], [1], [2], [0, 0, 0, 1, 1, 2], [0], [0]>} : vector<2x8x8xbf16>, vector<2x8x8xbf16>, vector<2x8x8xf32> -> vector<2x8x8xf32>
    "tpu.trace_stop"() : () -> ()
    %51 = vector.shape_cast %50 : vector<2x8x8xf32> to vector<16x8xf32>
    %52 = arith.truncf %51 : vector<16x8xf32> to vector<16x8xbf16>
    %c0_37 = arith.constant 0 : index
    %c0_38 = arith.constant 0 : index
    %c0_39 = arith.constant 0 : index
    %c0_40 = arith.constant 0 : index
    %53 = vector.load %arg9[%c0_37, %c0_38, %c0_39, %c0_40] : memref<1x4x8x32xbf16, #tpu.memory_space<vmem>>, vector<1x1x8x32xbf16>
    %54 = vector.shape_cast %53 : vector<1x1x8x32xbf16> to vector<8x32xbf16>
    %cst_41 = arith.constant dense<0.000000e+00> : vector<16x32xf32>
    %55 = tpu.matmul %52, %54, %cst_41 {dimension_numbers = #tpu.dot_dimension_numbers<[1], [0], [0], [1], [0, 0, 1, 1], [], []>} : vector<16x8xbf16>, vector<8x32xbf16>, vector<16x32xf32> -> vector<16x32xf32>
    %56 = arith.addf %7, %55 : vector<16x32xf32>
    %c0_42 = arith.constant 0 : index
    %c1 = arith.constant 1 : index
    %c0_43 = arith.constant 0 : index
    %c0_44 = arith.constant 0 : index
    %57 = vector.load %arg7[%c0_42, %c1, %c0_43, %c0_44] : memref<1x12x32x8xbf16, #tpu.memory_space<vmem>>, vector<1x1x32x8xbf16>
    %58 = vector.shape_cast %57 : vector<1x1x32x8xbf16> to vector<32x8xbf16>
    %cst_45 = arith.constant dense<0.000000e+00> : vector<16x8xf32>
    %59 = tpu.matmul %6, %58, %cst_45 {dimension_numbers = #tpu.dot_dimension_numbers<[1], [0], [0], [1], [0, 0, 1, 1], [], []>} : vector<16x32xbf16>, vector<32x8xbf16>, vector<16x8xf32> -> vector<16x8xf32>
    %c0_46 = arith.constant 0 : index
    %c1_47 = arith.constant 1 : index
    %c0_48 = arith.constant 0 : index
    %c0_49 = arith.constant 0 : index
    %60 = vector.load %arg8[%c0_46, %c1_47, %c0_48, %c0_49] : memref<1x12x1x8xf32, #tpu.memory_space<vmem>>, vector<1x1x1x8xf32>
    %61 = vector.shape_cast %60 : vector<1x1x1x8xf32> to vector<1x8xf32>
    %62 = vector.broadcast %61 : vector<1x8xf32> to vector<16x8xf32>
    %63 = arith.addf %59, %62 : vector<16x8xf32>
    %64 = vector.shape_cast %63 : vector<16x8xf32> to vector<2x8x8xf32>
    %c0_50 = arith.constant 0 : index
    %c5 = arith.constant 5 : index
    %c0_51 = arith.constant 0 : index
    %c0_52 = arith.constant 0 : index
    %65 = vector.load %arg7[%c0_50, %c5, %c0_51, %c0_52] : memref<1x12x32x8xbf16, #tpu.memory_space<vmem>>, vector<1x1x32x8xbf16>
    %66 = vector.shape_cast %65 : vector<1x1x32x8xbf16> to vector<32x8xbf16>
    %cst_53 = arith.constant dense<0.000000e+00> : vector<16x8xf32>
    %67 = tpu.matmul %6, %66, %cst_53 {dimension_numbers = #tpu.dot_dimension_numbers<[1], [0], [0], [1], [0, 0, 1, 1], [], []>} : vector<16x32xbf16>, vector<32x8xbf16>, vector<16x8xf32> -> vector<16x8xf32>
    %c0_54 = arith.constant 0 : index
    %c5_55 = arith.constant 5 : index
    %c0_56 = arith.constant 0 : index
    %c0_57 = arith.constant 0 : index
    %68 = vector.load %arg8[%c0_54, %c5_55, %c0_56, %c0_57] : memref<1x12x1x8xf32, #tpu.memory_space<vmem>>, vector<1x1x1x8xf32>
    %69 = vector.shape_cast %68 : vector<1x1x1x8xf32> to vector<1x8xf32>
    %70 = vector.broadcast %69 : vector<1x8xf32> to vector<16x8xf32>
    %71 = arith.addf %67, %70 : vector<16x8xf32>
    %72 = vector.shape_cast %71 : vector<16x8xf32> to vector<2x8x8xf32>
    %c0_58 = arith.constant 0 : index
    %c9 = arith.constant 9 : index
    %c0_59 = arith.constant 0 : index
    %c0_60 = arith.constant 0 : index
    %73 = vector.load %arg7[%c0_58, %c9, %c0_59, %c0_60] : memref<1x12x32x8xbf16, #tpu.memory_space<vmem>>, vector<1x1x32x8xbf16>
    %74 = vector.shape_cast %73 : vector<1x1x32x8xbf16> to vector<32x8xbf16>
    %cst_61 = arith.constant dense<0.000000e+00> : vector<16x8xf32>
    %75 = tpu.matmul %6, %74, %cst_61 {dimension_numbers = #tpu.dot_dimension_numbers<[1], [0], [0], [1], [0, 0, 1, 1], [], []>} : vector<16x32xbf16>, vector<32x8xbf16>, vector<16x8xf32> -> vector<16x8xf32>
    %c0_62 = arith.constant 0 : index
    %c9_63 = arith.constant 9 : index
    %c0_64 = arith.constant 0 : index
    %c0_65 = arith.constant 0 : index
    %76 = vector.load %arg8[%c0_62, %c9_63, %c0_64, %c0_65] : memref<1x12x1x8xf32, #tpu.memory_space<vmem>>, vector<1x1x1x8xf32>
    %77 = vector.shape_cast %76 : vector<1x1x1x8xf32> to vector<1x8xf32>
    %78 = vector.broadcast %77 : vector<1x8xf32> to vector<16x8xf32>
    %79 = arith.addf %75, %78 : vector<16x8xf32>
    %80 = vector.shape_cast %79 : vector<16x8xf32> to vector<2x8x8xf32>
    %81 = arith.truncf %64 : vector<2x8x8xf32> to vector<2x8x8xbf16>
    %82 = arith.truncf %72 : vector<2x8x8xf32> to vector<2x8x8xbf16>
    "tpu.trace_start"() <{level = 10 : i32, message = "bqd,bkd->bqk"}> : () -> ()
    %cst_66 = arith.constant dense<0.000000e+00> : vector<2x8x8xf32>
    %83 = tpu.matmul %81, %82, %cst_66 {dimension_numbers = #tpu.dot_dimension_numbers<[2], [2], [1], [1], [0, 0, 0, 1, 1, 1], [0], [0]>} : vector<2x8x8xbf16>, vector<2x8x8xbf16>, vector<2x8x8xf32> -> vector<2x8x8xf32>
    "tpu.trace_stop"() : () -> ()
    %cst_67 = arith.constant 0.353553385 : f32
    %84 = vector.broadcast %cst_67 : f32 to vector<2x8x8xf32>
    %85 = arith.mulf %83, %84 : vector<2x8x8xf32>
    %86 = arith.addf %85, %5 : vector<2x8x8xf32>
    %cst_68 = arith.constant dense<0xFF800000> : vector<2x8xf32>
    %87 = vector.multi_reduction <maximumf>, %86, %cst_68 [2] : vector<2x8x8xf32> to vector<2x8xf32>
    %88 = vector.shape_cast %87 : vector<2x8xf32> to vector<2x8x1xf32>
    %89 = vector.broadcast %88 : vector<2x8x1xf32> to vector<2x8x8xf32>
    %90 = arith.subf %86, %89 : vector<2x8x8xf32>
    %91 = math.exp %90 : vector<2x8x8xf32>
    %cst_69 = arith.constant dense<0.000000e+00> : vector<2x8xf32>
    %92 = vector.multi_reduction <add>, %91, %cst_69 [2] : vector<2x8x8xf32> to vector<2x8xf32>
    %93 = vector.shape_cast %92 : vector<2x8xf32> to vector<2x8x1xf32>
    %94 = tpu.reciprocal %93 {approx = true} : vector<2x8x1xf32> -> vector<2x8x1xf32>
    %95 = vector.broadcast %94 : vector<2x8x1xf32> to vector<2x8x8xf32>
    %96 = arith.mulf %91, %95 : vector<2x8x8xf32>
    %97 = arith.truncf %96 : vector<2x8x8xf32> to vector<2x8x8xbf16>
    %98 = arith.truncf %80 : vector<2x8x8xf32> to vector<2x8x8xbf16>
    "tpu.trace_start"() <{level = 10 : i32, message = "bqk,bkd->bqd"}> : () -> ()
    %cst_70 = arith.constant dense<0.000000e+00> : vector<2x8x8xf32>
    %99 = tpu.matmul %97, %98, %cst_70 {dimension_numbers = #tpu.dot_dimension_numbers<[2], [1], [1], [2], [0, 0, 0, 1, 1, 2], [0], [0]>} : vector<2x8x8xbf16>, vector<2x8x8xbf16>, vector<2x8x8xf32> -> vector<2x8x8xf32>
    "tpu.trace_stop"() : () -> ()
    %100 = vector.shape_cast %99 : vector<2x8x8xf32> to vector<16x8xf32>
    %101 = arith.truncf %100 : vector<16x8xf32> to vector<16x8xbf16>
    %c0_71 = arith.constant 0 : index
    %c1_72 = arith.constant 1 : index
    %c0_73 = arith.constant 0 : index
    %c0_74 = arith.constant 0 : index
    %102 = vector.load %arg9[%c0_71, %c1_72, %c0_73, %c0_74] : memref<1x4x8x32xbf16, #tpu.memory_space<vmem>>, vector<1x1x8x32xbf16>
    %103 = vector.shape_cast %102 : vector<1x1x8x32xbf16> to vector<8x32xbf16>
    %cst_75 = arith.constant dense<0.000000e+00> : vector<16x32xf32>
    %104 = tpu.matmul %101, %103, %cst_75 {dimension_numbers = #tpu.dot_dimension_numbers<[1], [0], [0], [1], [0, 0, 1, 1], [], []>} : vector<16x8xbf16>, vector<8x32xbf16>, vector<16x32xf32> -> vector<16x32xf32>
    %105 = arith.addf %56, %104 : vector<16x32xf32>
    %c0_76 = arith.constant 0 : index
    %c2 = arith.constant 2 : index
    %c0_77 = arith.constant 0 : index
    %c0_78 = arith.constant 0 : index
    %106 = vector.load %arg7[%c0_76, %c2, %c0_77, %c0_78] : memref<1x12x32x8xbf16, #tpu.memory_space<vmem>>, vector<1x1x32x8xbf16>
    %107 = vector.shape_cast %106 : vector<1x1x32x8xbf16> to vector<32x8xbf16>
    %cst_79 = arith.constant dense<0.000000e+00> : vector<16x8xf32>
    %108 = tpu.matmul %6, %107, %cst_79 {dimension_numbers = #tpu.dot_dimension_numbers<[1], [0], [0], [1], [0, 0, 1, 1], [], []>} : vector<16x32xbf16>, vector<32x8xbf16>, vector<16x8xf32> -> vector<16x8xf32>
    %c0_80 = arith.constant 0 : index
    %c2_81 = arith.constant 2 : index
    %c0_82 = arith.constant 0 : index
    %c0_83 = arith.constant 0 : index
    %109 = vector.load %arg8[%c0_80, %c2_81, %c0_82, %c0_83] : memref<1x12x1x8xf32, #tpu.memory_space<vmem>>, vector<1x1x1x8xf32>
    %110 = vector.shape_cast %109 : vector<1x1x1x8xf32> to vector<1x8xf32>
    %111 = vector.broadcast %110 : vector<1x8xf32> to vector<16x8xf32>
    %112 = arith.addf %108, %111 : vector<16x8xf32>
    %113 = vector.shape_cast %112 : vector<16x8xf32> to vector<2x8x8xf32>
    %c0_84 = arith.constant 0 : index
    %c6 = arith.constant 6 : index
    %c0_85 = arith.constant 0 : index
    %c0_86 = arith.constant 0 : index
    %114 = vector.load %arg7[%c0_84, %c6, %c0_85, %c0_86] : memref<1x12x32x8xbf16, #tpu.memory_space<vmem>>, vector<1x1x32x8xbf16>
    %115 = vector.shape_cast %114 : vector<1x1x32x8xbf16> to vector<32x8xbf16>
    %cst_87 = arith.constant dense<0.000000e+00> : vector<16x8xf32>
    %116 = tpu.matmul %6, %115, %cst_87 {dimension_numbers = #tpu.dot_dimension_numbers<[1], [0], [0], [1], [0, 0, 1, 1], [], []>} : vector<16x32xbf16>, vector<32x8xbf16>, vector<16x8xf32> -> vector<16x8xf32>
    %c0_88 = arith.constant 0 : index
    %c6_89 = arith.constant 6 : index
    %c0_90 = arith.constant 0 : index
    %c0_91 = arith.constant 0 : index
    %117 = vector.load %arg8[%c0_88, %c6_89, %c0_90, %c0_91] : memref<1x12x1x8xf32, #tpu.memory_space<vmem>>, vector<1x1x1x8xf32>
    %118 = vector.shape_cast %117 : vector<1x1x1x8xf32> to vector<1x8xf32>
    %119 = vector.broadcast %118 : vector<1x8xf32> to vector<16x8xf32>
    %120 = arith.addf %116, %119 : vector<16x8xf32>
    %121 = vector.shape_cast %120 : vector<16x8xf32> to vector<2x8x8xf32>
    %c0_92 = arith.constant 0 : index
    %c10 = arith.constant 10 : index
    %c0_93 = arith.constant 0 : index
    %c0_94 = arith.constant 0 : index
    %122 = vector.load %arg7[%c0_92, %c10, %c0_93, %c0_94] : memref<1x12x32x8xbf16, #tpu.memory_space<vmem>>, vector<1x1x32x8xbf16>
    %123 = vector.shape_cast %122 : vector<1x1x32x8xbf16> to vector<32x8xbf16>
    %cst_95 = arith.constant dense<0.000000e+00> : vector<16x8xf32>
    %124 = tpu.matmul %6, %123, %cst_95 {dimension_numbers = #tpu.dot_dimension_numbers<[1], [0], [0], [1], [0, 0, 1, 1], [], []>} : vector<16x32xbf16>, vector<32x8xbf16>, vector<16x8xf32> -> vector<16x8xf32>
    %c0_96 = arith.constant 0 : index
    %c10_97 = arith.constant 10 : index
    %c0_98 = arith.constant 0 : index
    %c0_99 = arith.constant 0 : index
    %125 = vector.load %arg8[%c0_96, %c10_97, %c0_98, %c0_99] : memref<1x12x1x8xf32, #tpu.memory_space<vmem>>, vector<1x1x1x8xf32>
    %126 = vector.shape_cast %125 : vector<1x1x1x8xf32> to vector<1x8xf32>
    %127 = vector.broadcast %126 : vector<1x8xf32> to vector<16x8xf32>
    %128 = arith.addf %124, %127 : vector<16x8xf32>
    %129 = vector.shape_cast %128 : vector<16x8xf32> to vector<2x8x8xf32>
    %130 = arith.truncf %113 : vector<2x8x8xf32> to vector<2x8x8xbf16>
    %131 = arith.truncf %121 : vector<2x8x8xf32> to vector<2x8x8xbf16>
    "tpu.trace_start"() <{level = 10 : i32, message = "bqd,bkd->bqk"}> : () -> ()
    %cst_100 = arith.constant dense<0.000000e+00> : vector<2x8x8xf32>
    %132 = tpu.matmul %130, %131, %cst_100 {dimension_numbers = #tpu.dot_dimension_numbers<[2], [2], [1], [1], [0, 0, 0, 1, 1, 1], [0], [0]>} : vector<2x8x8xbf16>, vector<2x8x8xbf16>, vector<2x8x8xf32> -> vector<2x8x8xf32>
    "tpu.trace_stop"() : () -> ()
    %cst_101 = arith.constant 0.353553385 : f32
    %133 = vector.broadcast %cst_101 : f32 to vector<2x8x8xf32>
    %134 = arith.mulf %132, %133 : vector<2x8x8xf32>
    %135 = arith.addf %134, %5 : vector<2x8x8xf32>
    %cst_102 = arith.constant dense<0xFF800000> : vector<2x8xf32>
    %136 = vector.multi_reduction <maximumf>, %135, %cst_102 [2] : vector<2x8x8xf32> to vector<2x8xf32>
    %137 = vector.shape_cast %136 : vector<2x8xf32> to vector<2x8x1xf32>
    %138 = vector.broadcast %137 : vector<2x8x1xf32> to vector<2x8x8xf32>
    %139 = arith.subf %135, %138 : vector<2x8x8xf32>
    %140 = math.exp %139 : vector<2x8x8xf32>
    %cst_103 = arith.constant dense<0.000000e+00> : vector<2x8xf32>
    %141 = vector.multi_reduction <add>, %140, %cst_103 [2] : vector<2x8x8xf32> to vector<2x8xf32>
    %142 = vector.shape_cast %141 : vector<2x8xf32> to vector<2x8x1xf32>
    %143 = tpu.reciprocal %142 {approx = true} : vector<2x8x1xf32> -> vector<2x8x1xf32>
    %144 = vector.broadcast %143 : vector<2x8x1xf32> to vector<2x8x8xf32>
    %145 = arith.mulf %140, %144 : vector<2x8x8xf32>
    %146 = arith.truncf %145 : vector<2x8x8xf32> to vector<2x8x8xbf16>
    %147 = arith.truncf %129 : vector<2x8x8xf32> to vector<2x8x8xbf16>
    "tpu.trace_start"() <{level = 10 : i32, message = "bqk,bkd->bqd"}> : () -> ()
    %cst_104 = arith.constant dense<0.000000e+00> : vector<2x8x8xf32>
    %148 = tpu.matmul %146, %147, %cst_104 {dimension_numbers = #tpu.dot_dimension_numbers<[2], [1], [1], [2], [0, 0, 0, 1, 1, 2], [0], [0]>} : vector<2x8x8xbf16>, vector<2x8x8xbf16>, vector<2x8x8xf32> -> vector<2x8x8xf32>
    "tpu.trace_stop"() : () -> ()
    %149 = vector.shape_cast %148 : vector<2x8x8xf32> to vector<16x8xf32>
    %150 = arith.truncf %149 : vector<16x8xf32> to vector<16x8xbf16>
    %c0_105 = arith.constant 0 : index
    %c2_106 = arith.constant 2 : index
    %c0_107 = arith.constant 0 : index
    %c0_108 = arith.constant 0 : index
    %151 = vector.load %arg9[%c0_105, %c2_106, %c0_107, %c0_108] : memref<1x4x8x32xbf16, #tpu.memory_space<vmem>>, vector<1x1x8x32xbf16>
    %152 = vector.shape_cast %151 : vector<1x1x8x32xbf16> to vector<8x32xbf16>
    %cst_109 = arith.constant dense<0.000000e+00> : vector<16x32xf32>
    %153 = tpu.matmul %150, %152, %cst_109 {dimension_numbers = #tpu.dot_dimension_numbers<[1], [0], [0], [1], [0, 0, 1, 1], [], []>} : vector<16x8xbf16>, vector<8x32xbf16>, vector<16x32xf32> -> vector<16x32xf32>
    %154 = arith.addf %105, %153 : vector<16x32xf32>
    %c0_110 = arith.constant 0 : index
    %c3 = arith.constant 3 : index
    %c0_111 = arith.constant 0 : index
    %c0_112 = arith.constant 0 : index
    %155 = vector.load %arg7[%c0_110, %c3, %c0_111, %c0_112] : memref<1x12x32x8xbf16, #tpu.memory_space<vmem>>, vector<1x1x32x8xbf16>
    %156 = vector.shape_cast %155 : vector<1x1x32x8xbf16> to vector<32x8xbf16>
    %cst_113 = arith.constant dense<0.000000e+00> : vector<16x8xf32>
    %157 = tpu.matmul %6, %156, %cst_113 {dimension_numbers = #tpu.dot_dimension_numbers<[1], [0], [0], [1], [0, 0, 1, 1], [], []>} : vector<16x32xbf16>, vector<32x8xbf16>, vector<16x8xf32> -> vector<16x8xf32>
    %c0_114 = arith.constant 0 : index
    %c3_115 = arith.constant 3 : index
    %c0_116 = arith.constant 0 : index
    %c0_117 = arith.constant 0 : index
    %158 = vector.load %arg8[%c0_114, %c3_115, %c0_116, %c0_117] : memref<1x12x1x8xf32, #tpu.memory_space<vmem>>, vector<1x1x1x8xf32>
    %159 = vector.shape_cast %158 : vector<1x1x1x8xf32> to vector<1x8xf32>
    %160 = vector.broadcast %159 : vector<1x8xf32> to vector<16x8xf32>
    %161 = arith.addf %157, %160 : vector<16x8xf32>
    %162 = vector.shape_cast %161 : vector<16x8xf32> to vector<2x8x8xf32>
    %c0_118 = arith.constant 0 : index
    %c7 = arith.constant 7 : index
    %c0_119 = arith.constant 0 : index
    %c0_120 = arith.constant 0 : index
    %163 = vector.load %arg7[%c0_118, %c7, %c0_119, %c0_120] : memref<1x12x32x8xbf16, #tpu.memory_space<vmem>>, vector<1x1x32x8xbf16>
    %164 = vector.shape_cast %163 : vector<1x1x32x8xbf16> to vector<32x8xbf16>
    %cst_121 = arith.constant dense<0.000000e+00> : vector<16x8xf32>
    %165 = tpu.matmul %6, %164, %cst_121 {dimension_numbers = #tpu.dot_dimension_numbers<[1], [0], [0], [1], [0, 0, 1, 1], [], []>} : vector<16x32xbf16>, vector<32x8xbf16>, vector<16x8xf32> -> vector<16x8xf32>
    %c0_122 = arith.constant 0 : index
    %c7_123 = arith.constant 7 : index
    %c0_124 = arith.constant 0 : index
    %c0_125 = arith.constant 0 : index
    %166 = vector.load %arg8[%c0_122, %c7_123, %c0_124, %c0_125] : memref<1x12x1x8xf32, #tpu.memory_space<vmem>>, vector<1x1x1x8xf32>
    %167 = vector.shape_cast %166 : vector<1x1x1x8xf32> to vector<1x8xf32>
    %168 = vector.broadcast %167 : vector<1x8xf32> to vector<16x8xf32>
    %169 = arith.addf %165, %168 : vector<16x8xf32>
    %170 = vector.shape_cast %169 : vector<16x8xf32> to vector<2x8x8xf32>
    %c0_126 = arith.constant 0 : index
    %c11 = arith.constant 11 : index
    %c0_127 = arith.constant 0 : index
    %c0_128 = arith.constant 0 : index
    %171 = vector.load %arg7[%c0_126, %c11, %c0_127, %c0_128] : memref<1x12x32x8xbf16, #tpu.memory_space<vmem>>, vector<1x1x32x8xbf16>
    %172 = vector.shape_cast %171 : vector<1x1x32x8xbf16> to vector<32x8xbf16>
    %cst_129 = arith.constant dense<0.000000e+00> : vector<16x8xf32>
    %173 = tpu.matmul %6, %172, %cst_129 {dimension_numbers = #tpu.dot_dimension_numbers<[1], [0], [0], [1], [0, 0, 1, 1], [], []>} : vector<16x32xbf16>, vector<32x8xbf16>, vector<16x8xf32> -> vector<16x8xf32>
    %c0_130 = arith.constant 0 : index
    %c11_131 = arith.constant 11 : index
    %c0_132 = arith.constant 0 : index
    %c0_133 = arith.constant 0 : index
    %174 = vector.load %arg8[%c0_130, %c11_131, %c0_132, %c0_133] : memref<1x12x1x8xf32, #tpu.memory_space<vmem>>, vector<1x1x1x8xf32>
    %175 = vector.shape_cast %174 : vector<1x1x1x8xf32> to vector<1x8xf32>
    %176 = vector.broadcast %175 : vector<1x8xf32> to vector<16x8xf32>
    %177 = arith.addf %173, %176 : vector<16x8xf32>
    %178 = vector.shape_cast %177 : vector<16x8xf32> to vector<2x8x8xf32>
    %179 = arith.truncf %162 : vector<2x8x8xf32> to vector<2x8x8xbf16>
    %180 = arith.truncf %170 : vector<2x8x8xf32> to vector<2x8x8xbf16>
    "tpu.trace_start"() <{level = 10 : i32, message = "bqd,bkd->bqk"}> : () -> ()
    %cst_134 = arith.constant dense<0.000000e+00> : vector<2x8x8xf32>
    %181 = tpu.matmul %179, %180, %cst_134 {dimension_numbers = #tpu.dot_dimension_numbers<[2], [2], [1], [1], [0, 0, 0, 1, 1, 1], [0], [0]>} : vector<2x8x8xbf16>, vector<2x8x8xbf16>, vector<2x8x8xf32> -> vector<2x8x8xf32>
    "tpu.trace_stop"() : () -> ()
    %cst_135 = arith.constant 0.353553385 : f32
    %182 = vector.broadcast %cst_135 : f32 to vector<2x8x8xf32>
    %183 = arith.mulf %181, %182 : vector<2x8x8xf32>
    %184 = arith.addf %183, %5 : vector<2x8x8xf32>
    %cst_136 = arith.constant dense<0xFF800000> : vector<2x8xf32>
    %185 = vector.multi_reduction <maximumf>, %184, %cst_136 [2] : vector<2x8x8xf32> to vector<2x8xf32>
    %186 = vector.shape_cast %185 : vector<2x8xf32> to vector<2x8x1xf32>
    %187 = vector.broadcast %186 : vector<2x8x1xf32> to vector<2x8x8xf32>
    %188 = arith.subf %184, %187 : vector<2x8x8xf32>
    %189 = math.exp %188 : vector<2x8x8xf32>
    %cst_137 = arith.constant dense<0.000000e+00> : vector<2x8xf32>
    %190 = vector.multi_reduction <add>, %189, %cst_137 [2] : vector<2x8x8xf32> to vector<2x8xf32>
    %191 = vector.shape_cast %190 : vector<2x8xf32> to vector<2x8x1xf32>
    %192 = tpu.reciprocal %191 {approx = true} : vector<2x8x1xf32> -> vector<2x8x1xf32>
    %193 = vector.broadcast %192 : vector<2x8x1xf32> to vector<2x8x8xf32>
    %194 = arith.mulf %189, %193 : vector<2x8x8xf32>
    %195 = arith.truncf %194 : vector<2x8x8xf32> to vector<2x8x8xbf16>
    %196 = arith.truncf %178 : vector<2x8x8xf32> to vector<2x8x8xbf16>
    "tpu.trace_start"() <{level = 10 : i32, message = "bqk,bkd->bqd"}> : () -> ()
    %cst_138 = arith.constant dense<0.000000e+00> : vector<2x8x8xf32>
    %197 = tpu.matmul %195, %196, %cst_138 {dimension_numbers = #tpu.dot_dimension_numbers<[2], [1], [1], [2], [0, 0, 0, 1, 1, 2], [0], [0]>} : vector<2x8x8xbf16>, vector<2x8x8xbf16>, vector<2x8x8xf32> -> vector<2x8x8xf32>
    "tpu.trace_stop"() : () -> ()
    %198 = vector.shape_cast %197 : vector<2x8x8xf32> to vector<16x8xf32>
    %199 = arith.truncf %198 : vector<16x8xf32> to vector<16x8xbf16>
    %c0_139 = arith.constant 0 : index
    %c3_140 = arith.constant 3 : index
    %c0_141 = arith.constant 0 : index
    %c0_142 = arith.constant 0 : index
    %200 = vector.load %arg9[%c0_139, %c3_140, %c0_141, %c0_142] : memref<1x4x8x32xbf16, #tpu.memory_space<vmem>>, vector<1x1x8x32xbf16>
    %201 = vector.shape_cast %200 : vector<1x1x8x32xbf16> to vector<8x32xbf16>
    %cst_143 = arith.constant dense<0.000000e+00> : vector<16x32xf32>
    %202 = tpu.matmul %199, %201, %cst_143 {dimension_numbers = #tpu.dot_dimension_numbers<[1], [0], [0], [1], [0, 0, 1, 1], [], []>} : vector<16x8xbf16>, vector<8x32xbf16>, vector<16x32xf32> -> vector<16x32xf32>
    %203 = arith.addf %154, %202 : vector<16x32xf32>
    %c0_144 = arith.constant 0 : index
    %c0_145 = arith.constant 0 : index
    %c0_146 = arith.constant 0 : index
    %204 = vector.load %arg10[%c0_144, %c0_145, %c0_146] : memref<1x1x32xf32, #tpu.memory_space<vmem>>, vector<1x1x32xf32>
    %205 = vector.shape_cast %204 : vector<1x1x32xf32> to vector<1x32xf32>
    %206 = vector.broadcast %205 : vector<1x32xf32> to vector<16x32xf32>
    %207 = arith.addf %203, %206 : vector<16x32xf32>
    %208 = arith.addf %3, %207 : vector<16x32xf32>
    %c0_147 = arith.constant 0 : index
    %c0_148 = arith.constant 0 : index
    %c0_149 = arith.constant 0 : index
    %209 = vector.load %arg19[%c0_147, %c0_148, %c0_149] : memref<1x1x32xf32, #tpu.memory_space<vmem>>, vector<1x1x32xf32>
    %210 = vector.shape_cast %209 : vector<1x1x32xf32> to vector<1x32xf32>
    %c0_150 = arith.constant 0 : index
    %c0_151 = arith.constant 0 : index
    %c0_152 = arith.constant 0 : index
    %211 = vector.load %arg20[%c0_150, %c0_151, %c0_152] : memref<1x1x32xf32, #tpu.memory_space<vmem>>, vector<1x1x32xf32>
    %212 = vector.shape_cast %211 : vector<1x1x32xf32> to vector<1x32xf32>
    %cst_153 = arith.constant dense<0.000000e+00> : vector<16xf32>
    %213 = vector.multi_reduction <add>, %208, %cst_153 [1] : vector<16x32xf32> to vector<16xf32>
    %214 = vector.shape_cast %213 : vector<16xf32> to vector<16x1xf32>
    %cst_154 = arith.constant 3.200000e+01 : f32
    %215 = vector.broadcast %cst_154 : f32 to vector<16x1xf32>
    %216 = arith.divf %214, %215 : vector<16x1xf32>
    %217 = vector.broadcast %216 : vector<16x1xf32> to vector<16x32xf32>
    %218 = arith.subf %208, %217 : vector<16x32xf32>
    %219 = arith.mulf %218, %218 : vector<16x32xf32>
    %cst_155 = arith.constant dense<0.000000e+00> : vector<16xf32>
    %220 = vector.multi_reduction <add>, %219, %cst_155 [1] : vector<16x32xf32> to vector<16xf32>
    %221 = vector.shape_cast %220 : vector<16xf32> to vector<16x1xf32>
    %cst_156 = arith.constant 3.200000e+01 : f32
    %222 = vector.broadcast %cst_156 : f32 to vector<16x1xf32>
    %223 = arith.divf %221, %222 : vector<16x1xf32>
    %224 = vector.broadcast %216 : vector<16x1xf32> to vector<16x32xf32>
    %225 = arith.subf %208, %224 : vector<16x32xf32>
    %cst_157 = arith.constant 9.99999974E-6 : f32
    %226 = vector.broadcast %cst_157 : f32 to vector<16x1xf32>
    %227 = arith.addf %223, %226 : vector<16x1xf32>
    %228 = math.rsqrt %227 : vector<16x1xf32>
    %229 = vector.broadcast %228 : vector<16x1xf32> to vector<16x32xf32>
    %230 = arith.mulf %225, %229 : vector<16x32xf32>
    %231 = vector.broadcast %210 : vector<1x32xf32> to vector<16x32xf32>
    %232 = arith.mulf %230, %231 : vector<16x32xf32>
    %233 = vector.broadcast %212 : vector<1x32xf32> to vector<16x32xf32>
    %234 = arith.addf %232, %233 : vector<16x32xf32>
    %235 = arith.truncf %234 : vector<16x32xf32> to vector<16x32xbf16>
    %cst_158 = arith.constant 0.000000e+00 : f32
    %236 = vector.broadcast %cst_158 : f32 to vector<16x32xf32>
    %c0_159 = arith.constant 0 : index
    %c0_160 = arith.constant 0 : index
    %c0_161 = arith.constant 0 : index
    %c0_162 = arith.constant 0 : index
    %237 = vector.load %arg11[%c0_159, %c0_160, %c0_161, %c0_162] : memref<1x12x32x8xbf16, #tpu.memory_space<vmem>>, vector<1x1x32x8xbf16>
    %238 = vector.shape_cast %237 : vector<1x1x32x8xbf16> to vector<32x8xbf16>
    %cst_163 = arith.constant dense<0.000000e+00> : vector<16x8xf32>
    %239 = tpu.matmul %235, %238, %cst_163 {dimension_numbers = #tpu.dot_dimension_numbers<[1], [0], [0], [1], [0, 0, 1, 1], [], []>} : vector<16x32xbf16>, vector<32x8xbf16>, vector<16x8xf32> -> vector<16x8xf32>
    %c0_164 = arith.constant 0 : index
    %c0_165 = arith.constant 0 : index
    %c0_166 = arith.constant 0 : index
    %c0_167 = arith.constant 0 : index
    %240 = vector.load %arg12[%c0_164, %c0_165, %c0_166, %c0_167] : memref<1x12x1x8xf32, #tpu.memory_space<vmem>>, vector<1x1x1x8xf32>
    %241 = vector.shape_cast %240 : vector<1x1x1x8xf32> to vector<1x8xf32>
    %242 = vector.broadcast %241 : vector<1x8xf32> to vector<16x8xf32>
    %243 = arith.addf %239, %242 : vector<16x8xf32>
    %244 = vector.shape_cast %243 : vector<16x8xf32> to vector<2x8x8xf32>
    %c0_168 = arith.constant 0 : index
    %c4_169 = arith.constant 4 : index
    %c0_170 = arith.constant 0 : index
    %c0_171 = arith.constant 0 : index
    %245 = vector.load %arg11[%c0_168, %c4_169, %c0_170, %c0_171] : memref<1x12x32x8xbf16, #tpu.memory_space<vmem>>, vector<1x1x32x8xbf16>
    %246 = vector.shape_cast %245 : vector<1x1x32x8xbf16> to vector<32x8xbf16>
    %cst_172 = arith.constant dense<0.000000e+00> : vector<32x8xf32>
    %247 = tpu.matmul %4, %246, %cst_172 {dimension_numbers = #tpu.dot_dimension_numbers<[1], [0], [0], [1], [0, 0, 1, 1], [], []>} : vector<32x32xbf16>, vector<32x8xbf16>, vector<32x8xf32> -> vector<32x8xf32>
    %c0_173 = arith.constant 0 : index
    %c4_174 = arith.constant 4 : index
    %c0_175 = arith.constant 0 : index
    %c0_176 = arith.constant 0 : index
    %248 = vector.load %arg12[%c0_173, %c4_174, %c0_175, %c0_176] : memref<1x12x1x8xf32, #tpu.memory_space<vmem>>, vector<1x1x1x8xf32>
    %249 = vector.shape_cast %248 : vector<1x1x1x8xf32> to vector<1x8xf32>
    %250 = vector.broadcast %249 : vector<1x8xf32> to vector<32x8xf32>
    %251 = arith.addf %247, %250 : vector<32x8xf32>
    %252 = vector.shape_cast %251 : vector<32x8xf32> to vector<2x16x8xf32>
    %c0_177 = arith.constant 0 : index
    %c8_178 = arith.constant 8 : index
    %c0_179 = arith.constant 0 : index
    %c0_180 = arith.constant 0 : index
    %253 = vector.load %arg11[%c0_177, %c8_178, %c0_179, %c0_180] : memref<1x12x32x8xbf16, #tpu.memory_space<vmem>>, vector<1x1x32x8xbf16>
    %254 = vector.shape_cast %253 : vector<1x1x32x8xbf16> to vector<32x8xbf16>
    %cst_181 = arith.constant dense<0.000000e+00> : vector<32x8xf32>
    %255 = tpu.matmul %4, %254, %cst_181 {dimension_numbers = #tpu.dot_dimension_numbers<[1], [0], [0], [1], [0, 0, 1, 1], [], []>} : vector<32x32xbf16>, vector<32x8xbf16>, vector<32x8xf32> -> vector<32x8xf32>
    %c0_182 = arith.constant 0 : index
    %c8_183 = arith.constant 8 : index
    %c0_184 = arith.constant 0 : index
    %c0_185 = arith.constant 0 : index
    %256 = vector.load %arg12[%c0_182, %c8_183, %c0_184, %c0_185] : memref<1x12x1x8xf32, #tpu.memory_space<vmem>>, vector<1x1x1x8xf32>
    %257 = vector.shape_cast %256 : vector<1x1x1x8xf32> to vector<1x8xf32>
    %258 = vector.broadcast %257 : vector<1x8xf32> to vector<32x8xf32>
    %259 = arith.addf %255, %258 : vector<32x8xf32>
    %260 = vector.shape_cast %259 : vector<32x8xf32> to vector<2x16x8xf32>
    %261 = arith.truncf %244 : vector<2x8x8xf32> to vector<2x8x8xbf16>
    %262 = arith.truncf %252 : vector<2x16x8xf32> to vector<2x16x8xbf16>
    "tpu.trace_start"() <{level = 10 : i32, message = "bqd,bkd->bqk"}> : () -> ()
    %cst_186 = arith.constant dense<0.000000e+00> : vector<2x8x16xf32>
    %263 = tpu.matmul %261, %262, %cst_186 {dimension_numbers = #tpu.dot_dimension_numbers<[2], [2], [1], [1], [0, 0, 0, 1, 1, 1], [0], [0]>} : vector<2x8x8xbf16>, vector<2x16x8xbf16>, vector<2x8x16xf32> -> vector<2x8x16xf32>
    "tpu.trace_stop"() : () -> ()
    %cst_187 = arith.constant 0.353553385 : f32
    %264 = vector.broadcast %cst_187 : f32 to vector<2x8x16xf32>
    %265 = arith.mulf %263, %264 : vector<2x8x16xf32>
    %cst_188 = arith.constant dense<0xFF800000> : vector<2x8xf32>
    %266 = vector.multi_reduction <maximumf>, %265, %cst_188 [2] : vector<2x8x16xf32> to vector<2x8xf32>
    %267 = vector.shape_cast %266 : vector<2x8xf32> to vector<2x8x1xf32>
    %268 = vector.broadcast %267 : vector<2x8x1xf32> to vector<2x8x16xf32>
    %269 = arith.subf %265, %268 : vector<2x8x16xf32>
    %270 = math.exp %269 : vector<2x8x16xf32>
    %cst_189 = arith.constant dense<0.000000e+00> : vector<2x8xf32>
    %271 = vector.multi_reduction <add>, %270, %cst_189 [2] : vector<2x8x16xf32> to vector<2x8xf32>
    %272 = vector.shape_cast %271 : vector<2x8xf32> to vector<2x8x1xf32>
    %273 = tpu.reciprocal %272 {approx = true} : vector<2x8x1xf32> -> vector<2x8x1xf32>
    %274 = vector.broadcast %273 : vector<2x8x1xf32> to vector<2x8x16xf32>
    %275 = arith.mulf %270, %274 : vector<2x8x16xf32>
    %276 = arith.truncf %275 : vector<2x8x16xf32> to vector<2x8x16xbf16>
    %277 = arith.truncf %260 : vector<2x16x8xf32> to vector<2x16x8xbf16>
    "tpu.trace_start"() <{level = 10 : i32, message = "bqk,bkd->bqd"}> : () -> ()
    %cst_190 = arith.constant dense<0.000000e+00> : vector<2x8x8xf32>
    %278 = tpu.matmul %276, %277, %cst_190 {dimension_numbers = #tpu.dot_dimension_numbers<[2], [1], [1], [2], [0, 0, 0, 1, 1, 2], [0], [0]>} : vector<2x8x16xbf16>, vector<2x16x8xbf16>, vector<2x8x8xf32> -> vector<2x8x8xf32>
    "tpu.trace_stop"() : () -> ()
    %279 = vector.shape_cast %278 : vector<2x8x8xf32> to vector<16x8xf32>
    %280 = arith.truncf %279 : vector<16x8xf32> to vector<16x8xbf16>
    %c0_191 = arith.constant 0 : index
    %c0_192 = arith.constant 0 : index
    %c0_193 = arith.constant 0 : index
    %c0_194 = arith.constant 0 : index
    %281 = vector.load %arg13[%c0_191, %c0_192, %c0_193, %c0_194] : memref<1x4x8x32xbf16, #tpu.memory_space<vmem>>, vector<1x1x8x32xbf16>
    %282 = vector.shape_cast %281 : vector<1x1x8x32xbf16> to vector<8x32xbf16>
    %cst_195 = arith.constant dense<0.000000e+00> : vector<16x32xf32>
    %283 = tpu.matmul %280, %282, %cst_195 {dimension_numbers = #tpu.dot_dimension_numbers<[1], [0], [0], [1], [0, 0, 1, 1], [], []>} : vector<16x8xbf16>, vector<8x32xbf16>, vector<16x32xf32> -> vector<16x32xf32>
    %284 = arith.addf %236, %283 : vector<16x32xf32>
    %c0_196 = arith.constant 0 : index
    %c1_197 = arith.constant 1 : index
    %c0_198 = arith.constant 0 : index
    %c0_199 = arith.constant 0 : index
    %285 = vector.load %arg11[%c0_196, %c1_197, %c0_198, %c0_199] : memref<1x12x32x8xbf16, #tpu.memory_space<vmem>>, vector<1x1x32x8xbf16>
    %286 = vector.shape_cast %285 : vector<1x1x32x8xbf16> to vector<32x8xbf16>
    %cst_200 = arith.constant dense<0.000000e+00> : vector<16x8xf32>
    %287 = tpu.matmul %235, %286, %cst_200 {dimension_numbers = #tpu.dot_dimension_numbers<[1], [0], [0], [1], [0, 0, 1, 1], [], []>} : vector<16x32xbf16>, vector<32x8xbf16>, vector<16x8xf32> -> vector<16x8xf32>
    %c0_201 = arith.constant 0 : index
    %c1_202 = arith.constant 1 : index
    %c0_203 = arith.constant 0 : index
    %c0_204 = arith.constant 0 : index
    %288 = vector.load %arg12[%c0_201, %c1_202, %c0_203, %c0_204] : memref<1x12x1x8xf32, #tpu.memory_space<vmem>>, vector<1x1x1x8xf32>
    %289 = vector.shape_cast %288 : vector<1x1x1x8xf32> to vector<1x8xf32>
    %290 = vector.broadcast %289 : vector<1x8xf32> to vector<16x8xf32>
    %291 = arith.addf %287, %290 : vector<16x8xf32>
    %292 = vector.shape_cast %291 : vector<16x8xf32> to vector<2x8x8xf32>
    %c0_205 = arith.constant 0 : index
    %c5_206 = arith.constant 5 : index
    %c0_207 = arith.constant 0 : index
    %c0_208 = arith.constant 0 : index
    %293 = vector.load %arg11[%c0_205, %c5_206, %c0_207, %c0_208] : memref<1x12x32x8xbf16, #tpu.memory_space<vmem>>, vector<1x1x32x8xbf16>
    %294 = vector.shape_cast %293 : vector<1x1x32x8xbf16> to vector<32x8xbf16>
    %cst_209 = arith.constant dense<0.000000e+00> : vector<32x8xf32>
    %295 = tpu.matmul %4, %294, %cst_209 {dimension_numbers = #tpu.dot_dimension_numbers<[1], [0], [0], [1], [0, 0, 1, 1], [], []>} : vector<32x32xbf16>, vector<32x8xbf16>, vector<32x8xf32> -> vector<32x8xf32>
    %c0_210 = arith.constant 0 : index
    %c5_211 = arith.constant 5 : index
    %c0_212 = arith.constant 0 : index
    %c0_213 = arith.constant 0 : index
    %296 = vector.load %arg12[%c0_210, %c5_211, %c0_212, %c0_213] : memref<1x12x1x8xf32, #tpu.memory_space<vmem>>, vector<1x1x1x8xf32>
    %297 = vector.shape_cast %296 : vector<1x1x1x8xf32> to vector<1x8xf32>
    %298 = vector.broadcast %297 : vector<1x8xf32> to vector<32x8xf32>
    %299 = arith.addf %295, %298 : vector<32x8xf32>
    %300 = vector.shape_cast %299 : vector<32x8xf32> to vector<2x16x8xf32>
    %c0_214 = arith.constant 0 : index
    %c9_215 = arith.constant 9 : index
    %c0_216 = arith.constant 0 : index
    %c0_217 = arith.constant 0 : index
    %301 = vector.load %arg11[%c0_214, %c9_215, %c0_216, %c0_217] : memref<1x12x32x8xbf16, #tpu.memory_space<vmem>>, vector<1x1x32x8xbf16>
    %302 = vector.shape_cast %301 : vector<1x1x32x8xbf16> to vector<32x8xbf16>
    %cst_218 = arith.constant dense<0.000000e+00> : vector<32x8xf32>
    %303 = tpu.matmul %4, %302, %cst_218 {dimension_numbers = #tpu.dot_dimension_numbers<[1], [0], [0], [1], [0, 0, 1, 1], [], []>} : vector<32x32xbf16>, vector<32x8xbf16>, vector<32x8xf32> -> vector<32x8xf32>
    %c0_219 = arith.constant 0 : index
    %c9_220 = arith.constant 9 : index
    %c0_221 = arith.constant 0 : index
    %c0_222 = arith.constant 0 : index
    %304 = vector.load %arg12[%c0_219, %c9_220, %c0_221, %c0_222] : memref<1x12x1x8xf32, #tpu.memory_space<vmem>>, vector<1x1x1x8xf32>
    %305 = vector.shape_cast %304 : vector<1x1x1x8xf32> to vector<1x8xf32>
    %306 = vector.broadcast %305 : vector<1x8xf32> to vector<32x8xf32>
    %307 = arith.addf %303, %306 : vector<32x8xf32>
    %308 = vector.shape_cast %307 : vector<32x8xf32> to vector<2x16x8xf32>
    %309 = arith.truncf %292 : vector<2x8x8xf32> to vector<2x8x8xbf16>
    %310 = arith.truncf %300 : vector<2x16x8xf32> to vector<2x16x8xbf16>
    "tpu.trace_start"() <{level = 10 : i32, message = "bqd,bkd->bqk"}> : () -> ()
    %cst_223 = arith.constant dense<0.000000e+00> : vector<2x8x16xf32>
    %311 = tpu.matmul %309, %310, %cst_223 {dimension_numbers = #tpu.dot_dimension_numbers<[2], [2], [1], [1], [0, 0, 0, 1, 1, 1], [0], [0]>} : vector<2x8x8xbf16>, vector<2x16x8xbf16>, vector<2x8x16xf32> -> vector<2x8x16xf32>
    "tpu.trace_stop"() : () -> ()
    %cst_224 = arith.constant 0.353553385 : f32
    %312 = vector.broadcast %cst_224 : f32 to vector<2x8x16xf32>
    %313 = arith.mulf %311, %312 : vector<2x8x16xf32>
    %cst_225 = arith.constant dense<0xFF800000> : vector<2x8xf32>
    %314 = vector.multi_reduction <maximumf>, %313, %cst_225 [2] : vector<2x8x16xf32> to vector<2x8xf32>
    %315 = vector.shape_cast %314 : vector<2x8xf32> to vector<2x8x1xf32>
    %316 = vector.broadcast %315 : vector<2x8x1xf32> to vector<2x8x16xf32>
    %317 = arith.subf %313, %316 : vector<2x8x16xf32>
    %318 = math.exp %317 : vector<2x8x16xf32>
    %cst_226 = arith.constant dense<0.000000e+00> : vector<2x8xf32>
    %319 = vector.multi_reduction <add>, %318, %cst_226 [2] : vector<2x8x16xf32> to vector<2x8xf32>
    %320 = vector.shape_cast %319 : vector<2x8xf32> to vector<2x8x1xf32>
    %321 = tpu.reciprocal %320 {approx = true} : vector<2x8x1xf32> -> vector<2x8x1xf32>
    %322 = vector.broadcast %321 : vector<2x8x1xf32> to vector<2x8x16xf32>
    %323 = arith.mulf %318, %322 : vector<2x8x16xf32>
    %324 = arith.truncf %323 : vector<2x8x16xf32> to vector<2x8x16xbf16>
    %325 = arith.truncf %308 : vector<2x16x8xf32> to vector<2x16x8xbf16>
    "tpu.trace_start"() <{level = 10 : i32, message = "bqk,bkd->bqd"}> : () -> ()
    %cst_227 = arith.constant dense<0.000000e+00> : vector<2x8x8xf32>
    %326 = tpu.matmul %324, %325, %cst_227 {dimension_numbers = #tpu.dot_dimension_numbers<[2], [1], [1], [2], [0, 0, 0, 1, 1, 2], [0], [0]>} : vector<2x8x16xbf16>, vector<2x16x8xbf16>, vector<2x8x8xf32> -> vector<2x8x8xf32>
    "tpu.trace_stop"() : () -> ()
    %327 = vector.shape_cast %326 : vector<2x8x8xf32> to vector<16x8xf32>
    %328 = arith.truncf %327 : vector<16x8xf32> to vector<16x8xbf16>
    %c0_228 = arith.constant 0 : index
    %c1_229 = arith.constant 1 : index
    %c0_230 = arith.constant 0 : index
    %c0_231 = arith.constant 0 : index
    %329 = vector.load %arg13[%c0_228, %c1_229, %c0_230, %c0_231] : memref<1x4x8x32xbf16, #tpu.memory_space<vmem>>, vector<1x1x8x32xbf16>
    %330 = vector.shape_cast %329 : vector<1x1x8x32xbf16> to vector<8x32xbf16>
    %cst_232 = arith.constant dense<0.000000e+00> : vector<16x32xf32>
    %331 = tpu.matmul %328, %330, %cst_232 {dimension_numbers = #tpu.dot_dimension_numbers<[1], [0], [0], [1], [0, 0, 1, 1], [], []>} : vector<16x8xbf16>, vector<8x32xbf16>, vector<16x32xf32> -> vector<16x32xf32>
    %332 = arith.addf %284, %331 : vector<16x32xf32>
    %c0_233 = arith.constant 0 : index
    %c2_234 = arith.constant 2 : index
    %c0_235 = arith.constant 0 : index
    %c0_236 = arith.constant 0 : index
    %333 = vector.load %arg11[%c0_233, %c2_234, %c0_235, %c0_236] : memref<1x12x32x8xbf16, #tpu.memory_space<vmem>>, vector<1x1x32x8xbf16>
    %334 = vector.shape_cast %333 : vector<1x1x32x8xbf16> to vector<32x8xbf16>
    %cst_237 = arith.constant dense<0.000000e+00> : vector<16x8xf32>
    %335 = tpu.matmul %235, %334, %cst_237 {dimension_numbers = #tpu.dot_dimension_numbers<[1], [0], [0], [1], [0, 0, 1, 1], [], []>} : vector<16x32xbf16>, vector<32x8xbf16>, vector<16x8xf32> -> vector<16x8xf32>
    %c0_238 = arith.constant 0 : index
    %c2_239 = arith.constant 2 : index
    %c0_240 = arith.constant 0 : index
    %c0_241 = arith.constant 0 : index
    %336 = vector.load %arg12[%c0_238, %c2_239, %c0_240, %c0_241] : memref<1x12x1x8xf32, #tpu.memory_space<vmem>>, vector<1x1x1x8xf32>
    %337 = vector.shape_cast %336 : vector<1x1x1x8xf32> to vector<1x8xf32>
    %338 = vector.broadcast %337 : vector<1x8xf32> to vector<16x8xf32>
    %339 = arith.addf %335, %338 : vector<16x8xf32>
    %340 = vector.shape_cast %339 : vector<16x8xf32> to vector<2x8x8xf32>
    %c0_242 = arith.constant 0 : index
    %c6_243 = arith.constant 6 : index
    %c0_244 = arith.constant 0 : index
    %c0_245 = arith.constant 0 : index
    %341 = vector.load %arg11[%c0_242, %c6_243, %c0_244, %c0_245] : memref<1x12x32x8xbf16, #tpu.memory_space<vmem>>, vector<1x1x32x8xbf16>
    %342 = vector.shape_cast %341 : vector<1x1x32x8xbf16> to vector<32x8xbf16>
    %cst_246 = arith.constant dense<0.000000e+00> : vector<32x8xf32>
    %343 = tpu.matmul %4, %342, %cst_246 {dimension_numbers = #tpu.dot_dimension_numbers<[1], [0], [0], [1], [0, 0, 1, 1], [], []>} : vector<32x32xbf16>, vector<32x8xbf16>, vector<32x8xf32> -> vector<32x8xf32>
    %c0_247 = arith.constant 0 : index
    %c6_248 = arith.constant 6 : index
    %c0_249 = arith.constant 0 : index
    %c0_250 = arith.constant 0 : index
    %344 = vector.load %arg12[%c0_247, %c6_248, %c0_249, %c0_250] : memref<1x12x1x8xf32, #tpu.memory_space<vmem>>, vector<1x1x1x8xf32>
    %345 = vector.shape_cast %344 : vector<1x1x1x8xf32> to vector<1x8xf32>
    %346 = vector.broadcast %345 : vector<1x8xf32> to vector<32x8xf32>
    %347 = arith.addf %343, %346 : vector<32x8xf32>
    %348 = vector.shape_cast %347 : vector<32x8xf32> to vector<2x16x8xf32>
    %c0_251 = arith.constant 0 : index
    %c10_252 = arith.constant 10 : index
    %c0_253 = arith.constant 0 : index
    %c0_254 = arith.constant 0 : index
    %349 = vector.load %arg11[%c0_251, %c10_252, %c0_253, %c0_254] : memref<1x12x32x8xbf16, #tpu.memory_space<vmem>>, vector<1x1x32x8xbf16>
    %350 = vector.shape_cast %349 : vector<1x1x32x8xbf16> to vector<32x8xbf16>
    %cst_255 = arith.constant dense<0.000000e+00> : vector<32x8xf32>
    %351 = tpu.matmul %4, %350, %cst_255 {dimension_numbers = #tpu.dot_dimension_numbers<[1], [0], [0], [1], [0, 0, 1, 1], [], []>} : vector<32x32xbf16>, vector<32x8xbf16>, vector<32x8xf32> -> vector<32x8xf32>
    %c0_256 = arith.constant 0 : index
    %c10_257 = arith.constant 10 : index
    %c0_258 = arith.constant 0 : index
    %c0_259 = arith.constant 0 : index
    %352 = vector.load %arg12[%c0_256, %c10_257, %c0_258, %c0_259] : memref<1x12x1x8xf32, #tpu.memory_space<vmem>>, vector<1x1x1x8xf32>
    %353 = vector.shape_cast %352 : vector<1x1x1x8xf32> to vector<1x8xf32>
    %354 = vector.broadcast %353 : vector<1x8xf32> to vector<32x8xf32>
    %355 = arith.addf %351, %354 : vector<32x8xf32>
    %356 = vector.shape_cast %355 : vector<32x8xf32> to vector<2x16x8xf32>
    %357 = arith.truncf %340 : vector<2x8x8xf32> to vector<2x8x8xbf16>
    %358 = arith.truncf %348 : vector<2x16x8xf32> to vector<2x16x8xbf16>
    "tpu.trace_start"() <{level = 10 : i32, message = "bqd,bkd->bqk"}> : () -> ()
    %cst_260 = arith.constant dense<0.000000e+00> : vector<2x8x16xf32>
    %359 = tpu.matmul %357, %358, %cst_260 {dimension_numbers = #tpu.dot_dimension_numbers<[2], [2], [1], [1], [0, 0, 0, 1, 1, 1], [0], [0]>} : vector<2x8x8xbf16>, vector<2x16x8xbf16>, vector<2x8x16xf32> -> vector<2x8x16xf32>
    "tpu.trace_stop"() : () -> ()
    %cst_261 = arith.constant 0.353553385 : f32
    %360 = vector.broadcast %cst_261 : f32 to vector<2x8x16xf32>
    %361 = arith.mulf %359, %360 : vector<2x8x16xf32>
    %cst_262 = arith.constant dense<0xFF800000> : vector<2x8xf32>
    %362 = vector.multi_reduction <maximumf>, %361, %cst_262 [2] : vector<2x8x16xf32> to vector<2x8xf32>
    %363 = vector.shape_cast %362 : vector<2x8xf32> to vector<2x8x1xf32>
    %364 = vector.broadcast %363 : vector<2x8x1xf32> to vector<2x8x16xf32>
    %365 = arith.subf %361, %364 : vector<2x8x16xf32>
    %366 = math.exp %365 : vector<2x8x16xf32>
    %cst_263 = arith.constant dense<0.000000e+00> : vector<2x8xf32>
    %367 = vector.multi_reduction <add>, %366, %cst_263 [2] : vector<2x8x16xf32> to vector<2x8xf32>
    %368 = vector.shape_cast %367 : vector<2x8xf32> to vector<2x8x1xf32>
    %369 = tpu.reciprocal %368 {approx = true} : vector<2x8x1xf32> -> vector<2x8x1xf32>
    %370 = vector.broadcast %369 : vector<2x8x1xf32> to vector<2x8x16xf32>
    %371 = arith.mulf %366, %370 : vector<2x8x16xf32>
    %372 = arith.truncf %371 : vector<2x8x16xf32> to vector<2x8x16xbf16>
    %373 = arith.truncf %356 : vector<2x16x8xf32> to vector<2x16x8xbf16>
    "tpu.trace_start"() <{level = 10 : i32, message = "bqk,bkd->bqd"}> : () -> ()
    %cst_264 = arith.constant dense<0.000000e+00> : vector<2x8x8xf32>
    %374 = tpu.matmul %372, %373, %cst_264 {dimension_numbers = #tpu.dot_dimension_numbers<[2], [1], [1], [2], [0, 0, 0, 1, 1, 2], [0], [0]>} : vector<2x8x16xbf16>, vector<2x16x8xbf16>, vector<2x8x8xf32> -> vector<2x8x8xf32>
    "tpu.trace_stop"() : () -> ()
    %375 = vector.shape_cast %374 : vector<2x8x8xf32> to vector<16x8xf32>
    %376 = arith.truncf %375 : vector<16x8xf32> to vector<16x8xbf16>
    %c0_265 = arith.constant 0 : index
    %c2_266 = arith.constant 2 : index
    %c0_267 = arith.constant 0 : index
    %c0_268 = arith.constant 0 : index
    %377 = vector.load %arg13[%c0_265, %c2_266, %c0_267, %c0_268] : memref<1x4x8x32xbf16, #tpu.memory_space<vmem>>, vector<1x1x8x32xbf16>
    %378 = vector.shape_cast %377 : vector<1x1x8x32xbf16> to vector<8x32xbf16>
    %cst_269 = arith.constant dense<0.000000e+00> : vector<16x32xf32>
    %379 = tpu.matmul %376, %378, %cst_269 {dimension_numbers = #tpu.dot_dimension_numbers<[1], [0], [0], [1], [0, 0, 1, 1], [], []>} : vector<16x8xbf16>, vector<8x32xbf16>, vector<16x32xf32> -> vector<16x32xf32>
    %380 = arith.addf %332, %379 : vector<16x32xf32>
    %c0_270 = arith.constant 0 : index
    %c3_271 = arith.constant 3 : index
    %c0_272 = arith.constant 0 : index
    %c0_273 = arith.constant 0 : index
    %381 = vector.load %arg11[%c0_270, %c3_271, %c0_272, %c0_273] : memref<1x12x32x8xbf16, #tpu.memory_space<vmem>>, vector<1x1x32x8xbf16>
    %382 = vector.shape_cast %381 : vector<1x1x32x8xbf16> to vector<32x8xbf16>
    %cst_274 = arith.constant dense<0.000000e+00> : vector<16x8xf32>
    %383 = tpu.matmul %235, %382, %cst_274 {dimension_numbers = #tpu.dot_dimension_numbers<[1], [0], [0], [1], [0, 0, 1, 1], [], []>} : vector<16x32xbf16>, vector<32x8xbf16>, vector<16x8xf32> -> vector<16x8xf32>
    %c0_275 = arith.constant 0 : index
    %c3_276 = arith.constant 3 : index
    %c0_277 = arith.constant 0 : index
    %c0_278 = arith.constant 0 : index
    %384 = vector.load %arg12[%c0_275, %c3_276, %c0_277, %c0_278] : memref<1x12x1x8xf32, #tpu.memory_space<vmem>>, vector<1x1x1x8xf32>
    %385 = vector.shape_cast %384 : vector<1x1x1x8xf32> to vector<1x8xf32>
    %386 = vector.broadcast %385 : vector<1x8xf32> to vector<16x8xf32>
    %387 = arith.addf %383, %386 : vector<16x8xf32>
    %388 = vector.shape_cast %387 : vector<16x8xf32> to vector<2x8x8xf32>
    %c0_279 = arith.constant 0 : index
    %c7_280 = arith.constant 7 : index
    %c0_281 = arith.constant 0 : index
    %c0_282 = arith.constant 0 : index
    %389 = vector.load %arg11[%c0_279, %c7_280, %c0_281, %c0_282] : memref<1x12x32x8xbf16, #tpu.memory_space<vmem>>, vector<1x1x32x8xbf16>
    %390 = vector.shape_cast %389 : vector<1x1x32x8xbf16> to vector<32x8xbf16>
    %cst_283 = arith.constant dense<0.000000e+00> : vector<32x8xf32>
    %391 = tpu.matmul %4, %390, %cst_283 {dimension_numbers = #tpu.dot_dimension_numbers<[1], [0], [0], [1], [0, 0, 1, 1], [], []>} : vector<32x32xbf16>, vector<32x8xbf16>, vector<32x8xf32> -> vector<32x8xf32>
    %c0_284 = arith.constant 0 : index
    %c7_285 = arith.constant 7 : index
    %c0_286 = arith.constant 0 : index
    %c0_287 = arith.constant 0 : index
    %392 = vector.load %arg12[%c0_284, %c7_285, %c0_286, %c0_287] : memref<1x12x1x8xf32, #tpu.memory_space<vmem>>, vector<1x1x1x8xf32>
    %393 = vector.shape_cast %392 : vector<1x1x1x8xf32> to vector<1x8xf32>
    %394 = vector.broadcast %393 : vector<1x8xf32> to vector<32x8xf32>
    %395 = arith.addf %391, %394 : vector<32x8xf32>
    %396 = vector.shape_cast %395 : vector<32x8xf32> to vector<2x16x8xf32>
    %c0_288 = arith.constant 0 : index
    %c11_289 = arith.constant 11 : index
    %c0_290 = arith.constant 0 : index
    %c0_291 = arith.constant 0 : index
    %397 = vector.load %arg11[%c0_288, %c11_289, %c0_290, %c0_291] : memref<1x12x32x8xbf16, #tpu.memory_space<vmem>>, vector<1x1x32x8xbf16>
    %398 = vector.shape_cast %397 : vector<1x1x32x8xbf16> to vector<32x8xbf16>
    %cst_292 = arith.constant dense<0.000000e+00> : vector<32x8xf32>
    %399 = tpu.matmul %4, %398, %cst_292 {dimension_numbers = #tpu.dot_dimension_numbers<[1], [0], [0], [1], [0, 0, 1, 1], [], []>} : vector<32x32xbf16>, vector<32x8xbf16>, vector<32x8xf32> -> vector<32x8xf32>
    %c0_293 = arith.constant 0 : index
    %c11_294 = arith.constant 11 : index
    %c0_295 = arith.constant 0 : index
    %c0_296 = arith.constant 0 : index
    %400 = vector.load %arg12[%c0_293, %c11_294, %c0_295, %c0_296] : memref<1x12x1x8xf32, #tpu.memory_space<vmem>>, vector<1x1x1x8xf32>
    %401 = vector.shape_cast %400 : vector<1x1x1x8xf32> to vector<1x8xf32>
    %402 = vector.broadcast %401 : vector<1x8xf32> to vector<32x8xf32>
    %403 = arith.addf %399, %402 : vector<32x8xf32>
    %404 = vector.shape_cast %403 : vector<32x8xf32> to vector<2x16x8xf32>
    %405 = arith.truncf %388 : vector<2x8x8xf32> to vector<2x8x8xbf16>
    %406 = arith.truncf %396 : vector<2x16x8xf32> to vector<2x16x8xbf16>
    "tpu.trace_start"() <{level = 10 : i32, message = "bqd,bkd->bqk"}> : () -> ()
    %cst_297 = arith.constant dense<0.000000e+00> : vector<2x8x16xf32>
    %407 = tpu.matmul %405, %406, %cst_297 {dimension_numbers = #tpu.dot_dimension_numbers<[2], [2], [1], [1], [0, 0, 0, 1, 1, 1], [0], [0]>} : vector<2x8x8xbf16>, vector<2x16x8xbf16>, vector<2x8x16xf32> -> vector<2x8x16xf32>
    "tpu.trace_stop"() : () -> ()
    %cst_298 = arith.constant 0.353553385 : f32
    %408 = vector.broadcast %cst_298 : f32 to vector<2x8x16xf32>
    %409 = arith.mulf %407, %408 : vector<2x8x16xf32>
    %cst_299 = arith.constant dense<0xFF800000> : vector<2x8xf32>
    %410 = vector.multi_reduction <maximumf>, %409, %cst_299 [2] : vector<2x8x16xf32> to vector<2x8xf32>
    %411 = vector.shape_cast %410 : vector<2x8xf32> to vector<2x8x1xf32>
    %412 = vector.broadcast %411 : vector<2x8x1xf32> to vector<2x8x16xf32>
    %413 = arith.subf %409, %412 : vector<2x8x16xf32>
    %414 = math.exp %413 : vector<2x8x16xf32>
    %cst_300 = arith.constant dense<0.000000e+00> : vector<2x8xf32>
    %415 = vector.multi_reduction <add>, %414, %cst_300 [2] : vector<2x8x16xf32> to vector<2x8xf32>
    %416 = vector.shape_cast %415 : vector<2x8xf32> to vector<2x8x1xf32>
    %417 = tpu.reciprocal %416 {approx = true} : vector<2x8x1xf32> -> vector<2x8x1xf32>
    %418 = vector.broadcast %417 : vector<2x8x1xf32> to vector<2x8x16xf32>
    %419 = arith.mulf %414, %418 : vector<2x8x16xf32>
    %420 = arith.truncf %419 : vector<2x8x16xf32> to vector<2x8x16xbf16>
    %421 = arith.truncf %404 : vector<2x16x8xf32> to vector<2x16x8xbf16>
    "tpu.trace_start"() <{level = 10 : i32, message = "bqk,bkd->bqd"}> : () -> ()
    %cst_301 = arith.constant dense<0.000000e+00> : vector<2x8x8xf32>
    %422 = tpu.matmul %420, %421, %cst_301 {dimension_numbers = #tpu.dot_dimension_numbers<[2], [1], [1], [2], [0, 0, 0, 1, 1, 2], [0], [0]>} : vector<2x8x16xbf16>, vector<2x16x8xbf16>, vector<2x8x8xf32> -> vector<2x8x8xf32>
    "tpu.trace_stop"() : () -> ()
    %423 = vector.shape_cast %422 : vector<2x8x8xf32> to vector<16x8xf32>
    %424 = arith.truncf %423 : vector<16x8xf32> to vector<16x8xbf16>
    %c0_302 = arith.constant 0 : index
    %c3_303 = arith.constant 3 : index
    %c0_304 = arith.constant 0 : index
    %c0_305 = arith.constant 0 : index
    %425 = vector.load %arg13[%c0_302, %c3_303, %c0_304, %c0_305] : memref<1x4x8x32xbf16, #tpu.memory_space<vmem>>, vector<1x1x8x32xbf16>
    %426 = vector.shape_cast %425 : vector<1x1x8x32xbf16> to vector<8x32xbf16>
    %cst_306 = arith.constant dense<0.000000e+00> : vector<16x32xf32>
    %427 = tpu.matmul %424, %426, %cst_306 {dimension_numbers = #tpu.dot_dimension_numbers<[1], [0], [0], [1], [0, 0, 1, 1], [], []>} : vector<16x8xbf16>, vector<8x32xbf16>, vector<16x32xf32> -> vector<16x32xf32>
    %428 = arith.addf %380, %427 : vector<16x32xf32>
    %c0_307 = arith.constant 0 : index
    %c0_308 = arith.constant 0 : index
    %c0_309 = arith.constant 0 : index
    %429 = vector.load %arg14[%c0_307, %c0_308, %c0_309] : memref<1x1x32xf32, #tpu.memory_space<vmem>>, vector<1x1x32xf32>
    %430 = vector.shape_cast %429 : vector<1x1x32xf32> to vector<1x32xf32>
    %431 = vector.broadcast %430 : vector<1x32xf32> to vector<16x32xf32>
    %432 = arith.addf %428, %431 : vector<16x32xf32>
    %433 = arith.addf %234, %432 : vector<16x32xf32>
    %c0_310 = arith.constant 0 : index
    %c0_311 = arith.constant 0 : index
    %c0_312 = arith.constant 0 : index
    %434 = vector.load %arg21[%c0_310, %c0_311, %c0_312] : memref<1x1x32xf32, #tpu.memory_space<vmem>>, vector<1x1x32xf32>
    %435 = vector.shape_cast %434 : vector<1x1x32xf32> to vector<1x32xf32>
    %c0_313 = arith.constant 0 : index
    %c0_314 = arith.constant 0 : index
    %c0_315 = arith.constant 0 : index
    %436 = vector.load %arg22[%c0_313, %c0_314, %c0_315] : memref<1x1x32xf32, #tpu.memory_space<vmem>>, vector<1x1x32xf32>
    %437 = vector.shape_cast %436 : vector<1x1x32xf32> to vector<1x32xf32>
    %cst_316 = arith.constant dense<0.000000e+00> : vector<16xf32>
    %438 = vector.multi_reduction <add>, %433, %cst_316 [1] : vector<16x32xf32> to vector<16xf32>
    %439 = vector.shape_cast %438 : vector<16xf32> to vector<16x1xf32>
    %cst_317 = arith.constant 3.200000e+01 : f32
    %440 = vector.broadcast %cst_317 : f32 to vector<16x1xf32>
    %441 = arith.divf %439, %440 : vector<16x1xf32>
    %442 = vector.broadcast %441 : vector<16x1xf32> to vector<16x32xf32>
    %443 = arith.subf %433, %442 : vector<16x32xf32>
    %444 = arith.mulf %443, %443 : vector<16x32xf32>
    %cst_318 = arith.constant dense<0.000000e+00> : vector<16xf32>
    %445 = vector.multi_reduction <add>, %444, %cst_318 [1] : vector<16x32xf32> to vector<16xf32>
    %446 = vector.shape_cast %445 : vector<16xf32> to vector<16x1xf32>
    %cst_319 = arith.constant 3.200000e+01 : f32
    %447 = vector.broadcast %cst_319 : f32 to vector<16x1xf32>
    %448 = arith.divf %446, %447 : vector<16x1xf32>
    %449 = vector.broadcast %441 : vector<16x1xf32> to vector<16x32xf32>
    %450 = arith.subf %433, %449 : vector<16x32xf32>
    %cst_320 = arith.constant 9.99999974E-6 : f32
    %451 = vector.broadcast %cst_320 : f32 to vector<16x1xf32>
    %452 = arith.addf %448, %451 : vector<16x1xf32>
    %453 = math.rsqrt %452 : vector<16x1xf32>
    %454 = vector.broadcast %453 : vector<16x1xf32> to vector<16x32xf32>
    %455 = arith.mulf %450, %454 : vector<16x32xf32>
    %456 = vector.broadcast %435 : vector<1x32xf32> to vector<16x32xf32>
    %457 = arith.mulf %455, %456 : vector<16x32xf32>
    %458 = vector.broadcast %437 : vector<1x32xf32> to vector<16x32xf32>
    %459 = arith.addf %457, %458 : vector<16x32xf32>
    %460 = arith.truncf %459 : vector<16x32xf32> to vector<16x32xbf16>
    %c0_321 = arith.constant 0 : index
    %c0_322 = arith.constant 0 : index
    %c0_323 = arith.constant 0 : index
    %461 = vector.load %arg15[%c0_321, %c0_322, %c0_323] : memref<1x32x2048xbf16, #tpu.memory_space<vmem>>, vector<1x32x2048xbf16>
    %462 = vector.shape_cast %461 : vector<1x32x2048xbf16> to vector<32x2048xbf16>
    %cst_324 = arith.constant dense<0.000000e+00> : vector<16x2048xf32>
    %463 = tpu.matmul %460, %462, %cst_324 {dimension_numbers = #tpu.dot_dimension_numbers<[1], [0], [0], [1], [0, 0, 1, 1], [], []>} : vector<16x32xbf16>, vector<32x2048xbf16>, vector<16x2048xf32> -> vector<16x2048xf32>
    %c0_325 = arith.constant 0 : index
    %c0_326 = arith.constant 0 : index
    %c0_327 = arith.constant 0 : index
    %464 = vector.load %arg16[%c0_325, %c0_326, %c0_327] : memref<1x1x2048xf32, #tpu.memory_space<vmem>>, vector<1x1x2048xf32>
    %465 = vector.shape_cast %464 : vector<1x1x2048xf32> to vector<1x2048xf32>
    %466 = vector.broadcast %465 : vector<1x2048xf32> to vector<16x2048xf32>
    %467 = arith.addf %463, %466 : vector<16x2048xf32>
    %cst_328 = arith.constant 0.000000e+00 : f32
    %468 = vector.broadcast %cst_328 : f32 to vector<16x2048xf32>
    %469 = arith.maximumf %467, %468 : vector<16x2048xf32>
    %470 = arith.truncf %469 : vector<16x2048xf32> to vector<16x2048xbf16>
    %c0_329 = arith.constant 0 : index
    %c0_330 = arith.constant 0 : index
    %c0_331 = arith.constant 0 : index
    %471 = vector.load %arg17[%c0_329, %c0_330, %c0_331] : memref<1x2048x32xbf16, #tpu.memory_space<vmem>>, vector<1x2048x32xbf16>
    %472 = vector.shape_cast %471 : vector<1x2048x32xbf16> to vector<2048x32xbf16>
    %cst_332 = arith.constant dense<0.000000e+00> : vector<16x32xf32>
    %473 = tpu.matmul %470, %472, %cst_332 {dimension_numbers = #tpu.dot_dimension_numbers<[1], [0], [0], [1], [0, 0, 1, 1], [], []>} : vector<16x2048xbf16>, vector<2048x32xbf16>, vector<16x32xf32> -> vector<16x32xf32>
    %c0_333 = arith.constant 0 : index
    %c0_334 = arith.constant 0 : index
    %c0_335 = arith.constant 0 : index
    %474 = vector.load %arg18[%c0_333, %c0_334, %c0_335] : memref<1x1x32xf32, #tpu.memory_space<vmem>>, vector<1x1x32xf32>
    %475 = vector.shape_cast %474 : vector<1x1x32xf32> to vector<1x32xf32>
    %476 = vector.broadcast %475 : vector<1x32xf32> to vector<16x32xf32>
    %477 = arith.addf %473, %476 : vector<16x32xf32>
    %478 = arith.addf %459, %477 : vector<16x32xf32>
    %c0_336 = arith.constant 0 : index
    %c0_337 = arith.constant 0 : index
    %c0_338 = arith.constant 0 : index
    %479 = vector.load %arg23[%c0_336, %c0_337, %c0_338] : memref<1x1x32xf32, #tpu.memory_space<vmem>>, vector<1x1x32xf32>
    %480 = vector.shape_cast %479 : vector<1x1x32xf32> to vector<1x32xf32>
    %c0_339 = arith.constant 0 : index
    %c0_340 = arith.constant 0 : index
    %c0_341 = arith.constant 0 : index
    %481 = vector.load %arg24[%c0_339, %c0_340, %c0_341] : memref<1x1x32xf32, #tpu.memory_space<vmem>>, vector<1x1x32xf32>
    %482 = vector.shape_cast %481 : vector<1x1x32xf32> to vector<1x32xf32>
    %cst_342 = arith.constant dense<0.000000e+00> : vector<16xf32>
    %483 = vector.multi_reduction <add>, %478, %cst_342 [1] : vector<16x32xf32> to vector<16xf32>
    %484 = vector.shape_cast %483 : vector<16xf32> to vector<16x1xf32>
    %cst_343 = arith.constant 3.200000e+01 : f32
    %485 = vector.broadcast %cst_343 : f32 to vector<16x1xf32>
    %486 = arith.divf %484, %485 : vector<16x1xf32>
    %487 = vector.broadcast %486 : vector<16x1xf32> to vector<16x32xf32>
    %488 = arith.subf %478, %487 : vector<16x32xf32>
    %489 = arith.mulf %488, %488 : vector<16x32xf32>
    %cst_344 = arith.constant dense<0.000000e+00> : vector<16xf32>
    %490 = vector.multi_reduction <add>, %489, %cst_344 [1] : vector<16x32xf32> to vector<16xf32>
    %491 = vector.shape_cast %490 : vector<16xf32> to vector<16x1xf32>
    %cst_345 = arith.constant 3.200000e+01 : f32
    %492 = vector.broadcast %cst_345 : f32 to vector<16x1xf32>
    %493 = arith.divf %491, %492 : vector<16x1xf32>
    %494 = vector.broadcast %486 : vector<16x1xf32> to vector<16x32xf32>
    %495 = arith.subf %478, %494 : vector<16x32xf32>
    %cst_346 = arith.constant 9.99999974E-6 : f32
    %496 = vector.broadcast %cst_346 : f32 to vector<16x1xf32>
    %497 = arith.addf %493, %496 : vector<16x1xf32>
    %498 = math.rsqrt %497 : vector<16x1xf32>
    %499 = vector.broadcast %498 : vector<16x1xf32> to vector<16x32xf32>
    %500 = arith.mulf %495, %499 : vector<16x32xf32>
    %501 = vector.broadcast %480 : vector<1x32xf32> to vector<16x32xf32>
    %502 = arith.mulf %500, %501 : vector<16x32xf32>
    %503 = vector.broadcast %482 : vector<1x32xf32> to vector<16x32xf32>
    %504 = arith.addf %502, %503 : vector<16x32xf32>
    %c0_347 = arith.constant 0 : index
    %c0_348 = arith.constant 0 : index
    %505 = vector.load %arg28[%c0_347, %c0_348] : memref<16x32xf32, #tpu.memory_space<vmem>>, vector<16x32xf32>
    tpu.vector_store %arg28[%c0_347, %c0_348], %504 {strides = array<i32>} : memref<16x32xf32, #tpu.memory_space<vmem>>, vector<16x32xf32>,
    %c1_i32 = arith.constant 1 : i32
    %506 = arith.cmpi eq, %arg0, %c1_i32 : i32
    %507 = arith.extui %506 : i1 to i32
    %c0_i32_349 = arith.constant 0 : i32
    %508 = arith.cmpi ne, %507, %c0_i32_349 : i32
    scf.if %508 {
      %509 = arith.truncf %504 : vector<16x32xf32> to vector<16x32xbf16>
      %c0_350 = arith.constant 0 : index
      %c0_351 = arith.constant 0 : index
      %510 = vector.load %arg25[%c0_350, %c0_351] : memref<32x128xbf16, #tpu.memory_space<vmem>>, vector<32x128xbf16>
      %cst_352 = arith.constant dense<0.000000e+00> : vector<16x128xf32>
      %511 = tpu.matmul %509, %510, %cst_352 {dimension_numbers = #tpu.dot_dimension_numbers<[1], [0], [0], [1], [0, 0, 1, 1], [], []>} : vector<16x32xbf16>, vector<32x128xbf16>, vector<16x128xf32> -> vector<16x128xf32>
      %c0_353 = arith.constant 0 : index
      %c0_354 = arith.constant 0 : index
      %512 = vector.load %arg26[%c0_353, %c0_354] : memref<1x128xf32, #tpu.memory_space<vmem>>, vector<1x128xf32>
      %513 = vector.broadcast %512 : vector<1x128xf32> to vector<16x128xf32>
      %514 = arith.addf %511, %513 : vector<16x128xf32>
      %c0_355 = arith.constant 0 : index
      %c0_356 = arith.constant 0 : index
      %515 = vector.load %arg27[%c0_355, %c0_356] : memref<16x128xf32, #tpu.memory_space<vmem>>, vector<16x128xf32>
      tpu.vector_store %arg27[%c0_355, %c0_356], %514 {strides = array<i32>} : memref<16x128xf32, #tpu.memory_space<vmem>>, vector<16x128xf32>,
    } else {
    }
    return
  }
  func.func @transform_0(%arg0: i32) -> (i32, i32) {
    %c0_i32 = arith.constant 0 : i32
    %c0_i32_0 = arith.constant 0 : i32
    %c0_i32_1 = arith.constant 0 : i32
    return %c0_i32, %c0_i32_0 : i32, i32
  }
  func.func @transform_1(%arg0: i32) -> (i32, i32) {
    %c0_i32 = arith.constant 0 : i32
    %c0_i32_0 = arith.constant 0 : i32
    %c0_i32_1 = arith.constant 0 : i32
    return %c0_i32, %c0_i32_0 : i32, i32
  }
  func.func @transform_2(%arg0: i32) -> (i32, i32) {
    %c0_i32 = arith.constant 0 : i32
    %c0_i32_0 = arith.constant 0 : i32
    %c0_i32_1 = arith.constant 0 : i32
    return %c0_i32, %c0_i32_0 : i32, i32
  }
  func.func @transform_3(%arg0: i32) -> (i32, i32) {
    %c0_i32 = arith.constant 0 : i32
    %c0_i32_0 = arith.constant 0 : i32
    %c0_i32_1 = arith.constant 0 : i32
    return %c0_i32, %c0_i32_0 : i32, i32
  }
  func.func @transform_4(%arg0: i32) -> (i32, i32) {
    %c0_i32 = arith.constant 0 : i32
    %c0_i32_0 = arith.constant 0 : i32
    %c0_i32_1 = arith.constant 0 : i32
    return %c0_i32, %c0_i32_0 : i32, i32
  }
  func.func @transform_5(%arg0: i32) -> (i32, i32) {
    %c0_i32 = arith.constant 0 : i32
    %c0_i32_0 = arith.constant 0 : i32
    %c0_i32_1 = arith.constant 0 : i32
    return %c0_i32, %c0_i32_0 : i32, i32
  }
  func.func @transform_6(%arg0: i32) -> (i32, i32, i32, i32) {
    %c0_i32 = arith.constant 0 : i32
    %c0_i32_0 = arith.constant 0 : i32
    %c0_i32_1 = arith.constant 0 : i32
    %c0_i32_2 = arith.constant 0 : i32
    return %arg0, %c0_i32, %c0_i32_0, %c0_i32_1 : i32, i32, i32, i32
  }
  func.func @transform_7(%arg0: i32) -> (i32, i32, i32, i32) {
    %c0_i32 = arith.constant 0 : i32
    %c0_i32_0 = arith.constant 0 : i32
    %c0_i32_1 = arith.constant 0 : i32
    %c0_i32_2 = arith.constant 0 : i32
    return %arg0, %c0_i32, %c0_i32_0, %c0_i32_1 : i32, i32, i32, i32
  }
  func.func @transform_8(%arg0: i32) -> (i32, i32, i32, i32) {
    %c0_i32 = arith.constant 0 : i32
    %c0_i32_0 = arith.constant 0 : i32
    %c0_i32_1 = arith.constant 0 : i32
    %c0_i32_2 = arith.constant 0 : i32
    return %arg0, %c0_i32, %c0_i32_0, %c0_i32_1 : i32, i32, i32, i32
  }
  func.func @transform_9(%arg0: i32) -> (i32, i32, i32) {
    %c0_i32 = arith.constant 0 : i32
    %c0_i32_0 = arith.constant 0 : i32
    %c0_i32_1 = arith.constant 0 : i32
    return %arg0, %c0_i32, %c0_i32_0 : i32, i32, i32
  }
  func.func @transform_10(%arg0: i32) -> (i32, i32, i32, i32) {
    %c0_i32 = arith.constant 0 : i32
    %c0_i32_0 = arith.constant 0 : i32
    %c0_i32_1 = arith.constant 0 : i32
    %c0_i32_2 = arith.constant 0 : i32
    return %arg0, %c0_i32, %c0_i32_0, %c0_i32_1 : i32, i32, i32, i32
  }
  func.func @transform_11(%arg0: i32) -> (i32, i32, i32, i32) {
    %c0_i32 = arith.constant 0 : i32
    %c0_i32_0 = arith.constant 0 : i32
    %c0_i32_1 = arith.constant 0 : i32
    %c0_i32_2 = arith.constant 0 : i32
    return %arg0, %c0_i32, %c0_i32_0, %c0_i32_1 : i32, i32, i32, i32
  }
  func.func @transform_12(%arg0: i32) -> (i32, i32, i32, i32) {
    %c0_i32 = arith.constant 0 : i32
    %c0_i32_0 = arith.constant 0 : i32
    %c0_i32_1 = arith.constant 0 : i32
    %c0_i32_2 = arith.constant 0 : i32
    return %arg0, %c0_i32, %c0_i32_0, %c0_i32_1 : i32, i32, i32, i32
  }
  func.func @transform_13(%arg0: i32) -> (i32, i32, i32) {
    %c0_i32 = arith.constant 0 : i32
    %c0_i32_0 = arith.constant 0 : i32
    %c0_i32_1 = arith.constant 0 : i32
    return %arg0, %c0_i32, %c0_i32_0 : i32, i32, i32
  }
  func.func @transform_14(%arg0: i32) -> (i32, i32, i32) {
    %c0_i32 = arith.constant 0 : i32
    %c0_i32_0 = arith.constant 0 : i32
    %c0_i32_1 = arith.constant 0 : i32
    return %arg0, %c0_i32, %c0_i32_0 : i32, i32, i32
  }
  func.func @transform_15(%arg0: i32) -> (i32, i32, i32) {
    %c0_i32 = arith.constant 0 : i32
    %c0_i32_0 = arith.constant 0 : i32
    %c0_i32_1 = arith.constant 0 : i32
    return %arg0, %c0_i32, %c0_i32_0 : i32, i32, i32
  }
  func.func @transform_16(%arg0: i32) -> (i32, i32, i32) {
    %c0_i32 = arith.constant 0 : i32
    %c0_i32_0 = arith.constant 0 : i32
    %c0_i32_1 = arith.constant 0 : i32
    return %arg0, %c0_i32, %c0_i32_0 : i32, i32, i32
  }
  func.func @transform_17(%arg0: i32) -> (i32, i32, i32) {
    %c0_i32 = arith.constant 0 : i32
    %c0_i32_0 = arith.constant 0 : i32
    %c0_i32_1 = arith.constant 0 : i32
    return %arg0, %c0_i32, %c0_i32_0 : i32, i32, i32
  }
  func.func @transform_18(%arg0: i32) -> (i32, i32, i32) {
    %c0_i32 = arith.constant 0 : i32
    %c0_i32_0 = arith.constant 0 : i32
    %c0_i32_1 = arith.constant 0 : i32
    return %arg0, %c0_i32, %c0_i32_0 : i32, i32, i32
  }
  func.func @transform_19(%arg0: i32) -> (i32, i32, i32) {
    %c0_i32 = arith.constant 0 : i32
    %c0_i32_0 = arith.constant 0 : i32
    %c0_i32_1 = arith.constant 0 : i32
    return %arg0, %c0_i32, %c0_i32_0 : i32, i32, i32
  }
  func.func @transform_20(%arg0: i32) -> (i32, i32, i32) {
    %c0_i32 = arith.constant 0 : i32
    %c0_i32_0 = arith.constant 0 : i32
    %c0_i32_1 = arith.constant 0 : i32
    return %arg0, %c0_i32, %c0_i32_0 : i32, i32, i32
  }
  func.func @transform_21(%arg0: i32) -> (i32, i32, i32) {
    %c0_i32 = arith.constant 0 : i32
    %c0_i32_0 = arith.constant 0 : i32
    %c0_i32_1 = arith.constant 0 : i32
    return %arg0, %c0_i32, %c0_i32_0 : i32, i32, i32
  }
  func.func @transform_22(%arg0: i32) -> (i32, i32, i32) {
    %c0_i32 = arith.constant 0 : i32
    %c0_i32_0 = arith.constant 0 : i32
    %c0_i32_1 = arith.constant 0 : i32
    return %arg0, %c0_i32, %c0_i32_0 : i32, i32, i32
  }
  func.func @transform_23(%arg0: i32) -> (i32, i32, i32) {
    %c0_i32 = arith.constant 0 : i32
    %c0_i32_0 = arith.constant 0 : i32
    %c0_i32_1 = arith.constant 0 : i32
    return %arg0, %c0_i32, %c0_i32_0 : i32, i32, i32
  }
  func.func @transform_24(%arg0: i32) -> (i32, i32) {
    %c0_i32 = arith.constant 0 : i32
    %c0_i32_0 = arith.constant 0 : i32
    %c0_i32_1 = arith.constant 0 : i32
    return %c0_i32, %c0_i32_0 : i32, i32
  }
  func.func @transform_25(%arg0: i32) -> (i32, i32) {
    %c0_i32 = arith.constant 0 : i32
    %c0_i32_0 = arith.constant 0 : i32
    %c0_i32_1 = arith.constant 0 : i32
    return %c0_i32, %c0_i32_0 : i32, i32
  }
  func.func @transform_26(%arg0: i32) -> (i32, i32) {
    %c0_i32 = arith.constant 0 : i32
    %c0_i32_0 = arith.constant 0 : i32
    %c0_i32_1 = arith.constant 0 : i32
    return %c0_i32, %c0_i32_0 : i32, i32
  }
}

</mosaic_0001>

<bundles_post_ra>
// kernel: visual_transformer_forward.1
= control target key start
LH: loop header
LB: loop body
LE: loop exit
PB: predicated region body
PF: predicated region fallthrough
CT: control target
= control target key end

     0   :  { %s9145_s27 = smov 0   ;;  %s10137_s0 = inlined_call_operand.vmem [shape: f32[16,32], index: 0, kind: input, shape index: {}]   ;;  %s10138_s1 = inlined_call_operand.vmem [shape: f32[32,48], index: 1, kind: input, shape index: {}]   ;;  %s10139_s2 = inlined_call_operand.vmem [shape: bf16[48,32], index: 2, kind: input, shape index: {}]   ;;  %s10140_s3 = inlined_call_operand.vmem [shape: f32[1,32], index: 3, kind: input, shape index: {}]   ;;  %s10141_s4 = inlined_call_operand.vmem [shape: f32[8,8], index: 4, kind: input, shape index: {}]   ;;  %s10142_s5 = inlined_call_operand.vmem [shape: f32[2,8], index: 5, kind: input, shape index: {}]   ;;  %s10143_s6 = inlined_call_operand.vmem [shape: bf16[2,12,32,8], index: 6, kind: input, shape index: {}]   ;;  %s10144_s7 = inlined_call_operand.vmem [shape: f32[2,12,1,8], index: 7, kind: input, shape index: {}]   ;;  %s10145_s8 = inlined_call_operand.vmem [shape: bf16[2,4,8,32], index: 8, kind: input, shape index: {}]   ;;  %s10146_s9 = inlined_call_operand.vmem [shape: f32[2,1,32], index: 9, kind: input, shape index: {}]   ;;  %s10147_s10 = inlined_call_operand.vmem [shape: bf16[2,12,32,8], index: 10, kind: input, shape index: {}]   ;;  %s10148_s11 = inlined_call_operand.vmem [shape: f32[2,12,1,8], index: 11, kind: input, shape index: {}]   ;;  %s10149_s12 = inlined_call_operand.vmem [shape: bf16[2,4,8,32], index: 12, kind: input, shape index: {}]   ;;  %s10150_s13 = inlined_call_operand.vmem [shape: f32[2,1,32], index: 13, kind: input, shape index: {}]   ;;  %s10151_s14 = inlined_call_operand.vmem [shape: bf16[2,32,2048], index: 14, kind: input, shape index: {}]   ;;  %s10152_s15 = inlined_call_operand.vmem [shape: f32[2,1,2048], index: 15, kind: input, shape index: {}]   ;;  %s10153_s16 = inlined_call_operand.vmem [shape: bf16[2,2048,32], index: 16, kind: input, shape index: {}]   ;;  %s10154_s17 = inlined_call_operand.vmem [shape: f32[2,1,32], index: 17, kind: input, shape index: {}]   ;;  %s10155_s18 = inlined_call_operand.vmem [shape: f32[2,1,32], index: 18, kind: input, shape index: {}]   ;;  %s10156_s19 = inlined_call_operand.vmem [shape: f32[2,1,32], index: 19, kind: input, shape index: {}]   ;;  %s10157_s20 = inlined_call_operand.vmem [shape: f32[2,1,32], index: 20, kind: input, shape index: {}]   ;;  %s10158_s21 = inlined_call_operand.vmem [shape: f32[2,1,32], index: 21, kind: input, shape index: {}]   ;;  %s10159_s22 = inlined_call_operand.vmem [shape: f32[2,1,32], index: 22, kind: input, shape index: {}]   ;;  %s10160_s23 = inlined_call_operand.vmem [shape: f32[2,1,32], index: 23, kind: input, shape index: {}]   ;;  %s10161_s24 = inlined_call_operand.vmem [shape: bf16[32,128], index: 24, kind: input, shape index: {}]   ;;  %s10162_s25 = inlined_call_operand.vmem [shape: f32[1,128], index: 25, kind: input, shape index: {}]   ;;  %s10163_s26 = inlined_call_operand.vmem [shape: f32[16,128], index: 26, kind: output, shape index: {}]  }
   0x1   :  { %10173 = sst [smem:[#allocation9_spill]] %s10137_s0 }
   0x2   :  { %10174 = sst [smem:[#allocation10_spill]] %s10138_s1 }
   0x3   :  { %10175 = sst [smem:[#allocation11_spill]] %s10139_s2 }
   0x4   :  { %10176 = sst [smem:[#allocation12_spill]] %s10140_s3 }
   0x5   :  { %10177 = sst [smem:[#allocation13_spill]] %s10141_s4 }
   0x6   :  { %10178 = sst [smem:[#allocation14_spill]] %s10142_s5 }
   0x7   :  { %10179 = sst [smem:[#allocation15_spill]] %s10143_s6 }
   0x8   :  { %10180 = sst [smem:[#allocation16_spill]] %s10144_s7 }
   0x9   :  { %10181 = sst [smem:[#allocation17_spill]] %s10145_s8 }
   0xa   :  { %10182 = sst [smem:[#allocation18_spill]] %s10146_s9 }
   0xb   :  { %10183 = sst [smem:[#allocation19_spill]] %s10147_s10 }
   0xc   :  { %10184 = sst [smem:[#allocation20_spill]] %s10148_s11 }
   0xd   :  { %10185 = sst [smem:[#allocation21_spill]] %s10149_s12 }
   0xe   :  { %10186 = sst [smem:[#allocation22_spill]] %s10151_s14 }
   0xf   :  { %10187 = sst [smem:[#allocation23_spill]] %s10152_s15 }
  0x10   :  { %10188 = sst [smem:[#allocation24_spill]] %s10153_s16 }
  0x11   :  { %10189 = sst [smem:[#allocation25_spill]] %s10154_s17 }
  0x12   :  { %10190 = sst [smem:[#allocation26_spill]] %s10159_s22 }
  0x13   :  { %10191 = sst [smem:[#allocation27_spill]] %s10160_s23 }
  0x14   :  { %10192 = sst [smem:[#allocation28_spill]] %s10161_s24 }
  0x15   :  { %10193 = sst [smem:[#allocation29_spill]] %s10162_s25 }
  0x16   :  { %10194 = sst [smem:[#allocation30_spill]] %s10163_s26 }
  0x17 LB: > { %10195 = sst [smem:[#allocation5_spill]] %s9002_s27  ;;  %s9151_s3 = sadd.s32 4294967295, %s9002_s27   ;;  %s9002_s27 = sphi %s9145_s27, %s36_s27  }
  0x18   : > { %10196 = sst [smem:[#allocation6_spill]] %s9151_s3  ;;  %p7459_p0 = scmp.ge.s32.totalorder %s9002_s27, 1 }
  0x19   : > { %p856_p1 = scmp.lt.s32.totalorder %s9002_s27, 3 }
  0x1b   : > { %p857_p2 = pnand %p7459_p0, %p856_p1 }
  0x1d   : > { %860 = sbr.rel (%p857_p2) target bundleno = 9815 (0x2657), region = 124 }
  0x24   : > { %p985_p3 = scmp.lt.s32.totalorder %s9151_s3, 1  ;;  %s10197_s9 = sld [smem:[#allocation17_spill]] }
  0x25   : > { %s10199_s10 = sld [smem:[#allocation15_spill]]  ;;  %s10201_s23 = sld [smem:[#allocation16_spill]] }
  0x26   : > { %s9157_s7 = scalar_select %p985_p3, %s9151_s3, 1 }
  0x27   : > { %s10204_s11 = sld [smem:[#allocation20_spill]]  ;;  %s10205_s12 = sld [smem:[#allocation21_spill]] }
  0x28   : > { %s8721_s28 = smul.u32 192, %s9157_s7  ;;  %s7923_s8 = sshll.u32 %s9157_s7, 4 }
  0x29   : > { %s8722_s4 = smul.u32 12, %s9157_s7  ;;  %s7925_s25 = sshll.u32 %s9157_s7, 8 }
  0x2a   : > { %s9165_s30 = scalar_lea.vmem %s10197_s9, %s7923_s8  ;;  %s10203_s9 = sld [smem:[#allocation19_spill]] }
  0x2b   : > { %10198 = sst [smem:[#allocation7_spill]] %s9165_s30  ;;  %s9170_s6 = scalar_lea.vmem %s10199_s10, %s8721_s28 }
  0x2c   : > { %s9179_s22 = scalar_lea.vmem %s10201_s23, %s8722_s4  ;;  %s10206_s14 = sld [smem:[#allocation22_spill]] }
  0x2d   : > { %10202 = sst [smem:[#allocation8_spill]] %s9179_s22  ;;  %s9189_s10 = scalar_lea.vmem %s10204_s11, %s8722_s4 }
  0x2e   : > { %s9194_s26 = scalar_lea.vmem %s10205_s12, %s7923_s8  ;;  %s10207_s15 = sld [smem:[#allocation23_spill]] }
  0x2f   : > { %s7926_s2 = sshll.u32 %s9157_s7, 10  ;;  %s10209_s16 = sld [smem:[#allocation24_spill]] }
  0x30   : > { %s9184_s30 = scalar_lea.vmem %s10203_s9, %s8721_s28  ;;  %s1047_s27 = scalar_lea.vmem %s10158_s21, %s9157_s7 }
  0x31   : > { %s10210_s12 = sld [smem:[#allocation26_spill]]  ;;  %s10211_s23 = sld [smem:[#allocation27_spill]] }
  0x32   : > { %s9204_s28 = scalar_lea.vmem %s10206_s14, %s7925_s25  ;;  %s1044_s14 = scalar_lea.vmem %s10157_s20, %s9157_s7 }
  0x33   : > { %s10212_s22 = sld [smem:[#allocation6_spill]] }
  0x34   : > { %s9209_s4 = scalar_lea.vmem %s10207_s15, %s7923_s8 }
  0x35   : > { %s9219_s24 = scalar_lea.vmem %s10209_s16, %s7926_s2 }
  0x37   : > { %s1050_s2 = scalar_lea.vmem %s10210_s12, %s9157_s7  ;;  %s1053_s3 = scalar_lea.vmem %s10211_s23, %s9157_s7 }
  0x39   : > { %p7471_p4 = scmp.ne.s32.totalorder %s10212_s22, 0 }
  0x3a   : > { %s10213_s0 = sld [smem:[#allocation11_spill]] (!%p7471_p4)  ;;  %s10214_s5 = sld [smem:[#allocation10_spill]] (!%p7471_p4)  ;;  %vm1101_vm0 = vcmask (!%p7471_p4), 392192   ;;  %v9004_v9 = vmov (!%p7471_p4), 1966171168   ;;  %v1175_v11 = vlaneseq (!%p7471_p4)  ;;  %vm1061_vm1 = vcmask (!%p7471_p4), 261120  }
  0x3b   : > { %1058 = sbr.rel (%p7471_p4) target bundleno = 297 (0x129), region = 128  ;;  %v1173_v10 = vunpack.c.l.s4 (!%p7471_p4), %v9004_v9  ;;  %s10215_s15 = sld [smem:[#allocation14_spill]] (!%p7471_p4)  ;;  %vm1198_vm2 = vcmask (!%p7471_p4), 64512  }
  0x3c   : > { %v1176_v13 = vshrl.u32 (!%p7471_p4), %v1175_v11, 7  ;;  %s10216_s16 = sld [smem:[#allocation9_spill]] (!%p7471_p4)  ;;  %s10217_s25 = sld [smem:[#allocation13_spill]] (!%p7471_p4) }
  0x3d   : > { %v1174_v12 = vunpack.c.0.s8 (!%p7471_p4), %v1173_v10  ;;  %s10218_s9 = sld [smem:[#allocation12_spill]] (!%p7471_p4) }
  0x3e   : > { %v1188_v21 = vsub.s32 (!%p7471_p4), 0, %v1176_v13 }
  0x3f   : > { %v1177_v16 = vsub.s32 (!%p7471_p4), %v1174_v12, %v1176_v13 }
  0x40   : > { %v8737_v0 = vld [vmem:[%s10213_s0] sm:$0xff] (!%p7471_p4)   ;;  %v8738_v1 = vld [vmem:[%s10213_s0 + $0x8] sm:$0xff] (!%p7471_p4)   ;;  %v8739_v4 = vld [vmem:[%s10213_s0 + $0x10] sm:$0xff] (!%p7471_p4)  }
  0x41   : > { %8271 = vmatprep.subr.bf16.mxu0 (!%p7471_p4), %v8737_v0  ;;  %v1064_v2 = vld [vmem:[%s10214_s5] sm:$0xff] (!%p7471_p4)  ;;  %v1065_v3 = vld [vmem:[%s10214_s5 + $0x8] sm:$0xff] (!%p7471_p4)  ;;  %v1066_v6 = vld [vmem:[%s10214_s5 + $0x10] sm:$0xff] (!%p7471_p4) }
  0x42   : > { %8272 = vmatpush3.bf16.msra.mxu0 %v8737_v0  ;;  %v1068_v5 = vpack.c.bf16 %v1065_v3, %v1064_v2  ;;  %v1067_v7 = vld [vmem:[%s10214_s5 + $0x18] sm:$0xff]  ;;  %v7478_v14 = vld.sshfl [vmem:[%s10215_s15] sm:$0x11 pattern:$0x75316420]  ;;  %v1060_v18 = vld [vmem:[%s10216_s16 + $0x8] sm:$0xff] }
  0x43   : > { %8273 = vmatprep.subr.bf16.mxu0 %v8738_v1  ;;  %v1069_v8 = vpack.c.bf16 %v1067_v7, %v1066_v6  ;;  %v1171_v15 = vcombine.high %v7478_v14, %v7478_v14  ;;  %v1059_v17 = vld [vmem:[%s10216_s16] sm:$0xff]  ;;  %v1178_v19 = vrot.slane %v7478_v14, %v1177_v16  ;;  %1063 = vst.msk [vmem:[#allocation2 + $0x8] sm:$0xff] %vm1061_vm1, %v1060_v18 }
  0x44   : > { %8277 = vmatprep.mubr.msk.bf16.mxu0 %vm1101_vm0, %v1068_v5  ;;  %1062 = vst.msk [vmem:[#allocation2] sm:$0xff] %vm1061_vm1, %v1059_v17  ;;  %v1161_v24 = vld [vmem:[%s10217_s25] sm:$0xff] }
  0x45   : > { %v1185_v20 = vrot.slane %v1171_v15, %v1177_v16  ;;  %v1189_v22 = vrot.slane %v1178_v19, %v1188_v21  ;;  %v7472_v28 = vld [vmem:[%s10218_s9] ss:$0 sm:$0xff] }
  0x46   : > { %8274 = vmatpush3.bf16.msra.mxu0 %v8738_v1 }
  0x47   : > { %8275 = vmatprep.subr.bf16.mxu0 %v8739_v4  ;;  %v1193_v23 = vrot.slane %v1185_v20, %v1188_v21  ;;  %v1196_v25 = vadd.f32 %v1189_v22, %v1161_v24 }
  0x49   : > { %v1197_v26 = vadd.f32 %v1193_v23, %v1161_v24  ;;  %1199 = vst.msk [vmem:[#allocation4] sm:$0xff] %vm1198_vm2, %v1196_v25 }
  0x4a   : > { %8276 = vmatpush3.bf16.msra.mxu0 %v8739_v4 }
  0x4b   : > { %1200 = vst.msk [vmem:[#allocation4 + $0x8] sm:$0xff] %vm1198_vm2, %v1197_v26 }
  0x4d   : > { %8278 = vmatmul.mubr.msk.bf16.vlgmr.msra.gmra.mrb[0].mxu0 %vm1101_vm0, %v1069_v8 }
 0x120   : > { %v8279_v27 = vpop.f32.mrb[0].mxu0 }
 0x121   : > { %v1142_v29 = vpop.f32.mrb[1].mxu0  ;;  %v1151_v31 = vadd.f32 %v8279_v27, %v7472_v28 }
 0x122   : > { %v8280_v30 = vpop.f32.mrb[2].mxu0  ;;  %v1143_v34 = vadd.f32 %v7472_v28, %v1142_v29 }
 0x123   : > { %v1154_v32 = vadd.f32 %v8280_v30, %v7472_v28  ;;  %v1145_v33 = vpop.f32.mrb[3].mxu0 }
 0x124   : > { %v1146_v35 = vadd.f32 %v7472_v28, %v1145_v33 }
 0x125   : > { %v1158_v36 = vpack.c.bf16 %v1154_v32, %v1151_v31 }
 0x126   : > { %v1157_v37 = vpack.c.bf16 %v1146_v35, %v1143_v34 }
 0x127   : > { %1160 = vst.msk [vmem:[#allocation3 + $0x8] sm:$0xff] %vm1061_vm1, %v1158_v36 }
 0x128   : > { %1159 = vst.msk [vmem:[#allocation3] sm:$0xff] %vm1061_vm1, %v1157_v37 }
 0x129 PF: > { %v8740_v38 = vld [vmem:[%s9170_s6 + $0x40] sm:$0xff]   ;;  %v9005_v39 = vmov 0.0   ;;  %v8741_v40 = vld [vmem:[%s9170_s6 + $0x48] sm:$0xff]   ;;  %vm9006_vm3 = vmmov 0   ;;  %vm1231_vm4 = vcmask 261120   ;;  %s10219_s15 = sld [smem:[#allocation8_spill]]  ;;  %s10223_s25 = scalar_lea.vmem %s10155_s18, %s9157_s7 }
 0x12a   : > { %8289 = vmatprep.subr.bf16.mxu1 %v9005_v39  ;;  %8281 = vmatprep.subr.bf16.mxu0 %v9005_v39  ;;  %v8742_v41 = vld [vmem:[%s9170_s6] sm:$0xff]   ;;  %v1202_v43 = vld [vmem:[#allocation2 + $0x8] sm:$0xff]  ;;  %vm1412_vm5 = vcmask 64512   ;;  %vm1538_vm6 = vcmask 1043456   ;;  %s10220_s1 = sld [smem:[#allocation7_spill]]  ;;  %s10221_s17 = sld [smem:[#allocation18_spill]] }
 0x12b   : > { %8290 = vmatpush3.bf16.msra.mxu1 %v8740_v38  ;;  %8293 = vmatprep.mubr.msk.bf16.mxu1 %vm9006_vm3, %v9005_v39  ;;  %v1201_v42 = vld [vmem:[#allocation2] sm:$0xff]  ;;  %v8743_v44 = vld [vmem:[%s9170_s6 + $0x8] sm:$0xff]   ;;  %s10224_s9 = scalar_lea.vmem %s10156_s19, %s9157_s7  ;;  %vm3455_vm7 = vcmask 130048   ;;  %s10230_s29 = sld [smem:[#allocation6_spill]] }
 0x12c   : > { %8291 = vmatprep.subr.bf16.mxu1 %v9005_v39  ;;  %8285 = vmatprep.mubr.msk.bf16.mxu0 %vm9006_vm3, %v9005_v39  ;;  %v9297_v45 = vpack.c.bf16 %v1202_v43, %v1201_v42  ;;  %v8744_v46 = vld [vmem:[%s9170_s6 + $0x80] sm:$0xff]   ;;  %v8745_v47 = vld [vmem:[%s9170_s6 + $0x88] sm:$0xff]  }
 0x12d   : > { %8282 = vmatpush3.bf16.msra.mxu0 %v8742_v41  ;;  %v9335_v19 = vld [vmem:[#allocation4 + $0x8] sm:$0xff]  ;;  %v9337_v25 = vld [vmem:[#allocation4] sm:$0xff] }
 0x12e   : > { %8283 = vmatprep.subr.bf16.mxu0 %v9005_v39 }
 0x12f   : > { %8292 = vmatpush3.bf16.msra.mxu1 %v8741_v40  ;;  %v7488_v48 = vld [vmem:[%s10219_s15 + $0x4] ss:$0 sm:$0xff]  ;;  %v7479_v53 = vld [vmem:[%s10219_s15] ss:$0 sm:$0xff]  ;;  %v7497_v1 = vld [vmem:[%s10219_s15 + $0x8] ss:$0 sm:$0xff] }
 0x130   : > { %8305 = vmatprep.subr.bf16.mxu1 %v9005_v39  ;;  %s10222_s22 = scalar_lea.vmem %s10221_s17, %s9157_s7 }
 0x131   : > { %8284 = vmatpush3.bf16.msra.mxu0 %v8743_v44  ;;  %p7916_p5 = scmp.ne.s32.totalorder %s10230_s29, 1 }
 0x132   : > { %8294 = vmatmul.mubr.msk.bf16.vlgmr.msra.gmra.mrb[0].mxu1 %vm1231_vm4, %v9297_v45  ;;  %8297 = vmatprep.subr.bf16.mxu0 %v9005_v39  ;;  %vm9009_vm8 = vmmov (!%p7916_p5), 0  }
 0x133   : > { %8307 = vmatprep.mubr.msk.bf16.mxu1 %vm9006_vm3, %v9005_v39 }
 0x134   : > { %8286 = vmatmul.mubr.msk.bf16.vlgmr.msra.gmra.mrb[0].mxu0 %vm1231_vm4, %v9297_v45 }
 0x135   : > { %8298 = vmatpush3.bf16.msra.mxu0 %v8744_v46  ;;  %8301 = vmatprep.mubr.msk.bf16.mxu0 %vm9006_vm3, %v9005_v39 }
 0x136   : > { %8299 = vmatprep.subr.bf16.mxu0 %v9005_v39 }
 0x139   : > { %8300 = vmatpush3.bf16.msra.mxu0 %v8745_v47  ;;  %v8746_v47 = vld [vmem:[%s9170_s6 + $0x50] sm:$0xff]  }
 0x13a   : > { %8311 = vmatprep.subr.bf16.mxu0 %v9005_v39 }
 0x13c   : > { %8302 = vmatmul.mubr.msk.bf16.vlgmr.msra.gmra.mrb[4].mxu0 %vm1231_vm4, %v9297_v45 }
 0x13d   : > { %8313 = vmatprep.mubr.msk.bf16.mxu0 %vm9006_vm3, %v9005_v39 }
 0x205   : > { %v1335_v49 = vpop.f32.mrb[0].mxu1 }
 0x206   : > { %v1336_v50 = vadd.f32 %v7488_v48, %v1335_v49  ;;  %v8295_v51 = vpop.f32.mrb[1].mxu1 }
 0x207   : > { %v1338_v52 = vpop.f32.mrb[2].mxu1  ;;  %v1269_v54 = vpop.f32.mrb[0].mxu0  ;;  %v8747_v51 = vld [vmem:[%s9170_s6 + $0x58] sm:$0xff]  }
 0x208   : > { %v1410_v55 = vpack.c.bf16 %v1336_v50, %v1336_v50  ;;  %v1339_v56 = vadd.f32 %v7488_v48, %v1338_v52  ;;  %v8296_v57 = vpop.f32.mrb[3].mxu1  ;;  %v8287_v58 = vpop.f32.mrb[1].mxu0  ;;  %v1270_v62 = vadd.f32 %v7479_v53, %v1269_v54  ;;  %v8748_v52 = vld [vmem:[%s9170_s6 + $0x10] sm:$0xff]   ;;  %v8749_v54 = vld [vmem:[%s9170_s6 + $0x18] sm:$0xff]  }
 0x209   : > { %v1272_v59 = vpop.f32.mrb[2].mxu0 }
 0x20a   : > { %v1417_v60 = vsel %vm1412_vm5, %v1410_v55, 0  ;;  %v1411_v61 = vpack.c.bf16 %v1339_v56, %v1339_v56  ;;  %v8288_v63 = vpop.f32.mrb[3].mxu0  ;;  %v1408_v2 = vpack.c.bf16 %v1270_v62, %v1270_v62  ;;  %v1273_v3 = vadd.f32 %v7479_v53, %v1272_v59  ;;  %v8750_v55 = vld [vmem:[%s9170_s6 + $0x90] sm:$0xff]   ;;  %v8751_v56 = vld [vmem:[%s9170_s6 + $0x98] sm:$0xff]  }
 0x20b   : > { %8306 = vmatpush3.bf16.xpose.msra.mxu1 %v1417_v60 }
 0x20c   : > { %v1463_v0 = vsel %vm1412_vm5, %v1411_v61, 0  ;;  %8317 = vmatprep.subr.bf16.mxu1 %v9005_v39  ;;  %v1409_v8 = vpack.c.bf16 %v1273_v3, %v1273_v3 }
 0x20d   : > { %8312 = vmatpush3.bf16.xpose.msra.mxu0 %v1463_v0 }
 0x20e   : > { %8323 = vmatprep.subr.bf16.mxu0 %v9005_v39 }
 0x20f   : > { %v1401_v4 = vpop.f32.mrb[4].mxu0 }
 0x210   : > { %v1402_v5 = vadd.f32 %v7497_v1, %v1401_v4  ;;  %v8303_v6 = vpop.f32.mrb[5].mxu0 }
 0x211   : > { %v1404_v7 = vpop.f32.mrb[6].mxu0 }
 0x212   : > { %8308 = vmatmul.mubr.msk.bf16.vlgmr.msra.gmra.mrb[4].mxu1 %vm1412_vm5, %v1408_v2  ;;  %v1533_v9 = vpack.c.bf16 %v1402_v5, %v1402_v5  ;;  %v1405_v10 = vadd.f32 %v7497_v1, %v1404_v7  ;;  %v8304_v11 = vpop.f32.mrb[7].mxu0  ;;  %v7519_v1 = vld [vmem:[%s10219_s15 + $0x5] ss:$0 sm:$0xff]  ;;  %v7510_v7 = vld [vmem:[%s10219_s15 + $0x1] ss:$0 sm:$0xff] }
 0x213   : > { %8319 = vmatprep.mubr.msk.bf16.mxu1 %vm9006_vm3, %v9005_v39 }
 0x214   : > { %8314 = vmatmul.mubr.msk.bf16.vlgmr.msra.gmra.mrb[8].mxu0 %vm1412_vm5, %v1409_v8  ;;  %v1540_v12 = vsel %vm1538_vm6, %v1533_v9, 0  ;;  %v1534_v13 = vpack.c.bf16 %v1405_v10, %v1405_v10 }
 0x215   : > { %8318 = vmatpush3.bf16.msra.mxu1 %v1540_v12  ;;  %8325 = vmatprep.mubr.msk.bf16.mxu0 %vm9006_vm3, %v9005_v39 }
 0x216   : > { %v1586_v14 = vsel %vm1538_vm6, %v1534_v13, 0  ;;  %8329 = vmatprep.subr.bf16.mxu1 %v9005_v39 }
 0x217   : > { %8324 = vmatpush3.bf16.msra.mxu0 %v1586_v14 }
 0x218   : > { %8337 = vmatprep.subr.bf16.mxu0 %v9005_v39 }
 0x2e5   : > { %v1453_v15 = vpop.f32.mrb[4].mxu1 }
 0x2e6   : > { %v8309_v16 = vpop.f32.mrb[5].mxu1  ;;  %v1505_v20 = vmul.f32 0.35355338, %v1453_v15 }
 0x2e7   : > { %v1456_v17 = vpop.f32.mrb[6].mxu1  ;;  %v1499_v18 = vpop.f32.mrb[8].mxu0 }
 0x2e8   : > { %v1506_v21 = vmul.f32 0.35355338, %v1499_v18  ;;  %v8310_v22 = vpop.f32.mrb[7].mxu1  ;;  %v8315_v23 = vpop.f32.mrb[9].mxu0  ;;  %v1507_v29 = vadd.f32 %v1505_v20, %v9337_v25 }
 0x2e9   : > { %v1502_v24 = vpop.f32.mrb[10].mxu0  ;;  %v7528_v23 = vld [vmem:[%s10219_s15 + $0x9] ss:$0 sm:$0xff] }
 0x2ea   : > { %v8316_v26 = vpop.f32.mrb[11].mxu0  ;;  %v1508_v27 = vadd.f32 %v1506_v21, %v9335_v19  ;;  %v1509_v30 = vsel %vm1412_vm5, %v1507_v29, -inf }
 0x2ec   : > { %v1512_v28 = vsel %vm1412_vm5, %v1508_v27, -inf }
 0x2ed   : > { %1513 = vmax.xlane.f32.xlu0 %v1512_v28 }
 0x2f1   : > { %1510 = vmax.xlane.f32.xlu0 %v1509_v30 }
 0x37a   : > { %v1514_v31 = vpop.xlane.xlu0 %1513 }
 0x37b   : > { %v1516_v32 = vsub.f32 %v1508_v27, %v1514_v31 }
 0x37d   : > { %v1519_v33 = vmul.f32 1.442695, %v1516_v32 }
 0x37e   : > { %v1511_v34 = vpop.xlane.xlu0 %1510 }
 0x37f   : > { %8916 = vpow2.f32 %v1519_v33  ;;  %v1515_v35 = vsub.f32 %v1507_v29, %v1511_v34 }
 0x381   : > { %v1517_v36 = vmul.f32 1.442695, %v1515_v35 }
 0x383   : > { %8918 = vpow2.f32 %v1517_v36 }
 0x389   : > { %v8917_v37 = vpop.eup %8916 }
 0x38a   : > { %v1524_v38 = vsel %vm1412_vm5, %v8917_v37, 0.0 }
 0x38b   : > { %1525 = vadd.xlane.f32.xlu1 %v1524_v38 }
 0x38d   : > { %v8919_v40 = vpop.eup %8918 }
 0x38e   : > { %v1521_v41 = vsel %vm1412_vm5, %v8919_v40, 0.0 }
 0x38f   : > { %1522 = vadd.xlane.f32.xlu1 %v1521_v41 }
 0x418   : > { %v1526_v42 = vpop.xlane.xlu1 %1525 }
 0x419   : > { %8920 = vrcp.f32 %v1526_v42 }
 0x41c   : > { %v1523_v43 = vpop.xlane.xlu1 %1522 }
 0x41d   : > { %8922 = vrcp.f32 %v1523_v43 }
 0x423   : > { %v8921_v44 = vpop.eup %8920 }
 0x424   : > { %v1530_v46 = vmul.f32 %v8921_v44, %v8917_v37 }
 0x426   : > { %v1532_v48 = vpack.c.bf16 %v1530_v46, %v1530_v46 }
 0x427   : > { %v8923_v49 = vpop.eup %8922 }
 0x428   : > { %v1529_v50 = vmul.f32 %v8923_v49, %v8919_v40  ;;  %8326 = vmatmul.mubr.msk.bf16.vlgmr.msra.gmra.mrb[12].mxu0 %vm1412_vm5, %v1532_v48 }
 0x429   : > { %8338 = vmatpush3.bf16.msra.mxu0 %v8746_v47  ;;  %8341 = vmatprep.mubr.msk.bf16.mxu0 %vm9006_vm3, %v9005_v39 }
 0x42a   : > { %v1531_v53 = vpack.c.bf16 %v1529_v50, %v1529_v50  ;;  %8339 = vmatprep.subr.bf16.mxu0 %v9005_v39 }
 0x42c   : > { %8320 = vmatmul.mubr.msk.bf16.vlgmr.msra.gmra.mrb[8].mxu1 %vm1412_vm5, %v1531_v53 }
 0x42d   : > { %8340 = vmatpush3.bf16.msra.mxu0 %v8747_v51  ;;  %8330 = vmatpush3.bf16.msra.mxu1 %v8748_v52 }
 0x42e   : > { %8331 = vmatprep.subr.bf16.mxu1 %v9005_v39  ;;  %8333 = vmatprep.mubr.msk.bf16.mxu1 %vm9006_vm3, %v9005_v39 }
 0x42f   : > { %8353 = vmatprep.subr.bf16.mxu0 %v9005_v39 }
 0x430   : > { %8342 = vmatmul.mubr.msk.bf16.vlgmr.msra.gmra.mrb[16].mxu0 %vm1231_vm4, %v9297_v45 }
 0x431   : > { %8332 = vmatpush3.bf16.msra.mxu1 %v8749_v54  ;;  %8355 = vmatprep.mubr.msk.bf16.mxu0 %vm9006_vm3, %v9005_v39 }
 0x432   : > { %8345 = vmatprep.subr.bf16.mxu1 %v9005_v39 }
 0x434   : > { %8334 = vmatmul.mubr.msk.bf16.vlgmr.msra.gmra.mrb[12].mxu1 %vm1231_vm4, %v9297_v45 }
 0x435   : > { %8349 = vmatprep.mubr.msk.bf16.mxu1 %vm9006_vm3, %v9005_v39  ;;  %8346 = vmatpush3.bf16.msra.mxu1 %v8750_v55 }
 0x436   : > { %8347 = vmatprep.subr.bf16.mxu1 %v9005_v39 }
 0x439   : > { %8348 = vmatpush3.bf16.msra.mxu1 %v8751_v56 }
 0x43a   : > { %8359 = vmatprep.subr.bf16.mxu1 %v9005_v39 }
 0x43c   : > { %8350 = vmatmul.mubr.msk.bf16.vlgmr.msra.gmra.mrb[16].mxu1 %vm1231_vm4, %v9297_v45 }
 0x43d   : > { %8361 = vmatprep.mubr.msk.bf16.mxu1 %vm9006_vm3, %v9005_v39 }
 0x4fb   : > { %v9375_v57 = vpop.f32.mrb[12].mxu0 }
 0x4fc   : > { %v8327_v58 = vpop.f32.mrb[13].mxu0 }
 0x4fd   : > { %v1625_v59 = vpop.f32.mrb[14].mxu0 }
 0x4fe   : > { %v8328_v60 = vpop.f32.mrb[15].mxu0 }
 0x4ff   : > { %v9377_v61 = vpop.f32.mrb[8].mxu1 }
 0x500   : > { %v1628_v62 = vpack.c.bf16 %v9375_v57, %v9377_v61  ;;  %v8321_v63 = vpop.f32.mrb[9].mxu1 }
 0x501   : > { %v1579_v0 = vpop.f32.mrb[10].mxu1 }
 0x502   : > { %v8322_v2 = vpop.f32.mrb[11].mxu1 }
 0x503   : > { %v1755_v3 = vpop.f32.mrb[16].mxu0 }
 0x504   : > { %v1756_v4 = vadd.f32 %v7519_v1, %v1755_v3  ;;  %v8343_v5 = vpop.f32.mrb[17].mxu0  ;;  %v7536_v3 = vld [vmem:[%s10220_s1 + $0x4] sm:$0xf] }
 0x505   : > { %v1758_v6 = vpop.f32.mrb[18].mxu0 }
 0x506   : > { %v1830_v8 = vpack.c.bf16 %v1756_v4, %v1756_v4  ;;  %v1759_v9 = vadd.f32 %v7519_v1, %v1758_v6  ;;  %v8344_v10 = vpop.f32.mrb[19].mxu0  ;;  %v1629_v6 = vld [vmem:[%s10220_s1] sm:$0xf] }
 0x507   : > { %v1689_v11 = vpop.f32.mrb[12].mxu1 }
 0x508   : > { %v1836_v12 = vsel %vm1412_vm5, %v1830_v8, 0  ;;  %v1831_v13 = vpack.c.bf16 %v1759_v9, %v1759_v9  ;;  %v1690_v14 = vadd.f32 %v7510_v7, %v1689_v11  ;;  %v8335_v15 = vpop.f32.mrb[13].mxu1  ;;  %v2053_v9 = vsel %vm1538_vm6, %v7536_v3, 0 }
 0x509   : > { %8354 = vmatpush3.bf16.xpose.msra.mxu0 %v1836_v12  ;;  %v1692_v16 = vpop.f32.mrb[14].mxu1  ;;  %v2100_v11 = vsel %vm1538_vm6, %v1629_v6, 0  ;;  %v8752_v12 = vld [vmem:[%s9170_s6 + $0x60] sm:$0xff]  }
 0x50a   : > { %v1882_v17 = vsel %vm1412_vm5, %v1831_v13, 0  ;;  %v8336_v18 = vpop.f32.mrb[15].mxu1  ;;  %8365 = vmatprep.subr.bf16.mxu0 %v9005_v39  ;;  %v1828_v20 = vpack.c.bf16 %v1690_v14, %v1690_v14  ;;  %v1693_v21 = vadd.f32 %v7510_v7, %v1692_v16  ;;  %v8753_v13 = vld [vmem:[%s9170_s6 + $0x68] sm:$0xff]   ;;  %v8754_v15 = vld [vmem:[%s9170_s6 + $0x20] sm:$0xff]  }
 0x50b   : > { %8360 = vmatpush3.bf16.xpose.msra.mxu1 %v1882_v17 }
 0x50c   : > { %8371 = vmatprep.subr.bf16.mxu1 %v9005_v39  ;;  %v1829_v22 = vpack.c.bf16 %v1693_v21, %v1693_v21 }
 0x50f   : > { %v1821_v24 = vpop.f32.mrb[16].mxu1 }
 0x510   : > { %8356 = vmatmul.mubr.msk.bf16.vlgmr.msra.gmra.mrb[20].mxu0 %vm1412_vm5, %v1828_v20  ;;  %v1822_v26 = vadd.f32 %v7528_v23, %v1821_v24  ;;  %v8351_v27 = vpop.f32.mrb[17].mxu1  ;;  %v8756_v24 = vld [vmem:[%s9170_s6 + $0xa0] sm:$0xff]  }
 0x511   : > { %8367 = vmatprep.mubr.msk.bf16.mxu0 %vm9006_vm3, %v9005_v39  ;;  %v1824_v28 = vpop.f32.mrb[18].mxu1 }
 0x512   : > { %8362 = vmatmul.mubr.msk.bf16.vlgmr.msra.gmra.mrb[20].mxu1 %vm1412_vm5, %v1829_v22  ;;  %v1952_v29 = vpack.c.bf16 %v1822_v26, %v1822_v26  ;;  %v1825_v30 = vadd.f32 %v7528_v23, %v1824_v28  ;;  %v8352_v31 = vpop.f32.mrb[19].mxu1  ;;  %v8755_v22 = vld [vmem:[%s9170_s6 + $0x28] sm:$0xff]  }
 0x513   : > { %8373 = vmatprep.mubr.msk.bf16.mxu1 %vm9006_vm3, %v9005_v39 }
 0x514   : > { %v1958_v32 = vsel %vm1538_vm6, %v1952_v29, 0  ;;  %v1953_v33 = vpack.c.bf16 %v1825_v30, %v1825_v30  ;;  %v8757_v29 = vld [vmem:[%s9170_s6 + $0xa8] sm:$0xff]   ;;  %v7553_v30 = vld [vmem:[%s10219_s15 + $0x6] ss:$0 sm:$0xff] }
 0x515   : > { %8366 = vmatpush3.bf16.msra.mxu0 %v1958_v32 }
 0x516   : > { %v2004_v34 = vsel %vm1538_vm6, %v1953_v33, 0  ;;  %8377 = vmatprep.subr.bf16.mxu0 %v9005_v39 }
 0x517   : > { %8372 = vmatpush3.bf16.msra.mxu1 %v2004_v34 }
 0x518   : > { %8383 = vmatprep.subr.bf16.mxu1 %v9005_v39 }
 0x5e3   : > { %v1872_v35 = vpop.f32.mrb[20].mxu0 }
 0x5e4   : > { %v1924_v36 = vmul.f32 0.35355338, %v1872_v35  ;;  %v8357_v37 = vpop.f32.mrb[21].mxu0 }
 0x5e5   : > { %v1875_v38 = vpop.f32.mrb[22].mxu0  ;;  %v1918_v40 = vpop.f32.mrb[20].mxu1 }
 0x5e6   : > { %v1925_v41 = vmul.f32 0.35355338, %v1918_v40  ;;  %v8358_v42 = vpop.f32.mrb[23].mxu0  ;;  %v8363_v43 = vpop.f32.mrb[21].mxu1  ;;  %v1926_v44 = vadd.f32 %v1924_v36, %v9337_v25 }
 0x5e7   : > { %v1921_v46 = vpop.f32.mrb[22].mxu1 }
 0x5e8   : > { %v8364_v47 = vpop.f32.mrb[23].mxu1  ;;  %v1928_v48 = vsel %vm1412_vm5, %v1926_v44, -inf  ;;  %v1927_v49 = vadd.f32 %v1925_v41, %v9335_v19 }
 0x5e9   : > { %1929 = vmax.xlane.f32.xlu0 %v1928_v48 }
 0x5ea   : > { %v1931_v50 = vsel %vm1412_vm5, %v1927_v49, -inf }
 0x5eb   : > { %1932 = vmax.xlane.f32.xlu1 %v1931_v50 }
 0x676   : > { %v1930_v51 = vpop.xlane.xlu0 %1929 }
 0x677   : > { %v1934_v52 = vsub.f32 %v1926_v44, %v1930_v51 }
 0x678   : > { %v1933_v53 = vpop.xlane.xlu1 %1932 }
 0x679   : > { %v1936_v54 = vmul.f32 1.442695, %v1934_v52  ;;  %v1935_v55 = vsub.f32 %v1927_v49, %v1933_v53  ;;  %v7544_v49 = vld [vmem:[%s10219_s15 + $0x2] ss:$0 sm:$0xff] }
 0x67b   : > { %8924 = vpow2.f32 %v1936_v54  ;;  %v1938_v56 = vmul.f32 1.442695, %v1935_v55 }
 0x67d   : > { %8926 = vpow2.f32 %v1938_v56 }
 0x685   : > { %v8925_v58 = vpop.eup %8924 }
 0x686   : > { %v1940_v59 = vsel %vm1412_vm5, %v8925_v58, 0.0 }
 0x687   : > { %v8927_v60 = vpop.eup %8926  ;;  %1941 = vadd.xlane.f32.xlu0 %v1940_v59  ;;  %v7562_v59 = vld [vmem:[%s10219_s15 + $0xa] ss:$0 sm:$0xff] }
 0x688   : > { %v1943_v63 = vsel %vm1412_vm5, %v8927_v60, 0.0 }
 0x689   : > { %1944 = vadd.xlane.f32.xlu1 %v1943_v63 }
 0x714   : > { %v1942_v0 = vpop.xlane.xlu0 %1941 }
 0x715   : > { %8928 = vrcp.f32 %v1942_v0 }
 0x716   : > { %v1945_v1 = vpop.xlane.xlu1 %1944 }
 0x717   : > { %8930 = vrcp.f32 %v1945_v1 }
 0x71f   : > { %v8929_v2 = vpop.eup %8928 }
 0x720   : > { %v1948_v4 = vmul.f32 %v8929_v2, %v8925_v58 }
 0x721   : > { %v8931_v5 = vpop.eup %8930 }
 0x722   : > { %v1949_v7 = vmul.f32 %v8931_v5, %v8927_v60  ;;  %v1950_v8 = vpack.c.bf16 %v1948_v4, %v1948_v4 }
 0x724   : > { %8368 = vmatmul.mubr.msk.bf16.vlgmr.msra.gmra.mrb[24].mxu0 %vm1412_vm5, %v1950_v8  ;;  %v1951_v10 = vpack.c.bf16 %v1949_v7, %v1949_v7 }
 0x725   : > { %8378 = vmatpush3.bf16.msra.mxu0 %v2053_v9  ;;  %8379 = vmatprep.mubr.msk.bf16.mxu0 %vm9006_vm3, %v9005_v39 }
 0x726   : > { %8374 = vmatmul.mubr.msk.bf16.vlgmr.msra.gmra.mrb[24].mxu1 %vm1412_vm5, %v1951_v10  ;;  %8389 = vmatprep.subr.bf16.mxu0 %v9005_v39 }
 0x727   : > { %8384 = vmatpush3.bf16.msra.mxu1 %v2100_v11  ;;  %8385 = vmatprep.mubr.msk.bf16.mxu1 %vm9006_vm3, %v9005_v39 }
 0x728   : > { %8397 = vmatprep.subr.bf16.mxu1 %v9005_v39 }
 0x72e   : > { %8386 = vmatmul.mubr.msk.bf16.vlgmr.msra.gmra.mrb[28].mxu1 %vm1412_vm5, %v1628_v62 }
 0x72f   : > { %8398 = vmatpush3.bf16.msra.mxu1 %v8752_v12  ;;  %8401 = vmatprep.mubr.msk.bf16.mxu1 %vm9006_vm3, %v9005_v39 }
 0x730   : > { %8399 = vmatprep.subr.bf16.mxu1 %v9005_v39 }
 0x733   : > { %8400 = vmatpush3.bf16.msra.mxu1 %v8753_v13 }
 0x734   : > { %8413 = vmatprep.subr.bf16.mxu1 %v9005_v39 }
 0x736   : > { %8402 = vmatmul.mubr.msk.bf16.vlgmr.msra.gmra.mrb[32].mxu1 %vm1231_vm4, %v9297_v45 }
 0x737   : > { %8415 = vmatprep.mubr.msk.bf16.mxu1 %vm9006_vm3, %v9005_v39 }
 0x7f7   : > { %v1994_v57 = vpop.f32.mrb[24].mxu0 }
 0x7f8   : > { %v8369_v61 = vpop.f32.mrb[25].mxu0 }
 0x7f9   : > { %v1997_v62 = vpop.f32.mrb[26].mxu0  ;;  %v2040_v14 = vpop.f32.mrb[24].mxu1 }
 0x7fa   : > { %v2046_v16 = vpack.c.bf16 %v2040_v14, %v1994_v57  ;;  %v8370_v17 = vpop.f32.mrb[27].mxu0  ;;  %v8375_v18 = vpop.f32.mrb[25].mxu1 }
 0x7fb   : > { %v2043_v20 = vpop.f32.mrb[26].mxu1 }
 0x7fc   : > { %v8376_v21 = vpop.f32.mrb[27].mxu1  ;;  %8380 = vmatmul.mubr.msk.bf16.vlgmr.msra.gmra.mrb[28].mxu0 %vm1412_vm5, %v2046_v16 }
 0x7fd   : > { %8390 = vmatpush3.bf16.msra.mxu0 %v8754_v15  ;;  %8393 = vmatprep.mubr.msk.bf16.mxu0 %vm9006_vm3, %v9005_v39 }
 0x7fe   : > { %8391 = vmatprep.subr.bf16.mxu0 %v9005_v39 }
 0x801   : > { %v2136_v23 = vpop.f32.mrb[28].mxu1  ;;  %8392 = vmatpush3.bf16.msra.mxu0 %v8755_v22 }
 0x802   : > { %v8387_v26 = vpop.f32.mrb[29].mxu1  ;;  %8405 = vmatprep.subr.bf16.mxu0 %v9005_v39 }
 0x803   : > { %v2139_v27 = vpop.f32.mrb[30].mxu1 }
 0x804   : > { %v8388_v28 = vpop.f32.mrb[31].mxu1  ;;  %8394 = vmatmul.mubr.msk.bf16.vlgmr.msra.gmra.mrb[32].mxu0 %vm1231_vm4, %v9297_v45 }
 0x805   : > { %8406 = vmatpush3.bf16.msra.mxu0 %v8756_v24  ;;  %8409 = vmatprep.mubr.msk.bf16.mxu0 %vm9006_vm3, %v9005_v39 }
 0x806   : > { %8407 = vmatprep.subr.bf16.mxu0 %v9005_v39 }
 0x809   : > { %v2268_v31 = vpop.f32.mrb[32].mxu1  ;;  %8408 = vmatpush3.bf16.msra.mxu0 %v8757_v29 }
 0x80a   : > { %v2269_v32 = vadd.f32 %v7553_v30, %v2268_v31  ;;  %v8403_v33 = vpop.f32.mrb[33].mxu1  ;;  %8419 = vmatprep.subr.bf16.mxu0 %v9005_v39 }
 0x80b   : > { %v2271_v34 = vpop.f32.mrb[34].mxu1 }
 0x80c   : > { %v2343_v35 = vpack.c.bf16 %v2269_v32, %v2269_v32  ;;  %v2272_v36 = vadd.f32 %v7553_v30, %v2271_v34  ;;  %v8404_v37 = vpop.f32.mrb[35].mxu1  ;;  %8410 = vmatmul.mubr.msk.bf16.vlgmr.msra.gmra.mrb[36].mxu0 %vm1231_vm4, %v9297_v45  ;;  %v7570_v34 = vld [vmem:[%s10220_s1 + $0x8] sm:$0xf] }
 0x80d   : > { %8421 = vmatprep.mubr.msk.bf16.mxu0 %vm9006_vm3, %v9005_v39 }
 0x80e   : > { %v2349_v38 = vsel %vm1412_vm5, %v2343_v35, 0  ;;  %v2344_v40 = vpack.c.bf16 %v2272_v36, %v2272_v36 }
 0x80f   : > { %8414 = vmatpush3.bf16.xpose.msra.mxu1 %v2349_v38 }
 0x810   : > { %v2395_v41 = vsel %vm1412_vm5, %v2344_v40, 0  ;;  %8425 = vmatprep.subr.bf16.mxu1 %v9005_v39  ;;  %v2566_v40 = vsel %vm1538_vm6, %v7570_v34, 0 }
 0x812   : > { %8420 = vmatpush3.bf16.xpose.msra.mxu0 %v2395_v41 }
 0x813   : > { %8431 = vmatprep.subr.bf16.mxu0 %v9005_v39 }
 0x8cf   : > { %v2089_v42 = vpop.f32.mrb[28].mxu0 }
 0x8d0   : > { %v9454_v43 = vadd.f32 %v2136_v23, %v2089_v42  ;;  %v8381_v44 = vpop.f32.mrb[29].mxu0  ;;  %v8760_v42 = vld [vmem:[%s9170_s6 + $0x30] sm:$0xff]  }
 0x8d1   : > { %v2092_v46 = vpop.f32.mrb[30].mxu0  ;;  %v8761_v44 = vld [vmem:[%s9170_s6 + $0x38] sm:$0xff]  }
 0x8d2   : > { %v9456_v47 = vadd.f32 %v2139_v27, %v2092_v46  ;;  %v8382_v48 = vpop.f32.mrb[31].mxu0 }
 0x8d7   : > { %v2202_v50 = vpop.f32.mrb[32].mxu0 }
 0x8d8   : > { %v2203_v51 = vadd.f32 %v7544_v49, %v2202_v50  ;;  %v8395_v52 = vpop.f32.mrb[33].mxu0 }
 0x8d9   : > { %v2205_v53 = vpop.f32.mrb[34].mxu0 }
 0x8da   : > { %v2341_v54 = vpack.c.bf16 %v2203_v51, %v2203_v51  ;;  %v2206_v55 = vadd.f32 %v7544_v49, %v2205_v53  ;;  %v8396_v56 = vpop.f32.mrb[35].mxu0  ;;  %v8758_v51 = vld [vmem:[%s9170_s6 + $0x70] sm:$0xff]  }
 0x8dc   : > { %v2342_v58 = vpack.c.bf16 %v2206_v55, %v2206_v55  ;;  %8416 = vmatmul.mubr.msk.bf16.vlgmr.msra.gmra.mrb[36].mxu1 %vm1412_vm5, %v2341_v54 }
 0x8dd   : > { %8427 = vmatprep.mubr.msk.bf16.mxu1 %vm9006_vm3, %v9005_v39 }
 0x8de   : > { %8422 = vmatmul.mubr.msk.bf16.vlgmr.msra.gmra.mrb[40].mxu0 %vm1412_vm5, %v2342_v58  ;;  %v8759_v58 = vld [vmem:[%s9170_s6 + $0x78] sm:$0xff]  }
 0x8df   : > { %v2334_v60 = vpop.f32.mrb[36].mxu0  ;;  %8433 = vmatprep.mubr.msk.bf16.mxu0 %vm9006_vm3, %v9005_v39 }
 0x8e0   : > { %v2335_v63 = vadd.f32 %v7562_v59, %v2334_v60  ;;  %v8411_v0 = vpop.f32.mrb[37].mxu0  ;;  %v8763_v60 = vld [vmem:[%s9170_s6 + $0xb8] sm:$0xff]  }
 0x8e1   : > { %v2337_v1 = vpop.f32.mrb[38].mxu0 }
 0x8e2   : > { %v2465_v2 = vpack.c.bf16 %v2335_v63, %v2335_v63  ;;  %v2338_v3 = vadd.f32 %v7562_v59, %v2337_v1  ;;  %v8412_v4 = vpop.f32.mrb[39].mxu0  ;;  %v8762_v59 = vld [vmem:[%s9170_s6 + $0xb0] sm:$0xff]   ;;  %s10233_s6 = sld [smem:[#allocation30_spill]] (!%p7916_p5) }
 0x8e4   : > { %v2471_v5 = vsel %vm1538_vm6, %v2465_v2, 0  ;;  %v2466_v6 = vpack.c.bf16 %v2338_v3, %v2338_v3 }
 0x8e5   : > { %8426 = vmatpush3.bf16.msra.mxu1 %v2471_v5 }
 0x8e6   : > { %v2517_v7 = vsel %vm1538_vm6, %v2466_v6, 0  ;;  %8437 = vmatprep.subr.bf16.mxu1 %v9005_v39 }
 0x8e7   : > { %8432 = vmatpush3.bf16.msra.mxu0 %v2517_v7 }
 0x8e8   : > { %8443 = vmatprep.subr.bf16.mxu0 %v9005_v39 }
 0x9af   : > { %v2385_v8 = vpop.f32.mrb[36].mxu1 }
 0x9b0   : > { %v2437_v9 = vmul.f32 0.35355338, %v2385_v8  ;;  %v8417_v10 = vpop.f32.mrb[37].mxu1 }
 0x9b1   : > { %v2388_v11 = vpop.f32.mrb[38].mxu1  ;;  %v2431_v12 = vpop.f32.mrb[40].mxu0 }
 0x9b2   : > { %v2438_v13 = vmul.f32 0.35355338, %v2431_v12  ;;  %v8418_v57 = vpop.f32.mrb[39].mxu1  ;;  %v8423_v61 = vpop.f32.mrb[41].mxu0  ;;  %v2439_v62 = vadd.f32 %v2437_v9, %v9337_v25  ;;  %v7586_v9 = vld [vmem:[%s10219_s15 + $0x7] ss:$0 sm:$0xff] }
 0x9b3   : > { %v2434_v14 = vpop.f32.mrb[42].mxu0 }
 0x9b4   : > { %v8424_v15 = vpop.f32.mrb[43].mxu0  ;;  %v2441_v16 = vsel %vm1412_vm5, %v2439_v62, -inf  ;;  %v2440_v17 = vadd.f32 %v2438_v13, %v9335_v19  ;;  %v7577_v13 = vld [vmem:[%s10219_s15 + $0x3] ss:$0 sm:$0xff] }
 0x9b5   : > { %2442 = vmax.xlane.f32.xlu0 %v2441_v16 }
 0x9b6   : > { %v2444_v18 = vsel %vm1412_vm5, %v2440_v17, -inf }
 0x9b7   : > { %2445 = vmax.xlane.f32.xlu1 %v2444_v18 }
 0xa42   : > { %v2443_v20 = vpop.xlane.xlu0 %2442 }
 0xa43   : > { %v2447_v21 = vsub.f32 %v2439_v62, %v2443_v20  ;;  %v7595_v20 = vld [vmem:[%s10219_s15 + $0xb] ss:$0 sm:$0xff] }
 0xa44   : > { %v2446_v22 = vpop.xlane.xlu1 %2445 }
 0xa45   : > { %v2449_v23 = vmul.f32 1.442695, %v2447_v21  ;;  %v2448_v24 = vsub.f32 %v2440_v17, %v2446_v22 }
 0xa47   : > { %8932 = vpow2.f32 %v2449_v23  ;;  %v2451_v26 = vmul.f32 1.442695, %v2448_v24 }
 0xa49   : > { %8934 = vpow2.f32 %v2451_v26 }
 0xa51   : > { %v8933_v27 = vpop.eup %8932 }
 0xa52   : > { %v2453_v28 = vsel %vm1412_vm5, %v8933_v27, 0.0 }
 0xa53   : > { %v8935_v29 = vpop.eup %8934  ;;  %2454 = vadd.xlane.f32.xlu0 %v2453_v28 }
 0xa54   : > { %v2456_v30 = vsel %vm1412_vm5, %v8935_v29, 0.0 }
 0xa55   : > { %2457 = vadd.xlane.f32.xlu1 %v2456_v30 }
 0xae0   : > { %v2455_v31 = vpop.xlane.xlu0 %2454 }
 0xae1   : > { %8936 = vrcp.f32 %v2455_v31 }
 0xae2   : > { %v2458_v32 = vpop.xlane.xlu1 %2457 }
 0xae3   : > { %8938 = vrcp.f32 %v2458_v32 }
 0xaeb   : > { %v8937_v33 = vpop.eup %8936 }
 0xaec   : > { %v2461_v35 = vmul.f32 %v8937_v33, %v8933_v27 }
 0xaed   : > { %v8939_v36 = vpop.eup %8938 }
 0xaee   : > { %v2462_v37 = vmul.f32 %v8939_v36, %v8935_v29  ;;  %v2463_v38 = vpack.c.bf16 %v2461_v35, %v2461_v35 }
 0xaf0   : > { %8428 = vmatmul.mubr.msk.bf16.vlgmr.msra.gmra.mrb[40].mxu1 %vm1412_vm5, %v2463_v38  ;;  %v2464_v41 = vpack.c.bf16 %v2462_v37, %v2462_v37 }
 0xaf1   : > { %8438 = vmatpush3.bf16.msra.mxu1 %v2566_v40  ;;  %8439 = vmatprep.mubr.msk.bf16.mxu1 %vm9006_vm3, %v9005_v39 }
 0xaf2   : > { %8434 = vmatmul.mubr.msk.bf16.vlgmr.msra.gmra.mrb[44].mxu0 %vm1412_vm5, %v2464_v41  ;;  %8451 = vmatprep.subr.bf16.mxu1 %v9005_v39 }
 0xaf3   : > { %8447 = vmatprep.mubr.msk.bf16.mxu0 %vm9006_vm3, %v9005_v39  ;;  %8444 = vmatpush3.bf16.msra.mxu0 %v8760_v42 }
 0xaf4   : > { %8445 = vmatprep.subr.bf16.mxu0 %v9005_v39 }
 0xaf7   : > { %8446 = vmatpush3.bf16.msra.mxu0 %v8761_v44 }
 0xaf8   : > { %8459 = vmatprep.subr.bf16.mxu0 %v9005_v39 }
 0xafa   : > { %8448 = vmatmul.mubr.msk.bf16.vlgmr.msra.gmra.mrb[48].mxu0 %vm1231_vm4, %v9297_v45 }
 0xafb   : > { %8463 = vmatprep.mubr.msk.bf16.mxu0 %vm9006_vm3, %v9005_v39  ;;  %8460 = vmatpush3.bf16.msra.mxu0 %v8762_v59 }
 0xafc   : > { %8461 = vmatprep.subr.bf16.mxu0 %v9005_v39 }
 0xaff   : > { %8462 = vmatpush3.bf16.msra.mxu0 %v8763_v60 }
 0xb00   : > { %8473 = vmatprep.subr.bf16.mxu0 %v9005_v39 }
 0xb02   : > { %8464 = vmatmul.mubr.msk.bf16.vlgmr.msra.gmra.mrb[52].mxu0 %vm1231_vm4, %v9297_v45 }
 0xb03   : > { %8475 = vmatprep.mubr.msk.bf16.mxu0 %vm9006_vm3, %v9005_v39 }
 0xbc3   : > { %v2507_v46 = vpop.f32.mrb[40].mxu1 }
 0xbc4   : > { %v8429_v48 = vpop.f32.mrb[41].mxu1 }
 0xbc5   : > { %v2510_v49 = vpop.f32.mrb[42].mxu1  ;;  %v2553_v50 = vpop.f32.mrb[44].mxu0 }
 0xbc6   : > { %v2559_v52 = vpack.c.bf16 %v2553_v50, %v2507_v46  ;;  %v8430_v53 = vpop.f32.mrb[43].mxu1  ;;  %v8435_v54 = vpop.f32.mrb[45].mxu0 }
 0xbc7   : > { %v2556_v55 = vpop.f32.mrb[46].mxu0 }
 0xbc8   : > { %v8436_v56 = vpop.f32.mrb[47].mxu0  ;;  %8440 = vmatmul.mubr.msk.bf16.vlgmr.msra.gmra.mrb[44].mxu1 %vm1412_vm5, %v2559_v52 }
 0xbc9   : > { %8452 = vmatpush3.bf16.msra.mxu1 %v8758_v51  ;;  %8455 = vmatprep.mubr.msk.bf16.mxu1 %vm9006_vm3, %v9005_v39 }
 0xbca   : > { %8453 = vmatprep.subr.bf16.mxu1 %v9005_v39 }
 0xbcd   : > { %8454 = vmatpush3.bf16.msra.mxu1 %v8759_v58  ;;  %v2670_v63 = vpop.f32.mrb[48].mxu0 }
 0xbce   : > { %8467 = vmatprep.subr.bf16.mxu1 %v9005_v39  ;;  %v8449_v0 = vpop.f32.mrb[49].mxu0  ;;  %v2671_v15 = vadd.f32 %v7577_v13, %v2670_v63 }
 0xbcf   : > { %v2673_v1 = vpop.f32.mrb[50].mxu0  ;;  %v7603_v0 = vld [vmem:[%s10220_s1 + $0xc] sm:$0xf] }
 0xbd0   : > { %8456 = vmatmul.mubr.msk.bf16.vlgmr.msra.gmra.mrb[48].mxu1 %vm1231_vm4, %v9297_v45  ;;  %v8450_v2 = vpop.f32.mrb[51].mxu0  ;;  %v2674_v17 = vadd.f32 %v7577_v13, %v2673_v1 }
 0xbd1   : > { %8469 = vmatprep.mubr.msk.bf16.mxu1 %vm9006_vm3, %v9005_v39 }
 0xbd2   : > { %v2810_v18 = vpack.c.bf16 %v2674_v17, %v2674_v17 }
 0xbd5   : > { %v2802_v21 = vpop.f32.mrb[52].mxu0 }
 0xbd6   : > { %v2803_v22 = vadd.f32 %v7595_v20, %v2802_v21  ;;  %v8465_v23 = vpop.f32.mrb[53].mxu0 }
 0xbd7   : > { %v2805_v24 = vpop.f32.mrb[54].mxu0 }
 0xbd8   : > { %v2933_v26 = vpack.c.bf16 %v2803_v22, %v2803_v22  ;;  %v2806_v27 = vadd.f32 %v7595_v20, %v2805_v24  ;;  %v8466_v28 = vpop.f32.mrb[55].mxu0  ;;  %v8992_v22 = vld [vmem:[#allocation2] sm:$0xff] }
 0xbda   : > { %v2939_v29 = vsel %vm1538_vm6, %v2933_v26, 0  ;;  %v2934_v30 = vpack.c.bf16 %v2806_v27, %v2806_v27  ;;  %v8993_v26 = vld [vmem:[#allocation2 + $0x8] sm:$0xff] }
 0xbdc   : > { %v2985_v31 = vsel %vm1538_vm6, %v2934_v30, 0 }
 0xc9b   : > { %v2602_v3 = vpop.f32.mrb[44].mxu1 }
 0xc9c   : > { %v9513_v4 = vadd.f32 %v2602_v3, %v9454_v43  ;;  %v8441_v5 = vpop.f32.mrb[45].mxu1 }
 0xc9d   : > { %v2605_v6 = vpop.f32.mrb[46].mxu1 }
 0xc9e   : > { %v9516_v7 = vadd.f32 %v2605_v6, %v9456_v47  ;;  %v8442_v8 = vpop.f32.mrb[47].mxu1  ;;  %v2809_v47 = vpack.c.bf16 %v2671_v15, %v2671_v15  ;;  %v3034_v6 = vsel %vm1538_vm6, %v7603_v0, 0 }
 0xca3   : > { %v2736_v45 = vpop.f32.mrb[48].mxu1 }
 0xca4   : > { %v2737_v10 = vadd.f32 %v7586_v9, %v2736_v45  ;;  %v8457_v11 = vpop.f32.mrb[49].mxu1 }
 0xca5   : > { %v2739_v12 = vpop.f32.mrb[50].mxu1 }
 0xca6   : > { %v2811_v57 = vpack.c.bf16 %v2737_v10, %v2737_v10  ;;  %v2740_v61 = vadd.f32 %v7586_v9, %v2739_v12  ;;  %v8458_v62 = vpop.f32.mrb[51].mxu1 }
 0xca8   : > { %v2817_v14 = vsel %vm1412_vm5, %v2811_v57, 0  ;;  %v2812_v43 = vpack.c.bf16 %v2740_v61, %v2740_v61 }
 0xca9   : > { %8468 = vmatpush3.bf16.xpose.msra.mxu1 %v2817_v14 }
 0xcaa   : > { %v2863_v16 = vsel %vm1412_vm5, %v2812_v43, 0  ;;  %8479 = vmatprep.subr.bf16.mxu1 %v9005_v39  ;;  %v7605_v43 = vld [vmem:[%s10222_s22] ss:$0 sm:$0xff] }
 0xcab   : > { %8474 = vmatpush3.bf16.xpose.msra.mxu0 %v2863_v16 }
 0xcac   : > { %8485 = vmatprep.subr.bf16.mxu0 %v9005_v39 }
 0xcb0   : > { %8470 = vmatmul.mubr.msk.bf16.vlgmr.msra.gmra.mrb[52].mxu1 %vm1412_vm5, %v2809_v47 }
 0xcb1   : > { %8481 = vmatprep.mubr.msk.bf16.mxu1 %vm9006_vm3, %v9005_v39  ;;  %8480 = vmatpush3.bf16.msra.mxu1 %v2939_v29 }
 0xcb2   : > { %8476 = vmatmul.mubr.msk.bf16.vlgmr.msra.gmra.mrb[56].mxu0 %vm1412_vm5, %v2810_v18  ;;  %8491 = vmatprep.subr.bf16.mxu1 %v9005_v39 }
 0xcb3   : > { %8487 = vmatprep.mubr.msk.bf16.mxu0 %vm9006_vm3, %v9005_v39  ;;  %8486 = vmatpush3.bf16.msra.mxu0 %v2985_v31 }
 0xcb4   : > { %8497 = vmatprep.subr.bf16.mxu0 %v9005_v39 }
 0xd83   : > { %v2853_v32 = vpop.f32.mrb[52].mxu1 }
 0xd84   : > { %v2905_v33 = vmul.f32 0.35355338, %v2853_v32  ;;  %v8471_v34 = vpop.f32.mrb[53].mxu1 }
 0xd85   : > { %v2856_v35 = vpop.f32.mrb[54].mxu1  ;;  %v2899_v36 = vpop.f32.mrb[56].mxu0 }
 0xd86   : > { %v2906_v37 = vmul.f32 0.35355338, %v2899_v36  ;;  %v8472_v38 = vpop.f32.mrb[55].mxu1  ;;  %v8477_v40 = vpop.f32.mrb[57].mxu0  ;;  %v2907_v41 = vadd.f32 %v2905_v33, %v9337_v25 }
 0xd87   : > { %v2902_v42 = vpop.f32.mrb[58].mxu0  ;;  %v8765_v38 = vld [vmem:[%s9184_s30 + $0x48] sm:$0xff]   ;;  %v9563_v40 = vld [vmem:[#allocation3] sm:$0xff] }
 0xd88   : > { %v8478_v44 = vpop.f32.mrb[59].mxu0  ;;  %v2909_v46 = vsel %vm1412_vm5, %v2907_v41, -inf  ;;  %v2908_v48 = vadd.f32 %v2906_v37, %v9335_v19  ;;  %v8764_v37 = vld [vmem:[%s9184_s30 + $0x40] sm:$0xff]  }
 0xd89   : > { %2910 = vmax.xlane.f32.xlu0 %v2909_v46  ;;  %v8766_v42 = vld [vmem:[%s9184_s30] sm:$0xff]   ;;  %v8767_v44 = vld [vmem:[%s9184_s30 + $0x8] sm:$0xff]  }
 0xd8a   : > { %v2912_v49 = vsel %vm1412_vm5, %v2908_v48, -inf  ;;  %v8768_v46 = vld [vmem:[%s9184_s30 + $0x80] sm:$0xff]  }
 0xd8b   : > { %2913 = vmax.xlane.f32.xlu1 %v2912_v49 }
 0xe16   : > { %v2911_v50 = vpop.xlane.xlu0 %2910 }
 0xe17   : > { %v2915_v51 = vsub.f32 %v2907_v41, %v2911_v50  ;;  %v9568_v41 = vld [vmem:[#allocation3 + $0x8] sm:$0xff] }
 0xe18   : > { %v2914_v52 = vpop.xlane.xlu1 %2913 }
 0xe19   : > { %v2917_v53 = vmul.f32 1.442695, %v2915_v51  ;;  %v2916_v54 = vsub.f32 %v2908_v48, %v2914_v52 }
 0xe1b   : > { %8940 = vpow2.f32 %v2917_v53  ;;  %v2919_v55 = vmul.f32 1.442695, %v2916_v54 }
 0xe1d   : > { %8942 = vpow2.f32 %v2919_v55  ;;  %v7606_v55 = vld [vmem:[%s10223_s25] ss:$0 sm:$0xff] }
 0xe25   : > { %v8941_v25 = vpop.eup %8940 }
 0xe26   : > { %v2921_v56 = vsel %vm1412_vm5, %v8941_v25, 0.0 }
 0xe27   : > { %v8943_v58 = vpop.eup %8942  ;;  %2922 = vadd.xlane.f32.xlu0 %v2921_v56 }
 0xe28   : > { %v2924_v19 = vsel %vm1412_vm5, %v8943_v58, 0.0 }
 0xe29   : > { %2925 = vadd.xlane.f32.xlu1 %v2924_v19 }
 0xeb4   : > { %v2923_v59 = vpop.xlane.xlu0 %2922 }
 0xeb5   : > { %8944 = vrcp.f32 %v2923_v59  ;;  %v7607_v59 = vld [vmem:[%s10224_s9] ss:$0 sm:$0xff]  ;;  %s10231_s9 = sld [smem:[#allocation28_spill]] (!%p7916_p5) }
 0xeb6   : > { %v2926_v60 = vpop.xlane.xlu1 %2925 }
 0xeb7   : > { %8946 = vrcp.f32 %v2926_v60 }
 0xebf   : > { %v8945_v63 = vpop.eup %8944 }
 0xec0   : > { %v2929_v1 = vmul.f32 %v8945_v63, %v8941_v25 }
 0xec1   : > { %v8947_v2 = vpop.eup %8946 }
 0xec2   : > { %v2930_v3 = vmul.f32 %v8947_v2, %v8943_v58  ;;  %v2931_v5 = vpack.c.bf16 %v2929_v1, %v2929_v1  ;;  %v8769_v2 = vld [vmem:[%s9184_s30 + $0x88] sm:$0xff]  }
 0xec4   : > { %8482 = vmatmul.mubr.msk.bf16.vlgmr.msra.gmra.mrb[56].mxu1 %vm1412_vm5, %v2931_v5  ;;  %v2932_v8 = vpack.c.bf16 %v2930_v3, %v2930_v3  ;;  %v7617_v3 = vld [vmem:[%s9189_s10 + $0x4] ss:$0 sm:$0xff] }
 0xec5   : > { %8492 = vmatpush3.bf16.msra.mxu1 %v3034_v6  ;;  %8493 = vmatprep.mubr.msk.bf16.mxu1 %vm9006_vm3, %v9005_v39 }
 0xec6   : > { %8488 = vmatmul.mubr.msk.bf16.vlgmr.msra.gmra.mrb[60].mxu0 %vm1412_vm5, %v2932_v8  ;;  %8505 = vmatprep.subr.bf16.mxu1 %v8764_v37 }
 0xec7   : > { %8501 = vmatprep.mubr.msk.bf16.mxu0 %vm9006_vm3, %v9005_v39  ;;  %8498 = vmatpush3.bf16.msra.mxu0 %v8766_v42 }
 0xec8   : > { %8499 = vmatprep.subr.bf16.mxu0 %v9005_v39 }
 0xecb   : > { %8500 = vmatpush3.bf16.msra.mxu0 %v8767_v44 }
 0xecc   : > { %8513 = vmatprep.subr.bf16.mxu0 %v8768_v46 }
 0xf97   : > { %v2975_v9 = vpop.f32.mrb[56].mxu1 }
 0xf98   : > { %v8483_v45 = vpop.f32.mrb[57].mxu1 }
 0xf99   : > { %v2978_v10 = vpop.f32.mrb[58].mxu1  ;;  %v3021_v11 = vpop.f32.mrb[60].mxu0 }
 0xf9a   : > { %v3027_v12 = vpack.c.bf16 %v3021_v11, %v2975_v9  ;;  %v8484_v13 = vpop.f32.mrb[59].mxu1  ;;  %v8489_v57 = vpop.f32.mrb[61].mxu0 }
 0xf9b   : > { %v3024_v61 = vpop.f32.mrb[62].mxu0 }
 0xf9c   : > { %v8490_v62 = vpop.f32.mrb[63].mxu0  ;;  %8494 = vmatmul.mubr.msk.bf16.vlgmr.msra.gmra.mrb[60].mxu1 %vm1412_vm5, %v3027_v12 }
 0xf9d   : > { %8506 = vmatpush3.bf16.msra.mxu1 %v8764_v37  ;;  %8509 = vmatprep.mubr.msk.bf16.mxu1 %vm1231_vm4, %v9563_v40 }
 0xf9e   : > { %8507 = vmatprep.subr.bf16.mxu1 %v8765_v38 }
 0xfa1   : > { %8508 = vmatpush3.bf16.msra.mxu1 %v8765_v38 }
 0xfa2   : > { %8521 = vmatprep.subr.bf16.mxu1 %v9005_v39 }
 0xfa4   : > { %8510 = vmatmul.mubr.msk.bf16.vlgmr.msra.gmra.mrb[64].mxu1 %vm1231_vm4, %v9568_v41 }
 0xfa5   : > { %8523 = vmatprep.mubr.msk.bf16.mxu1 %vm9006_vm3, %v9005_v39 }
0x106f   : > { %v3070_v14 = vpop.f32.mrb[60].mxu1 }
0x1070   : > { %v3077_v15 = vadd.f32 %v3070_v14, %v9513_v4  ;;  %v8495_v16 = vpop.f32.mrb[61].mxu1  ;;  %v7608_v14 = vld [vmem:[%s9189_s10] ss:$0 sm:$0xff] }
0x1071   : > { %v3073_v47 = vpop.f32.mrb[62].mxu1 }
0x1072   : > { %v3086_v17 = vadd.f32 %v7605_v43, %v3077_v15  ;;  %v3078_v18 = vadd.f32 %v3073_v47, %v9516_v7  ;;  %v8496_v20 = vpop.f32.mrb[63].mxu1 }
0x1074   : > { %v3087_v21 = vadd.f32 %v7605_v43, %v3078_v18  ;;  %v3088_v23 = vadd.f32 %v8992_v22, %v3086_v17  ;;  %v7627_v22 = vld [vmem:[%s9189_s10 + $0x8] ss:$0 sm:$0xff] }
0x1076   : > { %v3092_v24 = vsel %vm1231_vm4, %v3088_v23, 0.0  ;;  %v3089_v27 = vadd.f32 %v8993_v26, %v3087_v21 }
0x1077   : > { %3093 = vadd.xlane.f32.xlu0 %v3092_v24  ;;  %v8511_v5 = vpop.f32.mrb[64].mxu1 }
0x1078   : > { %v3095_v28 = vsel %vm1231_vm4, %v3089_v27, 0.0  ;;  %v3277_v6 = vadd.f32 %v8511_v5, %v7617_v3  ;;  %v3268_v8 = vpop.f32.mrb[65].mxu1 }
0x1079   : > { %3096 = vadd.xlane.f32.xlu1 %v3095_v28  ;;  %v3269_v9 = vadd.f32 %v7617_v3, %v3268_v8  ;;  %v8512_v45 = vpop.f32.mrb[66].mxu1  ;;  %v8770_v8 = vld [vmem:[%s9184_s30 + $0x10] sm:$0xff]  }
0x107a   : > { %v3280_v10 = vadd.f32 %v8512_v45, %v7617_v3  ;;  %v3271_v11 = vpop.f32.mrb[67].mxu1 }
0x107b   : > { %v3272_v12 = vadd.f32 %v7617_v3, %v3271_v11  ;;  %v8773_v11 = vld [vmem:[%s9184_s30 + $0x58] sm:$0xff]  }
0x107c   : > { %v3360_v13 = vpack.c.bf16 %v3280_v10, %v3277_v6 }
0x107d   : > { %v3359_v57 = vpack.c.bf16 %v3272_v12, %v3269_v9  ;;  %v8772_v12 = vld [vmem:[%s9184_s30 + $0x18] sm:$0xff]  }
0x107e   : > { %v3411_v61 = vsel %vm1412_vm5, %v3360_v13, 0  ;;  %v8774_v13 = vld [vmem:[%s9184_s30 + $0x90] sm:$0xff]  }
0x107f   : > { %v3365_v62 = vsel %vm1412_vm5, %v3359_v57, 0  ;;  %v8775_v57 = vld [vmem:[%s9184_s30 + $0x98] sm:$0xff]  }
0x1080   : > { %8522 = vmatpush3.bf16.xpose.msra.mxu1 %v3365_v62 }
0x1081   : > { %8533 = vmatprep.subr.bf16.mxu1 %v9005_v39 }
0x1104   : > { %v3094_v4 = vpop.xlane.xlu0 %3093 }
0x1105   : > { %v3099_v29 = vmul.f32 0.03125, %v3094_v4 }
0x1106   : > { %v3097_v30 = vpop.xlane.xlu1 %3096 }
0x1107   : > { %v3101_v31 = vsub.f32 %v3088_v23, %v3099_v29  ;;  %v3100_v32 = vmul.f32 0.03125, %v3097_v30 }
0x1109   : > { %v3102_v7 = vsub.f32 %v3089_v27, %v3100_v32  ;;  %v3103_v33 = vmul.f32 %v3101_v31, %v3101_v31 }
0x110b   : > { %v3105_v34 = vsel %vm1231_vm4, %v3103_v33, 0.0  ;;  %v3104_v35 = vmul.f32 %v3102_v7, %v3102_v7 }
0x110c   : > { %3106 = vadd.xlane.f32.xlu0 %v3105_v34 }
0x110d   : > { %v3108_v36 = vsel %vm1231_vm4, %v3104_v35, 0.0 }
0x110e   : > { %3109 = vadd.xlane.f32.xlu1 %v3108_v36 }
0x1199   : > { %v3107_v48 = vpop.xlane.xlu0 %3106 }
0x119a   : > { %v3111_v49 = vmul.f32 0.03125, %v3107_v48 }
0x119b   : > { %v3110_v50 = vpop.xlane.xlu1 %3109 }
0x119c   : > { %v3113_v51 = vadd.f32 1e-05, %v3111_v49  ;;  %v3112_v52 = vmul.f32 0.03125, %v3110_v50 }
0x119e   : > { %8948 = vrsqrt.f32 %v3113_v51  ;;  %v3114_v53 = vadd.f32 1e-05, %v3112_v52 }
0x11a0   : > { %8950 = vrsqrt.f32 %v3114_v53 }
0x11a8   : > { %v8949_v54 = vpop.eup %8948 }
0x11a9   : > { %v3117_v25 = vmul.f32 %v8949_v54, %v3101_v31 }
0x11aa   : > { %v8951_v56 = vpop.eup %8950 }
0x11ab   : > { %v3125_v58 = vmul.f32 %v7606_v55, %v3117_v25  ;;  %v3118_v19 = vmul.f32 %v8951_v56, %v3102_v7 }
0x11ad   : > { %v3126_v60 = vmul.f32 %v7606_v55, %v3118_v19  ;;  %v9588_v63 = vadd.f32 %v7607_v59, %v3125_v58 }
0x11af   : > { %v9590_v0 = vadd.f32 %v7607_v59, %v3126_v60  ;;  %v8771_v59 = vld [vmem:[%s9184_s30 + $0x50] sm:$0xff]  }
0x11b1   : > { %v9594_v1 = vpack.c.bf16 %v9590_v0, %v9588_v63 }
0x11b3   : > { %8502 = vmatmul.mubr.msk.bf16.vlgmr.msra.gmra.mrb[64].mxu0 %vm1231_vm4, %v9594_v1 }
0x11b4   : > { %8514 = vmatpush3.bf16.msra.mxu0 %v8768_v46  ;;  %8517 = vmatprep.mubr.msk.bf16.mxu0 %vm1231_vm4, %v9563_v40 }
0x11b5   : > { %8515 = vmatprep.subr.bf16.mxu0 %v8769_v2 }
0x11b8   : > { %8516 = vmatpush3.bf16.msra.mxu0 %v8769_v2 }
0x11b9   : > { %8527 = vmatprep.subr.bf16.mxu0 %v9005_v39 }
0x11bb   : > { %8518 = vmatmul.mubr.msk.bf16.vlgmr.msra.gmra.mrb[68].mxu0 %vm1231_vm4, %v9568_v41 }
0x11bc   : > { %8529 = vmatprep.mubr.msk.bf16.mxu0 %vm9006_vm3, %v9005_v39 }
0x11c1   : > { %8528 = vmatpush3.bf16.xpose.msra.mxu0 %v3411_v61 }
0x11c2   : > { %8539 = vmatprep.subr.bf16.mxu0 %v9005_v39 }
0x1286   : > { %v3196_v43 = vpop.f32.mrb[64].mxu0 }
0x1287   : > { %v3197_v15 = vadd.f32 %v7608_v14, %v3196_v43  ;;  %v8503_v16 = vpop.f32.mrb[65].mxu0 }
0x1288   : > { %v3199_v47 = vpop.f32.mrb[66].mxu0 }
0x1289   : > { %v3357_v17 = vpack.c.bf16 %v3197_v15, %v3197_v15  ;;  %v3200_v18 = vadd.f32 %v7608_v14, %v3199_v47  ;;  %v8504_v20 = vpop.f32.mrb[67].mxu0 }
0x128b   : > { %v3358_v21 = vpack.c.bf16 %v3200_v18, %v3200_v18  ;;  %8524 = vmatmul.mubr.msk.bf16.vlgmr.msra.gmra.mrb[68].mxu1 %vm1412_vm5, %v3357_v17 }
0x128c   : > { %8535 = vmatprep.mubr.msk.bf16.mxu1 %vm9006_vm3, %v9005_v39 }
0x128d   : > { %8530 = vmatmul.mubr.msk.bf16.vlgmr.msra.gmra.mrb[72].mxu0 %vm1412_vm5, %v3358_v21 }
0x128e   : > { %v8519_v23 = vpop.f32.mrb[68].mxu0  ;;  %8541 = vmatprep.mubr.msk.bf16.mxu0 %vm9006_vm3, %v9005_v39 }
0x128f   : > { %v3351_v24 = vadd.f32 %v8519_v23, %v7627_v22  ;;  %v3342_v26 = vpop.f32.mrb[69].mxu0 }
0x1290   : > { %v3343_v27 = vadd.f32 %v7627_v22, %v3342_v26  ;;  %v8520_v28 = vpop.f32.mrb[70].mxu0 }
0x1291   : > { %v3354_v4 = vadd.f32 %v8520_v28, %v7627_v22  ;;  %v3345_v29 = vpop.f32.mrb[71].mxu0 }
0x1292   : > { %v3346_v30 = vadd.f32 %v7627_v22, %v3345_v29 }
0x1293   : > { %v3481_v31 = vpack.c.bf16 %v3354_v4, %v3351_v24  ;;  %v7650_v24 = vld [vmem:[%s9189_s10 + $0x5] ss:$0 sm:$0xff] }
0x1294   : > { %v3480_v32 = vpack.c.bf16 %v3346_v30, %v3343_v27 }
0x1295   : > { %8540 = vmatpush3.bf16.msra.mxu0 %v3481_v31 }
0x1296   : > { %8534 = vmatpush3.bf16.msra.mxu1 %v3480_v32  ;;  %8553 = vmatprep.subr.bf16.mxu0 %v8771_v59 }
0x1297   : > { %8545 = vmatprep.subr.bf16.mxu1 %v9005_v39 }
0x135e   : > { %v3401_v7 = vpop.f32.mrb[68].mxu1 }
0x135f   : > { %v3453_v33 = vmul.f32 0.35355338, %v3401_v7  ;;  %v8525_v34 = vpop.f32.mrb[69].mxu1 }
0x1360   : > { %v3404_v35 = vpop.f32.mrb[70].mxu1  ;;  %v3447_v36 = vpop.f32.mrb[72].mxu0  ;;  %v7641_v34 = vld [vmem:[%s9189_s10 + $0x1] ss:$0 sm:$0xff] }
0x1361   : > { %v3454_v37 = vmul.f32 0.35355338, %v3447_v36  ;;  %v8526_v38 = vpop.f32.mrb[71].mxu1  ;;  %v8531_v42 = vpop.f32.mrb[73].mxu0  ;;  %v3456_v44 = vsel %vm3455_vm7, %v3453_v33, -inf }
0x1362   : > { %3457 = vmax.xlane.f32.xlu1 %v3456_v44  ;;  %v3450_v46 = vpop.f32.mrb[74].mxu0 }
0x1363   : > { %v8532_v48 = vpop.f32.mrb[75].mxu0  ;;  %v3459_v49 = vsel %vm3455_vm7, %v3454_v37, -inf  ;;  %v7660_v46 = vld [vmem:[%s9189_s10 + $0x9] ss:$0 sm:$0xff] }
0x1364   : > { %3460 = vmax.xlane.f32.xlu0 %v3459_v49 }
0x13ef   : > { %v3458_v50 = vpop.xlane.xlu1 %3457 }
0x13f0   : > { %v3462_v51 = vsub.f32 %v3453_v33, %v3458_v50 }
0x13f1   : > { %v3461_v52 = vpop.xlane.xlu0 %3460 }
0x13f2   : > { %v3464_v53 = vmul.f32 1.442695, %v3462_v51  ;;  %v3463_v54 = vsub.f32 %v3454_v37, %v3461_v52 }
0x13f4   : > { %8952 = vpow2.f32 %v3464_v53  ;;  %v3466_v55 = vmul.f32 1.442695, %v3463_v54 }
0x13f6   : > { %8954 = vpow2.f32 %v3466_v55 }
0x13fe   : > { %v8953_v25 = vpop.eup %8952 }
0x13ff   : > { %v3468_v56 = vsel %vm3455_vm7, %v8953_v25, 0.0 }
0x1400   : > { %v8955_v58 = vpop.eup %8954  ;;  %3469 = vadd.xlane.f32.xlu1 %v3468_v56 }
0x1401   : > { %v3471_v19 = vsel %vm3455_vm7, %v8955_v58, 0.0 }
0x1402   : > { %3472 = vadd.xlane.f32.xlu0 %v3471_v19 }
0x148d   : > { %v3470_v60 = vpop.xlane.xlu1 %3469 }
0x148e   : > { %8956 = vrcp.f32 %v3470_v60 }
0x148f   : > { %v3473_v2 = vpop.xlane.xlu0 %3472 }
0x1490   : > { %8958 = vrcp.f32 %v3473_v2 }
0x1498   : > { %v8957_v3 = vpop.eup %8956 }
0x1499   : > { %v3476_v5 = vmul.f32 %v8957_v3, %v8953_v25 }
0x149a   : > { %v8959_v6 = vpop.eup %8958 }
0x149b   : > { %v3477_v9 = vmul.f32 %v8959_v6, %v8955_v58  ;;  %v3478_v45 = vpack.c.bf16 %v3476_v5, %v3476_v5 }
0x149d   : > { %8536 = vmatmul.mubr.msk.bf16.vlgmr.msra.gmra.mrb[72].mxu1 %vm3455_vm7, %v3478_v45  ;;  %v3479_v10 = vpack.c.bf16 %v3477_v9, %v3477_v9 }
0x149e   : > { %8546 = vmatpush3.bf16.msra.mxu1 %v8770_v8  ;;  %8549 = vmatprep.mubr.msk.bf16.mxu1 %vm9006_vm3, %v9005_v39 }
0x149f   : > { %8542 = vmatmul.mubr.msk.bf16.vlgmr.msra.gmra.mrb[76].mxu0 %vm3455_vm7, %v3479_v10  ;;  %8547 = vmatprep.subr.bf16.mxu1 %v9005_v39 }
0x14a0   : > { %8554 = vmatpush3.bf16.msra.mxu0 %v8771_v59  ;;  %8557 = vmatprep.mubr.msk.bf16.mxu0 %vm1231_vm4, %v9563_v40 }
0x14a1   : > { %8555 = vmatprep.subr.bf16.mxu0 %v8773_v11 }
0x14a2   : > { %8548 = vmatpush3.bf16.msra.mxu1 %v8772_v12 }
0x14a3   : > { %8561 = vmatprep.subr.bf16.mxu1 %v8774_v13 }
0x14a4   : > { %8556 = vmatpush3.bf16.msra.mxu0 %v8773_v11 }
0x14a5   : > { %8550 = vmatmul.mubr.msk.bf16.vlgmr.msra.gmra.mrb[76].mxu1 %vm1231_vm4, %v9594_v1  ;;  %8569 = vmatprep.subr.bf16.mxu0 %v9005_v39 }
0x14a6   : > { %8565 = vmatprep.mubr.msk.bf16.mxu1 %vm1231_vm4, %v9563_v40  ;;  %8562 = vmatpush3.bf16.msra.mxu1 %v8774_v13 }
0x14a7   : > { %8558 = vmatmul.mubr.msk.bf16.vlgmr.msra.gmra.mrb[80].mxu0 %vm1231_vm4, %v9568_v41  ;;  %8563 = vmatprep.subr.bf16.mxu1 %v8775_v57 }
0x14a8   : > { %8571 = vmatprep.mubr.msk.bf16.mxu0 %vm9006_vm3, %v9005_v39 }
0x14aa   : > { %8564 = vmatpush3.bf16.msra.mxu1 %v8775_v57 }
0x14ab   : > { %8575 = vmatprep.subr.bf16.mxu1 %v9005_v39 }
0x14ad   : > { %8566 = vmatmul.mubr.msk.bf16.vlgmr.msra.gmra.mrb[80].mxu1 %vm1231_vm4, %v9568_v41 }
0x14ae   : > { %8577 = vmatprep.mubr.msk.bf16.mxu1 %vm9006_vm3, %v9005_v39 }
0x1570   : > { %v9651_v61 = vpop.f32.mrb[72].mxu1 }
0x1571   : > { %v8537_v62 = vpop.f32.mrb[73].mxu1 }
0x1572   : > { %v3522_v14 = vpop.f32.mrb[74].mxu1  ;;  %v9653_v43 = vpop.f32.mrb[76].mxu0 }
0x1573   : > { %v3568_v15 = vpack.c.bf16 %v9653_v43, %v9651_v61  ;;  %v8538_v16 = vpop.f32.mrb[75].mxu1  ;;  %v8543_v47 = vpop.f32.mrb[77].mxu0 }
0x1574   : > { %v3565_v17 = vpop.f32.mrb[78].mxu0 }
0x1575   : > { %v8544_v18 = vpop.f32.mrb[79].mxu0 }
0x1578   : > { %v3629_v20 = vpop.f32.mrb[76].mxu1 }
0x1579   : > { %v8551_v21 = vpop.f32.mrb[77].mxu1  ;;  %v3630_v38 = vadd.f32 %v7641_v34, %v3629_v20 }
0x157a   : > { %v3632_v22 = vpop.f32.mrb[78].mxu1  ;;  %v8559_v23 = vpop.f32.mrb[80].mxu0 }
0x157b   : > { %v8552_v26 = vpop.f32.mrb[79].mxu1  ;;  %v3695_v27 = vpop.f32.mrb[81].mxu0  ;;  %v3704_v4 = vadd.f32 %v8559_v23, %v7650_v24  ;;  %v3633_v37 = vadd.f32 %v7641_v34, %v3632_v22  ;;  %v3784_v44 = vpack.c.bf16 %v3630_v38, %v3630_v38  ;;  %v3569_v23 = vld [vmem:[%s9194_s26] sm:$0xf] }
0x157c   : > { %v8560_v28 = vpop.f32.mrb[82].mxu0  ;;  %v3696_v31 = vadd.f32 %v7650_v24, %v3695_v27 }
0x157d   : > { %v3707_v29 = vadd.f32 %v8560_v28, %v7650_v24  ;;  %v3698_v30 = vpop.f32.mrb[83].mxu0  ;;  %v3785_v42 = vpack.c.bf16 %v3633_v37, %v3633_v37  ;;  %v7669_v28 = vld [vmem:[%s9194_s26 + $0x4] sm:$0xf] }
0x157e   : > { %v3699_v32 = vadd.f32 %v7650_v24, %v3698_v30  ;;  %v8776_v30 = vld [vmem:[%s9184_s30 + $0x60] sm:$0xff]  }
0x157f   : > { %v3787_v7 = vpack.c.bf16 %v3707_v29, %v3704_v4  ;;  %v4048_v29 = vsel %vm1538_vm6, %v3569_v23, 0 }
0x1580   : > { %v3786_v33 = vpack.c.bf16 %v3699_v32, %v3696_v31  ;;  %v8567_v48 = vpop.f32.mrb[80].mxu1  ;;  %v4001_v32 = vsel %vm1538_vm6, %v7669_v28, 0 }
0x1581   : > { %v3838_v35 = vsel %vm1412_vm5, %v3787_v7, 0  ;;  %v3778_v49 = vadd.f32 %v8567_v48, %v7660_v46  ;;  %v3769_v50 = vpop.f32.mrb[81].mxu1  ;;  %v8777_v7 = vld [vmem:[%s9184_s30 + $0x68] sm:$0xff]  }
0x1582   : > { %8576 = vmatpush3.bf16.xpose.msra.mxu1 %v3838_v35  ;;  %v3792_v36 = vsel %vm1412_vm5, %v3786_v33, 0  ;;  %v3770_v51 = vadd.f32 %v7660_v46, %v3769_v50  ;;  %v8568_v52 = vpop.f32.mrb[82].mxu1 }
0x1583   : > { %8570 = vmatpush3.bf16.xpose.msra.mxu0 %v3792_v36  ;;  %8587 = vmatprep.subr.bf16.mxu1 %v9005_v39  ;;  %v3781_v53 = vadd.f32 %v8568_v52, %v7660_v46  ;;  %v3772_v54 = vpop.f32.mrb[83].mxu1 }
0x1584   : > { %8581 = vmatprep.subr.bf16.mxu0 %v9005_v39  ;;  %v3773_v55 = vadd.f32 %v7660_v46, %v3772_v54  ;;  %v8780_v46 = vld [vmem:[%s9184_s30 + $0xa0] sm:$0xff]  }
0x1585   : > { %v3907_v25 = vpack.c.bf16 %v3781_v53, %v3778_v49  ;;  %v7686_v53 = vld [vmem:[%s9189_s10 + $0x6] ss:$0 sm:$0xff] }
0x1586   : > { %v3906_v56 = vpack.c.bf16 %v3773_v55, %v3770_v51  ;;  %v8781_v51 = vld [vmem:[%s9184_s30 + $0xa8] sm:$0xff]  }
0x1589   : > { %8578 = vmatmul.mubr.msk.bf16.vlgmr.msra.gmra.mrb[84].mxu1 %vm1412_vm5, %v3785_v42 }
0x158a   : > { %8572 = vmatmul.mubr.msk.bf16.vlgmr.msra.gmra.mrb[84].mxu0 %vm1412_vm5, %v3784_v44  ;;  %8589 = vmatprep.mubr.msk.bf16.mxu1 %vm9006_vm3, %v9005_v39  ;;  %v8779_v44 = vld [vmem:[%s9184_s30 + $0x28] sm:$0xff]  }
0x158b   : > { %8583 = vmatprep.mubr.msk.bf16.mxu0 %vm9006_vm3, %v9005_v39  ;;  %8588 = vmatpush3.bf16.msra.mxu1 %v3907_v25 }
0x158c   : > { %8582 = vmatpush3.bf16.msra.mxu0 %v3906_v56  ;;  %8599 = vmatprep.subr.bf16.mxu1 %v9005_v39 }
0x158d   : > { %8593 = vmatprep.subr.bf16.mxu0 %v9005_v39 }
0x165c   : > { %v3874_v58 = vpop.f32.mrb[84].mxu1 }
0x165d   : > { %v3881_v19 = vmul.f32 0.35355338, %v3874_v58  ;;  %v3828_v59 = vpop.f32.mrb[84].mxu0  ;;  %v8579_v60 = vpop.f32.mrb[85].mxu1 }
0x165e   : > { %v3880_v2 = vmul.f32 0.35355338, %v3828_v59  ;;  %v8573_v3 = vpop.f32.mrb[85].mxu0  ;;  %v3877_v5 = vpop.f32.mrb[86].mxu1 }
0x165f   : > { %v3831_v6 = vpop.f32.mrb[86].mxu0  ;;  %v8580_v8 = vpop.f32.mrb[87].mxu1  ;;  %v3885_v9 = vsel %vm3455_vm7, %v3881_v19, -inf }
0x1660   : > { %v8574_v45 = vpop.f32.mrb[87].mxu0  ;;  %3886 = vmax.xlane.f32.xlu1 %v3885_v9  ;;  %v3882_v10 = vsel %vm3455_vm7, %v3880_v2, -inf }
0x1661   : > { %3883 = vmax.xlane.f32.xlu0 %v3882_v10 }
0x16ed   : > { %v3887_v11 = vpop.xlane.xlu1 %3886 }
0x16ee   : > { %v3889_v12 = vsub.f32 %v3881_v19, %v3887_v11  ;;  %v3884_v13 = vpop.xlane.xlu0 %3883 }
0x16ef   : > { %v3888_v57 = vsub.f32 %v3880_v2, %v3884_v13  ;;  %v7677_v13 = vld [vmem:[%s9189_s10 + $0x2] ss:$0 sm:$0xff] }
0x16f0   : > { %v3892_v62 = vmul.f32 1.442695, %v3889_v12 }
0x16f1   : > { %v3890_v14 = vmul.f32 1.442695, %v3888_v57 }
0x16f2   : > { %8960 = vpow2.f32 %v3892_v62 }
0x16f3   : > { %8962 = vpow2.f32 %v3890_v14 }
0x16fc   : > { %v8961_v16 = vpop.eup %8960 }
0x16fd   : > { %v8963_v47 = vpop.eup %8962  ;;  %v3897_v17 = vsel %vm3455_vm7, %v8961_v16, 0.0 }
0x16fe   : > { %3898 = vadd.xlane.f32.xlu1 %v3897_v17  ;;  %v3894_v18 = vsel %vm3455_vm7, %v8963_v47, 0.0 }
0x16ff   : > { %3895 = vadd.xlane.f32.xlu0 %v3894_v18 }
0x178b   : > { %v3899_v20 = vpop.xlane.xlu1 %3898 }
0x178c   : > { %8964 = vrcp.f32 %v3899_v20  ;;  %v3896_v21 = vpop.xlane.xlu0 %3895 }
0x178d   : > { %8966 = vrcp.f32 %v3896_v21  ;;  %v7696_v21 = vld [vmem:[%s9189_s10 + $0xa] ss:$0 sm:$0xff] }
0x1796   : > { %v8965_v22 = vpop.eup %8964 }
0x1797   : > { %v8967_v24 = vpop.eup %8966  ;;  %v3903_v26 = vmul.f32 %v8965_v22, %v8961_v16 }
0x1798   : > { %v3902_v27 = vmul.f32 %v8967_v24, %v8963_v47 }
0x1799   : > { %v3905_v4 = vpack.c.bf16 %v3903_v26, %v3903_v26 }
0x179a   : > { %v3904_v31 = vpack.c.bf16 %v3902_v27, %v3902_v27 }
0x179b   : > { %8590 = vmatmul.mubr.msk.bf16.vlgmr.msra.gmra.mrb[88].mxu1 %vm3455_vm7, %v3905_v4 }
0x179c   : > { %8584 = vmatmul.mubr.msk.bf16.vlgmr.msra.gmra.mrb[88].mxu0 %vm3455_vm7, %v3904_v31  ;;  %8600 = vmatpush3.bf16.msra.mxu1 %v4048_v29 }
0x179d   : > { %8601 = vmatprep.mubr.msk.bf16.mxu1 %vm9006_vm3, %v9005_v39  ;;  %8613 = vmatprep.subr.bf16.mxu1 %v8776_v30 }
0x179e   : > { %8594 = vmatpush3.bf16.msra.mxu0 %v4001_v32  ;;  %8595 = vmatprep.mubr.msk.bf16.mxu0 %vm9006_vm3, %v9005_v39 }
0x179f   : > { %8605 = vmatprep.subr.bf16.mxu0 %v9005_v39 }
0x17a3   : > { %8602 = vmatmul.mubr.msk.bf16.vlgmr.msra.gmra.mrb[92].mxu1 %vm1412_vm5, %v3568_v15  ;;  %v8778_v15 = vld [vmem:[%s9184_s30 + $0x20] sm:$0xff]  }
0x17a4   : > { %8614 = vmatpush3.bf16.msra.mxu1 %v8776_v30  ;;  %8617 = vmatprep.mubr.msk.bf16.mxu1 %vm1231_vm4, %v9563_v40 }
0x17a5   : > { %8615 = vmatprep.subr.bf16.mxu1 %v8777_v7 }
0x17a8   : > { %8616 = vmatpush3.bf16.msra.mxu1 %v8777_v7 }
0x17a9   : > { %8629 = vmatprep.subr.bf16.mxu1 %v9005_v39 }
0x17ab   : > { %8618 = vmatmul.mubr.msk.bf16.vlgmr.msra.gmra.mrb[96].mxu1 %vm1231_vm4, %v9568_v41 }
0x17ac   : > { %8631 = vmatprep.mubr.msk.bf16.mxu1 %vm9006_vm3, %v9005_v39 }
0x186e   : > { %v3988_v33 = vpop.f32.mrb[88].mxu1 }
0x186f   : > { %v3945_v61 = vpop.f32.mrb[88].mxu0  ;;  %v8591_v43 = vpop.f32.mrb[89].mxu1 }
0x1870   : > { %v3994_v34 = vpack.c.bf16 %v3988_v33, %v3945_v61  ;;  %v8585_v35 = vpop.f32.mrb[89].mxu0  ;;  %v3991_v36 = vpop.f32.mrb[90].mxu1 }
0x1871   : > { %v3948_v37 = vpop.f32.mrb[90].mxu0  ;;  %v8592_v38 = vpop.f32.mrb[91].mxu1 }
0x1872   : > { %v8586_v42 = vpop.f32.mrb[91].mxu0  ;;  %8596 = vmatmul.mubr.msk.bf16.vlgmr.msra.gmra.mrb[92].mxu0 %vm1412_vm5, %v3994_v34 }
0x1873   : > { %8606 = vmatpush3.bf16.msra.mxu0 %v8778_v15  ;;  %8609 = vmatprep.mubr.msk.bf16.mxu0 %vm9006_vm3, %v9005_v39 }
0x1874   : > { %8607 = vmatprep.subr.bf16.mxu0 %v9005_v39 }
0x1876   : > { %v4084_v48 = vpop.f32.mrb[92].mxu1 }
0x1877   : > { %v8603_v49 = vpop.f32.mrb[93].mxu1  ;;  %8608 = vmatpush3.bf16.msra.mxu0 %v8779_v44 }
0x1878   : > { %v4087_v50 = vpop.f32.mrb[94].mxu1  ;;  %8621 = vmatprep.subr.bf16.mxu0 %v8780_v46 }
0x1879   : > { %v8604_v52 = vpop.f32.mrb[95].mxu1 }
0x187a   : > { %8610 = vmatmul.mubr.msk.bf16.vlgmr.msra.gmra.mrb[96].mxu0 %vm1231_vm4, %v9594_v1 }
0x187b   : > { %8622 = vmatpush3.bf16.msra.mxu0 %v8780_v46  ;;  %8625 = vmatprep.mubr.msk.bf16.mxu0 %vm1231_vm4, %v9563_v40 }
0x187c   : > { %8623 = vmatprep.subr.bf16.mxu0 %v8781_v51 }
0x187e   : > { %v8619_v54 = vpop.f32.mrb[96].mxu1 }
0x187f   : > { %v4225_v55 = vadd.f32 %v8619_v54, %v7686_v53  ;;  %8624 = vmatpush3.bf16.msra.mxu0 %v8781_v51  ;;  %v4216_v25 = vpop.f32.mrb[97].mxu1 }
0x1880   : > { %v4217_v56 = vadd.f32 %v7686_v53, %v4216_v25  ;;  %v8620_v58 = vpop.f32.mrb[98].mxu1  ;;  %8635 = vmatprep.subr.bf16.mxu0 %v9005_v39 }
0x1881   : > { %v4228_v19 = vadd.f32 %v8620_v58, %v7686_v53  ;;  %v4219_v59 = vpop.f32.mrb[99].mxu1 }
0x1882   : > { %v4220_v60 = vadd.f32 %v7686_v53, %v4219_v59  ;;  %8626 = vmatmul.mubr.msk.bf16.vlgmr.msra.gmra.mrb[100].mxu0 %vm1231_vm4, %v9568_v41 }
0x1883   : > { %v4308_v2 = vpack.c.bf16 %v4228_v19, %v4225_v55  ;;  %8637 = vmatprep.mubr.msk.bf16.mxu0 %vm9006_vm3, %v9005_v39  ;;  %v7705_v19 = vld [vmem:[%s9194_s26 + $0x8] sm:$0xf] }
0x1884   : > { %v4307_v3 = vpack.c.bf16 %v4220_v60, %v4217_v56 }
0x1885   : > { %v4359_v6 = vsel %vm1412_vm5, %v4308_v2, 0 }
0x1886   : > { %v4313_v5 = vsel %vm1412_vm5, %v4307_v3, 0 }
0x1887   : > { %8630 = vmatpush3.bf16.xpose.msra.mxu1 %v4313_v5  ;;  %v4522_v5 = vsel %vm1538_vm6, %v7705_v19, 0 }
0x1888   : > { %8636 = vmatpush3.bf16.xpose.msra.mxu0 %v4359_v6  ;;  %8641 = vmatprep.subr.bf16.mxu1 %v9005_v39  ;;  %v8782_v6 = vld [vmem:[%s9184_s30 + $0x30] sm:$0xff]  }
0x1889   : > { %8647 = vmatprep.subr.bf16.mxu0 %v9005_v39 }
0x1945   : > { %v4037_v8 = vpop.f32.mrb[92].mxu0 }
0x1946   : > { %v9722_v9 = vadd.f32 %v4084_v48, %v4037_v8  ;;  %v8597_v45 = vpop.f32.mrb[93].mxu0 }
0x1947   : > { %v4040_v10 = vpop.f32.mrb[94].mxu0  ;;  %v8783_v45 = vld [vmem:[%s9184_s30 + $0x38] sm:$0xff]  }
0x1948   : > { %v9724_v11 = vadd.f32 %v4087_v50, %v4040_v10  ;;  %v8598_v12 = vpop.f32.mrb[95].mxu0  ;;  %v8784_v10 = vld [vmem:[%s9184_s30 + $0x70] sm:$0xff]  }
0x194d   : > { %v4150_v57 = vpop.f32.mrb[96].mxu0 }
0x194e   : > { %v4151_v62 = vadd.f32 %v7677_v13, %v4150_v57  ;;  %v8611_v14 = vpop.f32.mrb[97].mxu0 }
0x194f   : > { %v4153_v16 = vpop.f32.mrb[98].mxu0 }
0x1950   : > { %v4305_v47 = vpack.c.bf16 %v4151_v62, %v4151_v62  ;;  %v4154_v17 = vadd.f32 %v7677_v13, %v4153_v16  ;;  %v8612_v18 = vpop.f32.mrb[99].mxu0 }
0x1952   : > { %v4306_v20 = vpack.c.bf16 %v4154_v17, %v4154_v17  ;;  %8632 = vmatmul.mubr.msk.bf16.vlgmr.msra.gmra.mrb[100].mxu1 %vm1412_vm5, %v4305_v47  ;;  %v8785_v17 = vld [vmem:[%s9184_s30 + $0x78] sm:$0xff]  }
0x1953   : > { %8643 = vmatprep.mubr.msk.bf16.mxu1 %vm9006_vm3, %v9005_v39 }
0x1954   : > { %8638 = vmatmul.mubr.msk.bf16.vlgmr.msra.gmra.mrb[104].mxu0 %vm1412_vm5, %v4306_v20 }
0x1955   : > { %v8627_v22 = vpop.f32.mrb[100].mxu0  ;;  %8649 = vmatprep.mubr.msk.bf16.mxu0 %vm9006_vm3, %v9005_v39 }
0x1956   : > { %v4299_v23 = vadd.f32 %v8627_v22, %v7696_v21  ;;  %v4290_v24 = vpop.f32.mrb[101].mxu0 }
0x1957   : > { %v4291_v26 = vadd.f32 %v7696_v21, %v4290_v24  ;;  %v8628_v27 = vpop.f32.mrb[102].mxu0  ;;  %v8786_v24 = vld [vmem:[%s9184_s30 + $0xb0] sm:$0xff]  }
0x1958   : > { %v4302_v28 = vadd.f32 %v8628_v27, %v7696_v21  ;;  %v4293_v4 = vpop.f32.mrb[103].mxu0 }
0x1959   : > { %v4294_v29 = vadd.f32 %v7696_v21, %v4293_v4 }
0x195a   : > { %v4428_v30 = vpack.c.bf16 %v4302_v28, %v4299_v23 }
0x195b   : > { %v4427_v31 = vpack.c.bf16 %v4294_v29, %v4291_v26  ;;  %v8787_v26 = vld [vmem:[%s9184_s30 + $0xb8] sm:$0xff]  }
0x195c   : > { %8648 = vmatpush3.bf16.msra.mxu0 %v4428_v30 }
0x195d   : > { %8642 = vmatpush3.bf16.msra.mxu1 %v4427_v31  ;;  %8659 = vmatprep.subr.bf16.mxu0 %v9005_v39 }
0x195e   : > { %8653 = vmatprep.subr.bf16.mxu1 %v9005_v39 }
0x1a25   : > { %v4349_v32 = vpop.f32.mrb[100].mxu1 }
0x1a26   : > { %v4401_v7 = vmul.f32 0.35355338, %v4349_v32  ;;  %v8633_v33 = vpop.f32.mrb[101].mxu1  ;;  %v7721_v32 = vld [vmem:[%s9189_s10 + $0x7] ss:$0 sm:$0xff] }
0x1a27   : > { %v4352_v61 = vpop.f32.mrb[102].mxu1  ;;  %v4395_v43 = vpop.f32.mrb[104].mxu0 }
0x1a28   : > { %v4402_v15 = vmul.f32 0.35355338, %v4395_v43  ;;  %v8634_v34 = vpop.f32.mrb[103].mxu1  ;;  %v8639_v35 = vpop.f32.mrb[105].mxu0  ;;  %v4403_v36 = vsel %vm3455_vm7, %v4401_v7, -inf }
0x1a29   : > { %4404 = vmax.xlane.f32.xlu0 %v4403_v36  ;;  %v4398_v37 = vpop.f32.mrb[106].mxu0 }
0x1a2a   : > { %v8640_v38 = vpop.f32.mrb[107].mxu0  ;;  %v4406_v42 = vsel %vm3455_vm7, %v4402_v15, -inf }
0x1a2b   : > { %4407 = vmax.xlane.f32.xlu1 %v4406_v42 }
0x1ab6   : > { %v4405_v44 = vpop.xlane.xlu0 %4404 }
0x1ab7   : > { %v4409_v46 = vsub.f32 %v4401_v7, %v4405_v44 }
0x1ab8   : > { %v4408_v48 = vpop.xlane.xlu1 %4407 }
0x1ab9   : > { %v4411_v49 = vmul.f32 1.442695, %v4409_v46  ;;  %v4410_v50 = vsub.f32 %v4402_v15, %v4408_v48  ;;  %v7731_v48 = vld [vmem:[%s9189_s10 + $0xb] ss:$0 sm:$0xff] }
0x1abb   : > { %8968 = vpow2.f32 %v4411_v49  ;;  %v4413_v51 = vmul.f32 1.442695, %v4410_v50 }
0x1abd   : > { %8970 = vpow2.f32 %v4413_v51 }
0x1ac5   : > { %v8969_v52 = vpop.eup %8968 }
0x1ac6   : > { %v4415_v53 = vsel %vm3455_vm7, %v8969_v52, 0.0 }
0x1ac7   : > { %v8971_v54 = vpop.eup %8970  ;;  %4416 = vadd.xlane.f32.xlu0 %v4415_v53 }
0x1ac8   : > { %v4418_v55 = vsel %vm3455_vm7, %v8971_v54, 0.0 }
0x1ac9   : > { %4419 = vadd.xlane.f32.xlu1 %v4418_v55 }
0x1b54   : > { %v4417_v25 = vpop.xlane.xlu0 %4416 }
0x1b55   : > { %8972 = vrcp.f32 %v4417_v25 }
0x1b56   : > { %v4420_v56 = vpop.xlane.xlu1 %4419 }
0x1b57   : > { %8974 = vrcp.f32 %v4420_v56 }
0x1b5f   : > { %v8973_v58 = vpop.eup %8972 }
0x1b60   : > { %v4423_v59 = vmul.f32 %v8973_v58, %v8969_v52 }
0x1b61   : > { %v8975_v60 = vpop.eup %8974 }
0x1b62   : > { %v4424_v2 = vmul.f32 %v8975_v60, %v8971_v54  ;;  %v4425_v3 = vpack.c.bf16 %v4423_v59, %v4423_v59 }
0x1b64   : > { %8644 = vmatmul.mubr.msk.bf16.vlgmr.msra.gmra.mrb[104].mxu1 %vm3455_vm7, %v4425_v3  ;;  %v4426_v8 = vpack.c.bf16 %v4424_v2, %v4424_v2 }
0x1b65   : > { %8654 = vmatpush3.bf16.msra.mxu1 %v4522_v5  ;;  %8655 = vmatprep.mubr.msk.bf16.mxu1 %vm9006_vm3, %v9005_v39 }
0x1b66   : > { %8650 = vmatmul.mubr.msk.bf16.vlgmr.msra.gmra.mrb[108].mxu0 %vm3455_vm7, %v4426_v8  ;;  %8667 = vmatprep.subr.bf16.mxu1 %v8784_v10 }
0x1b67   : > { %8660 = vmatpush3.bf16.msra.mxu0 %v8782_v6  ;;  %8663 = vmatprep.mubr.msk.bf16.mxu0 %vm9006_vm3, %v9005_v39 }
0x1b68   : > { %8661 = vmatprep.subr.bf16.mxu0 %v9005_v39 }
0x1b6b   : > { %8662 = vmatpush3.bf16.msra.mxu0 %v8783_v45 }
0x1b6c   : > { %8675 = vmatprep.subr.bf16.mxu0 %v8786_v24 }
0x1b6e   : > { %8664 = vmatmul.mubr.msk.bf16.vlgmr.msra.gmra.mrb[112].mxu0 %vm1231_vm4, %v9594_v1 }
0x1b6f   : > { %8679 = vmatprep.mubr.msk.bf16.mxu0 %vm1231_vm4, %v9563_v40  ;;  %8676 = vmatpush3.bf16.msra.mxu0 %v8786_v24 }
0x1b70   : > { %8677 = vmatprep.subr.bf16.mxu0 %v8787_v26 }
0x1b73   : > { %8678 = vmatpush3.bf16.msra.mxu0 %v8787_v26 }
0x1b74   : > { %8689 = vmatprep.subr.bf16.mxu0 %v9005_v39 }
0x1b76   : > { %8680 = vmatmul.mubr.msk.bf16.vlgmr.msra.gmra.mrb[116].mxu0 %vm1231_vm4, %v9568_v41 }
0x1b77   : > { %8691 = vmatprep.mubr.msk.bf16.mxu0 %vm9006_vm3, %v9005_v39 }
0x1c37   : > { %v4466_v12 = vpop.f32.mrb[104].mxu1 }
0x1c38   : > { %v8645_v13 = vpop.f32.mrb[105].mxu1 }
0x1c39   : > { %v4469_v57 = vpop.f32.mrb[106].mxu1  ;;  %v4509_v62 = vpop.f32.mrb[108].mxu0 }
0x1c3a   : > { %v4515_v14 = vpack.c.bf16 %v4509_v62, %v4466_v12  ;;  %v8646_v16 = vpop.f32.mrb[107].mxu1  ;;  %v8651_v47 = vpop.f32.mrb[109].mxu0 }
0x1c3b   : > { %v4512_v18 = vpop.f32.mrb[110].mxu0 }
0x1c3c   : > { %v8652_v20 = vpop.f32.mrb[111].mxu0  ;;  %8656 = vmatmul.mubr.msk.bf16.vlgmr.msra.gmra.mrb[108].mxu1 %vm1412_vm5, %v4515_v14 }
0x1c3d   : > { %8668 = vmatpush3.bf16.msra.mxu1 %v8784_v10  ;;  %8671 = vmatprep.mubr.msk.bf16.mxu1 %vm1231_vm4, %v9563_v40 }
0x1c3e   : > { %8669 = vmatprep.subr.bf16.mxu1 %v8785_v17 }
0x1c41   : > { %v4626_v1 = vpop.f32.mrb[112].mxu0  ;;  %8670 = vmatpush3.bf16.msra.mxu1 %v8785_v17 }
0x1c42   : > { %v8665_v21 = vpop.f32.mrb[113].mxu0  ;;  %8683 = vmatprep.subr.bf16.mxu1 %v9005_v39 }
0x1c43   : > { %v4629_v22 = vpop.f32.mrb[114].mxu0 }
0x1c44   : > { %v8666_v23 = vpop.f32.mrb[115].mxu0  ;;  %8672 = vmatmul.mubr.msk.bf16.vlgmr.msra.gmra.mrb[112].mxu1 %vm1231_vm4, %v9568_v41 }
0x1c45   : > { %8685 = vmatprep.mubr.msk.bf16.mxu1 %vm9006_vm3, %v9005_v39 }
0x1c49   : > { %v8681_v49 = vpop.f32.mrb[116].mxu0 }
0x1c4a   : > { %v4775_v50 = vadd.f32 %v8681_v49, %v7731_v48  ;;  %v4766_v51 = vpop.f32.mrb[117].mxu0 }
0x1c4b   : > { %v4767_v52 = vadd.f32 %v7731_v48, %v4766_v51  ;;  %v8682_v53 = vpop.f32.mrb[118].mxu0 }
0x1c4c   : > { %v4778_v54 = vadd.f32 %v8682_v53, %v7731_v48  ;;  %v4769_v55 = vpop.f32.mrb[119].mxu0 }
0x1c4d   : > { %v4770_v25 = vadd.f32 %v7731_v48, %v4769_v55 }
0x1c4e   : > { %v4904_v56 = vpack.c.bf16 %v4778_v54, %v4775_v50 }
0x1c4f   : > { %v4903_v58 = vpack.c.bf16 %v4770_v25, %v4767_v52 }
0x1d0f   : > { %v4558_v40 = vpop.f32.mrb[108].mxu1 }
0x1d10   : > { %v9773_v27 = vadd.f32 %v4558_v40, %v9722_v9  ;;  %v8657_v28 = vpop.f32.mrb[109].mxu1  ;;  %v7712_v9 = vld [vmem:[%s9189_s10 + $0x3] ss:$0 sm:$0xff] }
0x1d11   : > { %v4561_v4 = vpop.f32.mrb[110].mxu1  ;;  %v4630_v38 = vadd.f32 %v7712_v9, %v4629_v22  ;;  %v4627_v42 = vadd.f32 %v7712_v9, %v4626_v1  ;;  %v7740_v28 = vld [vmem:[%s9194_s26 + $0xc] sm:$0xf]  ;;  %s10225_s26 = scalar_lea.vmem %s10150_s13, %s9157_s7 }
0x1d12   : > { %v9776_v29 = vadd.f32 %v4561_v4, %v9724_v11  ;;  %v8658_v30 = vpop.f32.mrb[111].mxu1 }
0x1d13   : > { %v4782_v44 = vpack.c.bf16 %v4630_v38, %v4630_v38  ;;  %v4781_v46 = vpack.c.bf16 %v4627_v42, %v4627_v42 }
0x1d17   : > { %v8673_v31 = vpop.f32.mrb[112].mxu1 }
0x1d18   : > { %v4692_v7 = vpop.f32.mrb[113].mxu1  ;;  %v4701_v61 = vadd.f32 %v8673_v31, %v7721_v32 }
0x1d19   : > { %v8674_v33 = vpop.f32.mrb[114].mxu1  ;;  %v4693_v15 = vadd.f32 %v7721_v32, %v4692_v7 }
0x1d1a   : > { %v4704_v41 = vadd.f32 %v8674_v33, %v7721_v32  ;;  %v4695_v43 = vpop.f32.mrb[115].mxu1 }
0x1d1b   : > { %v4696_v34 = vadd.f32 %v7721_v32, %v4695_v43  ;;  %v4998_v32 = vsel %vm1538_vm6, %v7740_v28, 0 }
0x1d1c   : > { %v4784_v35 = vpack.c.bf16 %v4704_v41, %v4701_v61 }
0x1d1d   : > { %v4783_v36 = vpack.c.bf16 %v4696_v34, %v4693_v15 }
0x1d1e   : > { %v4835_v37 = vsel %vm1412_vm5, %v4784_v35, 0 }
0x1d1f   : > { %8690 = vmatpush3.bf16.xpose.msra.mxu0 %v4835_v37  ;;  %v4789_v11 = vsel %vm1412_vm5, %v4783_v36, 0  ;;  %v7742_v37 = vld [vmem:[%s10225_s26] ss:$0 sm:$0xff]  ;;  %s10232_s26 = sld [smem:[#allocation29_spill]] (!%p7916_p5) }
0x1d20   : > { %8684 = vmatpush3.bf16.xpose.msra.mxu1 %v4789_v11  ;;  %8701 = vmatprep.subr.bf16.mxu0 %v9005_v39 }
0x1d21   : > { %8695 = vmatprep.subr.bf16.mxu1 %v9005_v39 }
0x1d26   : > { %8692 = vmatmul.mubr.msk.bf16.vlgmr.msra.gmra.mrb[120].mxu0 %vm1412_vm5, %v4782_v44 }
0x1d27   : > { %8686 = vmatmul.mubr.msk.bf16.vlgmr.msra.gmra.mrb[116].mxu1 %vm1412_vm5, %v4781_v46  ;;  %8703 = vmatprep.mubr.msk.bf16.mxu0 %vm9006_vm3, %v9005_v39 }
0x1d28   : > { %8697 = vmatprep.mubr.msk.bf16.mxu1 %vm9006_vm3, %v9005_v39  ;;  %8702 = vmatpush3.bf16.msra.mxu0 %v4904_v56 }
0x1d29   : > { %8696 = vmatpush3.bf16.msra.mxu1 %v4903_v58 }
0x1d2a   : > { %8707 = vmatprep.subr.bf16.mxu1 %v9005_v39 }
0x1df9   : > { %v4871_v19 = vpop.f32.mrb[120].mxu0 }
0x1dfa   : > { %v4878_v59 = vmul.f32 0.35355338, %v4871_v19  ;;  %v4825_v60 = vpop.f32.mrb[116].mxu1  ;;  %v8693_v2 = vpop.f32.mrb[121].mxu0  ;;  %v5099_v19 = vld [vmem:[%s9204_s28] sm:$0xff] }
0x1dfb   : > { %v4877_v3 = vmul.f32 0.35355338, %v4825_v60  ;;  %v8687_v5 = vpop.f32.mrb[117].mxu1  ;;  %v4874_v6 = vpop.f32.mrb[122].mxu0  ;;  %v5100_v60 = vld [vmem:[%s9204_s28 + $0x8] sm:$0xff] }
0x1dfc   : > { %v4828_v8 = vpop.f32.mrb[118].mxu1  ;;  %v8694_v45 = vpop.f32.mrb[123].mxu0  ;;  %v4882_v10 = vsel %vm3455_vm7, %v4878_v59, -inf }
0x1dfd   : > { %4883 = vmax.xlane.f32.xlu1 %v4882_v10  ;;  %v8688_v12 = vpop.f32.mrb[119].mxu1  ;;  %v4879_v13 = vsel %vm3455_vm7, %v4877_v3, -inf  ;;  %v5115_v45 = vld [vmem:[%s9204_s28 + $0x80] sm:$0xff] }
0x1dfe   : > { %4880 = vmax.xlane.f32.xlu0 %v4879_v13  ;;  %v5123_v10 = vld [vmem:[%s9204_s28 + $0xc0] sm:$0xff]  ;;  %v5116_v12 = vld [vmem:[%s9204_s28 + $0x88] sm:$0xff] }
0x1dff   : > { %v7762_v13 = vcombine.high %v5115_v45, %v5123_v10 }
0x1e8a   : > { %v4884_v57 = vpop.xlane.xlu1 %4883 }
0x1e8b   : > { %v4886_v62 = vsub.f32 %v4878_v59, %v4884_v57  ;;  %v4881_v14 = vpop.xlane.xlu0 %4880  ;;  %v5107_v59 = vld [vmem:[%s9204_s28 + $0x40] sm:$0xff]  ;;  %v5124_v57 = vld [vmem:[%s9204_s28 + $0xc8] sm:$0xff] }
0x1e8c   : > { %v4885_v16 = vsub.f32 %v4877_v3, %v4881_v14  ;;  %v7746_v2 = vcombine.high %v5099_v19, %v5107_v59  ;;  %v5108_v3 = vld [vmem:[%s9204_s28 + $0x48] sm:$0xff]  ;;  %v7745_v5 = vcombine.low %v5099_v19, %v5107_v59  ;;  %v7763_v14 = vcombine.low %v5116_v12, %v5124_v57  ;;  %v5105_v19 = vld [vmem:[%s9204_s28 + $0x30] sm:$0xff] }
0x1e8d   : > { %v4889_v47 = vmul.f32 1.442695, %v4886_v62  ;;  %v7747_v6 = vcombine.low %v5100_v60, %v5108_v3  ;;  %v7748_v8 = vcombine.high %v5100_v60, %v5108_v3  ;;  %v7761_v62 = vcombine.low %v5115_v45, %v5123_v10  ;;  %v5113_v59 = vld [vmem:[%s9204_s28 + $0x70] sm:$0xff]  ;;  %v5106_v60 = vld [vmem:[%s9204_s28 + $0x38] sm:$0xff] }
0x1e8e   : > { %v4887_v17 = vmul.f32 1.442695, %v4885_v16  ;;  %5378 = vmatprep.subr.bf16.mxu0 %v7746_v2  ;;  %v7764_v16 = vcombine.high %v5116_v12, %v5124_v57  ;;  %v5114_v2 = vld [vmem:[%s9204_s28 + $0x78] sm:$0xff]  ;;  %v5121_v45 = vld [vmem:[%s9204_s28 + $0xb0] sm:$0xff]  ;;  %v7757_v57 = vcombine.low %v5105_v19, %v5113_v59 }
0x1e8f   : > { %8976 = vpow2.f32 %v4889_v47  ;;  %v5101_v47 = vld [vmem:[%s9204_s28 + $0x10] sm:$0xff]  ;;  %v5122_v12 = vld [vmem:[%s9204_s28 + $0xb8] sm:$0xff] }
0x1e90   : > { %8978 = vpow2.f32 %v4887_v17  ;;  %v5109_v17 = vld [vmem:[%s9204_s28 + $0x50] sm:$0xff] }
0x1e91   : > { %v5129_v10 = vld [vmem:[%s9204_s28 + $0xf0] sm:$0xff] }
0x1e99   : > { %v8977_v18 = vpop.eup %8976 }
0x1e9a   : > { %v8979_v20 = vpop.eup %8978  ;;  %v4894_v1 = vsel %vm3455_vm7, %v8977_v18, 0.0 }
0x1e9b   : > { %4895 = vadd.xlane.f32.xlu1 %v4894_v1  ;;  %v4891_v21 = vsel %vm3455_vm7, %v8979_v20, 0.0  ;;  %v5110_v1 = vld [vmem:[%s9204_s28 + $0x58] sm:$0xff] }
0x1e9c   : > { %4892 = vadd.xlane.f32.xlu0 %v4891_v21  ;;  %v9007_v21 = vmov 0  }
0x1f28   : > { %v4896_v22 = vpop.xlane.xlu1 %4895 }
0x1f29   : > { %8980 = vrcp.f32 %v4896_v22  ;;  %v4893_v23 = vpop.xlane.xlu0 %4892  ;;  %v7749_v22 = vcombine.low %v5101_v47, %v5109_v17 }
0x1f2a   : > { %8982 = vrcp.f32 %v4893_v23 }
0x1f33   : > { %v8981_v24 = vpop.eup %8980 }
0x1f34   : > { %v8983_v26 = vpop.eup %8982  ;;  %v4900_v40 = vmul.f32 %v8981_v24, %v8977_v18  ;;  %v5102_v18 = vld [vmem:[%s9204_s28 + $0x18] sm:$0xff] }
0x1f35   : > { %v4899_v4 = vmul.f32 %v8983_v26, %v8979_v20  ;;  %v7750_v20 = vcombine.high %v5101_v47, %v5109_v17  ;;  %v7751_v23 = vcombine.low %v5102_v18, %v5110_v1  ;;  %v7752_v24 = vcombine.high %v5102_v18, %v5110_v1  ;;  %v8788_v18 = vld [vmem:[%s9219_s24 + $0x40] sm:$0xff]  }
0x1f36   : > { %v4902_v30 = vpack.c.bf16 %v4900_v40, %v4900_v40  ;;  %v7773_v47 = vcombine.low %v5121_v45, %v5129_v10  ;;  %v8790_v1 = vld [vmem:[%s9219_s24] sm:$0xff]  }
0x1f37   : > { %v4901_v31 = vpack.c.bf16 %v4899_v4, %v4899_v4 }
0x1f38   : > { %8704 = vmatmul.mubr.msk.bf16.vlgmr.msra.gmra.mrb[124].mxu0 %vm3455_vm7, %v4902_v30 }
0x1f39   : > { %8698 = vmatmul.mubr.msk.bf16.vlgmr.msra.gmra.mrb[120].mxu1 %vm3455_vm7, %v4901_v31  ;;  %5379 = vmatpush1.bf16.msra.mxu0 %v7745_v5 }
0x1f3a   : > { %8708 = vmatpush3.bf16.msra.mxu1 %v4998_v32  ;;  %8709 = vmatprep.mubr.msk.bf16.mxu1 %vm9006_vm3, %v9005_v39 }
0x1f3b   : > { %5421 = vmatprep.subr.bf16.mxu1 %v7748_v8  ;;  %5380 = vmatprep.subr.bf16.mxu0 %v7762_v13  ;;  %v7760_v8 = vcombine.high %v5106_v60, %v5114_v2  ;;  %v5130_v13 = vld [vmem:[%s9204_s28 + $0xf8] sm:$0xff] }
0x1f3c   : > { %5410 = vmatprep.mubr.bf16.mxu0 %v9007_v21  ;;  %v7775_v17 = vcombine.low %v5122_v12, %v5130_v13 }
0x1f3d   : > { %5381 = vmatpush1.bf16.msra.mxu0 %v7761_v62  ;;  %v7759_v62 = vcombine.low %v5106_v60, %v5114_v2 }
0x1f3e   : > { %5464 = vmatprep.subr.bf16.mxu0 %v7750_v20  ;;  %v8789_v20 = vld [vmem:[%s9219_s24 + $0xc0] sm:$0xff]  }
0x200b   : > { %v4985_v7 = vpop.f32.mrb[124].mxu0 }
0x200c   : > { %v4942_v33 = vpop.f32.mrb[120].mxu1  ;;  %v8705_v61 = vpop.f32.mrb[125].mxu0 }
0x200d   : > { %v4991_v41 = vpack.c.bf16 %v4985_v7, %v4942_v33  ;;  %v8699_v43 = vpop.f32.mrb[121].mxu1  ;;  %v4988_v15 = vpop.f32.mrb[126].mxu0  ;;  %v7743_v7 = vld [vmem:[%s1044_s14] ss:$0 sm:$0xff] }
0x200e   : > { %v4945_v34 = vpop.f32.mrb[122].mxu1  ;;  %v8706_v35 = vpop.f32.mrb[127].mxu0  ;;  %v7744_v15 = vld [vmem:[%s1047_s27] ss:$0 sm:$0xff] }
0x200f   : > { %v8700_v36 = vpop.f32.mrb[123].mxu1  ;;  %8710 = vmatmul.mubr.msk.bf16.vlgmr.msra.gmra.mrb[124].mxu1 %vm1412_vm5, %v4991_v41  ;;  %v5117_v35 = vld [vmem:[%s9204_s28 + $0x90] sm:$0xff] }
0x2010   : > { %5422 = vmatpush1.bf16.msra.mxu1 %v7747_v6  ;;  %5453 = vmatprep.mubr.bf16.mxu1 %v9007_v21  ;;  %v5125_v36 = vld [vmem:[%s9204_s28 + $0xd0] sm:$0xff]  ;;  %v7758_v6 = vcombine.high %v5105_v19, %v5113_v59 }
0x2011   : > { %5423 = vmatprep.subr.bf16.mxu1 %v7764_v16  ;;  %v7776_v16 = vcombine.high %v5122_v12, %v5130_v13 }
0x2014   : > { %5424 = vmatpush1.bf16.msra.mxu1 %v7763_v14  ;;  %v7774_v14 = vcombine.high %v5121_v45, %v5129_v10 }
0x2015   : > { %5507 = vmatprep.subr.bf16.mxu1 %v7752_v24  ;;  %v8793_v24 = vld [vmem:[%s9219_s24 + $0xc8] sm:$0xff]  }
0x20e2   : > { %v5034_v9 = vpop.f32.mrb[124].mxu1 }
0x20e3   : > { %v5041_v11 = vadd.f32 %v5034_v9, %v9773_v27  ;;  %v8711_v39 = vpop.f32.mrb[125].mxu1  ;;  %v5118_v9 = vld [vmem:[%s9204_s28 + $0x98] sm:$0xff] }
0x20e4   : > { %v5037_v38 = vpop.f32.mrb[126].mxu1 }
0x20e5   : > { %v5050_v42 = vadd.f32 %v7742_v37, %v5041_v11  ;;  %v5042_v44 = vadd.f32 %v5037_v38, %v9776_v29  ;;  %v8712_v46 = vpop.f32.mrb[127].mxu1 }
0x20e6   : > { %v5103_v46 = vld [vmem:[%s9204_s28 + $0x20] sm:$0xff] }
0x20e7   : > { %v5051_v48 = vadd.f32 %v7742_v37, %v5042_v44  ;;  %v5052_v49 = vadd.f32 %v5050_v42, %v9588_v63  ;;  %v5126_v37 = vld [vmem:[%s9204_s28 + $0xd8] sm:$0xff]  ;;  %v7766_v42 = vcombine.high %v5117_v35, %v5125_v36 }
0x20e8   : > { %v7768_v44 = vcombine.high %v5118_v9, %v5126_v37 }
0x20e9   : > { %v5056_v50 = vsel %vm1231_vm4, %v5052_v49, 0.0  ;;  %v5053_v51 = vadd.f32 %v5051_v48, %v9590_v0  ;;  %v5111_v48 = vld [vmem:[%s9204_s28 + $0x60] sm:$0xff] }
0x20ea   : > { %5057 = vadd.xlane.f32.xlu0 %v5056_v50  ;;  %v5112_v50 = vld [vmem:[%s9204_s28 + $0x68] sm:$0xff] }
0x20eb   : > { %v5059_v52 = vsel %vm1231_vm4, %v5053_v51, 0.0 }
0x20ec   : > { %5060 = vadd.xlane.f32.xlu1 %v5059_v52  ;;  %v7767_v52 = vcombine.low %v5118_v9, %v5126_v37  ;;  %v8811_v9 = vld [vmem:[%s9219_s24 + $0xa8] sm:$0xff]   ;;  %v8812_v37 = vld [vmem:[%s9219_s24 + $0x70] sm:$0xff]  }
0x2177   : > { %v5058_v27 = vpop.xlane.xlu0 %5057 }
0x2178   : > { %v5062_v53 = vmul.f32 0.03125, %v5058_v27  ;;  %v7754_v27 = vcombine.high %v5103_v46, %v5111_v48 }
0x2179   : > { %v5061_v54 = vpop.xlane.xlu1 %5060 }
0x217a   : > { %v5064_v29 = vsub.f32 %v5052_v49, %v5062_v53  ;;  %v5063_v55 = vmul.f32 0.03125, %v5061_v54  ;;  %v5104_v49 = vld [vmem:[%s9204_s28 + $0x28] sm:$0xff]  ;;  %v5119_v54 = vld [vmem:[%s9204_s28 + $0xa0] sm:$0xff] }
0x217b   : > { %v7756_v53 = vcombine.high %v5104_v49, %v5112_v50 }
0x217c   : > { %v5065_v25 = vsub.f32 %v5053_v51, %v5063_v55  ;;  %v5066_v56 = vmul.f32 %v5064_v29, %v5064_v29  ;;  %v7765_v51 = vcombine.low %v5117_v35, %v5125_v36  ;;  %v5120_v55 = vld [vmem:[%s9204_s28 + $0xa8] sm:$0xff] }
0x217d   : > { %v8809_v35 = vld [vmem:[%s9219_s24 + $0xe8] sm:$0xff]  }
0x217e   : > { %v5068_v63 = vsel %vm1231_vm4, %v5066_v56, 0.0  ;;  %v5067_v58 = vmul.f32 %v5065_v25, %v5065_v25  ;;  %v7753_v56 = vcombine.low %v5103_v46, %v5111_v48  ;;  %v8810_v36 = vld [vmem:[%s9219_s24 + $0x28] sm:$0xff]   ;;  %v8816_v46 = vld [vmem:[%s9219_s24 + $0x78] sm:$0xff]  }
0x217f   : > { %5069 = vadd.xlane.f32.xlu0 %v5068_v63  ;;  %v7755_v63 = vcombine.low %v5104_v49, %v5112_v50  ;;  %v8817_v48 = vld [vmem:[%s9219_s24 + $0xf8] sm:$0xff]  }
0x2180   : > { %v5071_v0 = vsel %vm1231_vm4, %v5067_v58, 0.0  ;;  %v8818_v49 = vld [vmem:[%s9219_s24 + $0x38] sm:$0xff]  }
0x2181   : > { %5072 = vadd.xlane.f32.xlu1 %v5071_v0  ;;  %v8819_v50 = vld [vmem:[%s9219_s24 + $0xb8] sm:$0xff]  }
0x220c   : > { %v5070_v26 = vpop.xlane.xlu0 %5069 }
0x220d   : > { %v5074_v40 = vmul.f32 0.03125, %v5070_v26  ;;  %v8795_v26 = vld [vmem:[%s9219_s24 + $0x88] sm:$0xff]  }
0x220e   : > { %v5073_v28 = vpop.xlane.xlu1 %5072 }
0x220f   : > { %v5076_v4 = vadd.f32 1e-05, %v5074_v40  ;;  %v5075_v30 = vmul.f32 0.03125, %v5073_v28  ;;  %v8796_v40 = vld [vmem:[%s9219_s24 + $0x50] sm:$0xff]  }
0x2210   : > { %v8797_v28 = vld [vmem:[%s9219_s24 + $0xd0] sm:$0xff]  }
0x2211   : > { %8984 = vrsqrt.f32 %v5076_v4  ;;  %v5077_v31 = vadd.f32 1e-05, %v5075_v30  ;;  %v8798_v4 = vld [vmem:[%s9219_s24 + $0x10] sm:$0xff]  }
0x2212   : > { %v8799_v30 = vld [vmem:[%s9219_s24 + $0x90] sm:$0xff]  }
0x2213   : > { %8986 = vrsqrt.f32 %v5077_v31  ;;  %v8800_v31 = vld [vmem:[%s9219_s24 + $0x58] sm:$0xff]  }
0x221b   : > { %v8985_v32 = vpop.eup %8984 }
0x221c   : > { %v5080_v33 = vmul.f32 %v8985_v32, %v5064_v29  ;;  %v5127_v29 = vld [vmem:[%s9204_s28 + $0xe0] sm:$0xff]  ;;  %v8801_v32 = vld [vmem:[%s9219_s24 + $0xd8] sm:$0xff]  }
0x221d   : > { %v8987_v61 = vpop.eup %8986  ;;  %v7770_v58 = vcombine.high %v5119_v54, %v5127_v29  ;;  %v7769_v3 = vcombine.low %v5119_v54, %v5127_v29  ;;  %v9928_v29 = vld [vmem:[%s9209_s4 + $0x8] sm:$0xff] }
0x221e   : > { %v5088_v41 = vmul.f32 %v7743_v7, %v5080_v33  ;;  %v5081_v43 = vmul.f32 %v8987_v61, %v5065_v25  ;;  %v5128_v25 = vld [vmem:[%s9204_s28 + $0xe8] sm:$0xff]  ;;  %v8803_v33 = vld [vmem:[%s9219_s24 + $0x98] sm:$0xff]   ;;  %v8804_v61 = vld [vmem:[%s9219_s24 + $0x60] sm:$0xff]  }
0x221f   : > { %v7772_v0 = vcombine.high %v5120_v55, %v5128_v25  ;;  %v7771_v5 = vcombine.low %v5120_v55, %v5128_v25 }
0x2220   : > { %v5089_v34 = vmul.f32 %v7743_v7, %v5081_v43  ;;  %v9844_v11 = vadd.f32 %v7744_v15, %v5088_v41  ;;  %v8802_v7 = vld [vmem:[%s9219_s24 + $0x18] sm:$0xff]   ;;  %v8805_v41 = vld [vmem:[%s9219_s24 + $0xe0] sm:$0xff]  }
0x2221   : > { %v8806_v43 = vld [vmem:[%s9219_s24 + $0x20] sm:$0xff]  }
0x2222   : > { %v9846_v39 = vadd.f32 %v7744_v15, %v5089_v34  ;;  %v8807_v15 = vld [vmem:[%s9219_s24 + $0xa0] sm:$0xff]   ;;  %v8808_v34 = vld [vmem:[%s9219_s24 + $0x68] sm:$0xff]  }
0x2224   : > { %v9850_v38 = vpack.c.bf16 %v9846_v39, %v9844_v11 }
0x2226   : > { %7777 = vmatmul.mubr.msk.bf16.vlgmr.msra.gmra.mrb[128].mxu0 %vm1231_vm4, %v9850_v38  ;;  %7778 = vmatmul.mubr.msk.bf16.vlgmr.msra.gmra.mrb[128].mxu1 %vm1231_vm4, %v9850_v38 }
0x2227   : > { %5465 = vmatpush1.bf16.msra.mxu0 %v7749_v22  ;;  %5508 = vmatpush1.bf16.msra.mxu1 %v7751_v23  ;;  %v8791_v22 = vld [vmem:[%s9219_s24 + $0x80] sm:$0xff]   ;;  %v8792_v23 = vld [vmem:[%s9219_s24 + $0x48] sm:$0xff]  }
0x2228   : > { %5466 = vmatprep.subr.bf16.mxu0 %v7766_v42  ;;  %5509 = vmatprep.subr.bf16.mxu1 %v7768_v44  ;;  %v8814_v42 = vld [vmem:[%s9219_s24 + $0x30] sm:$0xff]  }
0x2229   : > { %5496 = vmatprep.mubr.bf16.mxu0 %v9007_v21  ;;  %5539 = vmatprep.mubr.bf16.mxu1 %v9007_v21  ;;  %v8815_v44 = vld [vmem:[%s9219_s24 + $0xb0] sm:$0xff]  }
0x222b   : > { %5467 = vmatpush1.bf16.msra.mxu0 %v7765_v51  ;;  %5510 = vmatpush1.bf16.msra.mxu1 %v7767_v52  ;;  %v8820_v51 = vld [vmem:[%s9219_s24 + $0x140] sm:$0xff]  }
0x222c   : > { %5550 = vmatprep.subr.bf16.mxu0 %v7754_v27  ;;  %5593 = vmatprep.subr.bf16.mxu1 %v7756_v53  ;;  %v8821_v52 = vld [vmem:[%s9219_s24 + $0x1c0] sm:$0xff]   ;;  %v5135_v27 = vlaneseq }
0x222e   : > { %7779 = vmatmul.mubr.msk.bf16.vlgmr.msra.gmra.mrb[132].mxu0 %vm1231_vm4, %v9850_v38  ;;  %7780 = vmatmul.mubr.msk.bf16.vlgmr.msra.gmra.mrb[132].mxu1 %vm1231_vm4, %v9850_v38  ;;  %v9924_v53 = vshrl.u32 %v5135_v27, 7 }
0x222f   : > { %5551 = vmatpush1.bf16.msra.mxu0 %v7753_v56  ;;  %5594 = vmatpush1.bf16.msra.mxu1 %v7755_v63  ;;  %v5131_v63 = vld [vmem:[%s9209_s4] sm:$0xff]  ;;  %s10226_s4 = sld [smem:[#allocation25_spill]] }
0x2230   : > { %5552 = vmatprep.subr.bf16.mxu0 %v7770_v58  ;;  %5595 = vmatprep.subr.bf16.mxu1 %v7772_v0  ;;  %v5161_v54 = vsub.s32 6, %v9924_v53  ;;  %v5137_v25 = vsub.s32 0, %v9924_v53  ;;  %v5145_v56 = vsub.s32 2, %v9924_v53  ;;  %v5141_v58 = vsub.s32 1, %v9924_v53 }
0x2231   : > { %5582 = vmatprep.mubr.bf16.mxu0 %v9007_v21  ;;  %5625 = vmatprep.mubr.bf16.mxu1 %v9007_v21  ;;  %v5149_v0 = vsub.s32 3, %v9924_v53  ;;  %v5165_v45 = vsub.s32 7, %v9924_v53 }
0x2232   : > { %v9931_v55 = vrot.slane %v9928_v29, %v5161_v54  ;;  %v5138_v19 = vrot.slane %v5131_v63, %v5137_v25  ;;  %v5146_v59 = vrot.slane %v5131_v63, %v5145_v56  ;;  %v5142_v60 = vrot.slane %v5131_v63, %v5141_v58 }
0x2233   : > { %5553 = vmatpush1.bf16.msra.mxu0 %v7769_v3  ;;  %5596 = vmatpush1.bf16.msra.mxu1 %v7771_v5  ;;  %v5150_v2 = vrot.slane %v5131_v63, %v5149_v0  ;;  %v5153_v3 = vsub.s32 4, %v9924_v53 }
0x2234   : > { %5636 = vmatprep.subr.bf16.mxu0 %v7758_v6  ;;  %5679 = vmatprep.subr.bf16.mxu1 %v7760_v8  ;;  %v5157_v8 = vsub.s32 5, %v9924_v53 }
0x2235   : > { %s10227_s27 = scalar_lea.vmem %s10226_s4, %s9157_s7 }
0x2236   : > { %7781 = vmatmul.mubr.msk.bf16.vlgmr.msra.gmra.mrb[136].mxu0 %vm1231_vm4, %v9850_v38  ;;  %7782 = vmatmul.mubr.msk.bf16.vlgmr.msra.gmra.mrb[136].mxu1 %vm1231_vm4, %v9850_v38 }
0x2237   : > { %5637 = vmatpush1.bf16.msra.mxu0 %v7757_v57  ;;  %5680 = vmatpush1.bf16.msra.mxu1 %v7759_v62 }
0x2238   : > { %5638 = vmatprep.subr.bf16.mxu0 %v7774_v14  ;;  %5681 = vmatprep.subr.bf16.mxu1 %v7776_v16 }
0x2239   : > { %5668 = vmatprep.mubr.bf16.mxu0 %v9007_v21  ;;  %5711 = vmatprep.mubr.bf16.mxu1 %v9007_v21  ;;  %v8794_v21 = vld [vmem:[%s9219_s24 + $0x8] sm:$0xff]  }
0x223b   : > { %5639 = vmatpush1.bf16.msra.mxu0 %v7773_v47  ;;  %5682 = vmatpush1.bf16.msra.mxu1 %v7775_v17 }
0x223c   : > { %8092 = vmatprep.subr.bf16.mxu0 %v8788_v18  ;;  %8114 = vmatprep.subr.bf16.mxu1 %v8789_v20 }
0x223e   : > { %7783 = vmatmul.mubr.msk.bf16.vlgmr.msra.gmra.mrb[140].mxu0 %vm1231_vm4, %v9850_v38  ;;  %7784 = vmatmul.mubr.msk.bf16.vlgmr.msra.gmra.mrb[140].mxu1 %vm1231_vm4, %v9850_v38  ;;  %v8813_v38 = vld [vmem:[%s9219_s24 + $0xf0] sm:$0xff]  }
0x223f   : > { %8093 = vmatpush3.bf16.msra.mxu0 %v8790_v1  ;;  %8115 = vmatpush3.bf16.msra.mxu1 %v8791_v22  ;;  %v5154_v22 = vrot.slane %v5131_v63, %v5153_v3 }
0x2240   : > { %8094 = vmatprep.subr.bf16.mxu0 %v8792_v23  ;;  %8116 = vmatprep.subr.bf16.mxu1 %v8793_v24  ;;  %v5162_v23 = vrot.slane %v5131_v63, %v5161_v54 }
0x2243   : > { %8095 = vmatpush3.bf16.msra.mxu0 %v8794_v21  ;;  %8117 = vmatpush3.bf16.msra.mxu1 %v8795_v26  ;;  %v5158_v26 = vrot.slane %v5131_v63, %v5157_v8 }
0x2244   : > { %8096 = vmatprep.subr.bf16.mxu0 %v8796_v40  ;;  %8118 = vmatprep.subr.bf16.mxu1 %v8797_v28  ;;  %v5166_v40 = vrot.slane %v5131_v63, %v5165_v45  ;;  %v5178_v63 = vrot.slane %v9928_v29, %v5145_v56  ;;  %v5182_v56 = vrot.slane %v9928_v29, %v5149_v0 }
0x2247   : > { %8097 = vmatpush3.bf16.msra.mxu0 %v8798_v4  ;;  %8119 = vmatpush3.bf16.msra.mxu1 %v8799_v30 }
0x2248   : > { %8098 = vmatprep.subr.bf16.mxu0 %v8800_v31  ;;  %8120 = vmatprep.subr.bf16.mxu1 %v8801_v32 }
0x224b   : > { %8099 = vmatpush3.bf16.msra.mxu0 %v8802_v7  ;;  %8121 = vmatpush3.bf16.msra.mxu1 %v8803_v33 }
0x224c   : > { %8100 = vmatprep.subr.bf16.mxu0 %v8804_v61  ;;  %8122 = vmatprep.subr.bf16.mxu1 %v8805_v41 }
0x224f   : > { %8101 = vmatpush3.bf16.msra.mxu0 %v8806_v43  ;;  %8123 = vmatpush3.bf16.msra.mxu1 %v8807_v15 }
0x2250   : > { %8102 = vmatprep.subr.bf16.mxu0 %v8808_v34  ;;  %8124 = vmatprep.subr.bf16.mxu1 %v8809_v35 }
0x2253   : > { %8103 = vmatpush3.bf16.msra.mxu0 %v8810_v36  ;;  %8125 = vmatpush3.bf16.msra.mxu1 %v8811_v9  ;;  %v8822_v9 = vld [vmem:[%s9219_s24 + $0x100] sm:$0xff]  }
0x2254   : > { %8104 = vmatprep.subr.bf16.mxu0 %v8812_v37  ;;  %8126 = vmatprep.subr.bf16.mxu1 %v8813_v38  ;;  %v8823_v37 = vld [vmem:[%s9219_s24 + $0x180] sm:$0xff]  }
0x2257   : > { %8105 = vmatpush3.bf16.msra.mxu0 %v8814_v42  ;;  %8127 = vmatpush3.bf16.msra.mxu1 %v8815_v44 }
0x2258   : > { %8106 = vmatprep.subr.bf16.mxu0 %v8816_v46  ;;  %8128 = vmatprep.subr.bf16.mxu1 %v8817_v48  ;;  %v8824_v48 = vld [vmem:[%s9219_s24 + $0x148] sm:$0xff]  }
0x225b   : > { %8107 = vmatpush3.bf16.msra.mxu0 %v8818_v49  ;;  %8129 = vmatpush3.bf16.msra.mxu1 %v8819_v50  ;;  %v8825_v49 = vld [vmem:[%s9219_s24 + $0x1c8] sm:$0xff]   ;;  %v5170_v50 = vrot.slane %v9928_v29, %v5137_v25  ;;  %v5174_v25 = vrot.slane %v9928_v29, %v5141_v58  ;;  %v8829_v58 = vld [vmem:[%s9219_s24 + $0x1d0] sm:$0xff]  }
0x225c   : > { %8136 = vmatprep.subr.bf16.mxu0 %v8820_v51  ;;  %8158 = vmatprep.subr.bf16.mxu1 %v8821_v52 }
0x22f9   : > { %v5412_v5 = vpop.f32.mrb[128].mxu0  ;;  %v5455_v6 = vpop.f32.mrb[128].mxu1 }
0x22fa   : > { %v5413_v10 = vadd.f32 %v5412_v5, %v5138_v19  ;;  %v5456_v12 = vadd.f32 %v5455_v6, %v5146_v59  ;;  %v5414_v13 = vpop.f32.mrb[129].mxu0  ;;  %v5457_v57 = vpop.f32.mrb[129].mxu1 }
0x22fb   : > { %v5415_v62 = vadd.f32 %v5414_v13, %v5142_v60  ;;  %v5458_v14 = vadd.f32 %v5457_v57, %v5150_v2  ;;  %v5416_v16 = vpop.f32.mrb[130].mxu0  ;;  %v5459_v47 = vpop.f32.mrb[130].mxu1 }
0x22fc   : > { %v5417_v17 = vadd.f32 %v5416_v16, %v5138_v19  ;;  %v5460_v18 = vadd.f32 %v5459_v47, %v5146_v59  ;;  %v5418_v20 = vpop.f32.mrb[131].mxu0  ;;  %v5461_v1 = vpop.f32.mrb[131].mxu1  ;;  %v5722_v28 = vmax.f32 %v5413_v10, 0.0  ;;  %v5724_v4 = vmax.f32 %v5456_v12, 0.0  ;;  %v8826_v10 = vld [vmem:[%s9219_s24 + $0x108] sm:$0xff]   ;;  %v8828_v16 = vld [vmem:[%s9219_s24 + $0x150] sm:$0xff]  }
0x22fd   : > { %v5419_v24 = vadd.f32 %v5418_v20, %v5142_v60  ;;  %v5462_v21 = vadd.f32 %v5461_v1, %v5150_v2  ;;  %v5723_v32 = vmax.f32 %v5415_v62, 0.0  ;;  %v5725_v7 = vmax.f32 %v5458_v14, 0.0  ;;  %v8827_v12 = vld [vmem:[%s9219_s24 + $0x188] sm:$0xff]  }
0x22fe   : > { %v5738_v30 = vmax.f32 %v5417_v17, 0.0  ;;  %v5740_v31 = vmax.f32 %v5460_v18, 0.0 }
0x22ff   : > { %v5739_v33 = vmax.f32 %v5419_v24, 0.0  ;;  %v5741_v61 = vmax.f32 %v5462_v21, 0.0 }
0x2300   : > { %v5754_v41 = vpack.c.bf16 %v5738_v30, %v5722_v28  ;;  %v5756_v43 = vpack.c.bf16 %v5740_v31, %v5724_v4 }
0x2301   : > { %v5755_v15 = vpack.c.bf16 %v5739_v33, %v5723_v32  ;;  %v5757_v34 = vpack.c.bf16 %v5741_v61, %v5725_v7  ;;  %v5498_v35 = vpop.f32.mrb[132].mxu0  ;;  %v5541_v36 = vpop.f32.mrb[132].mxu1  ;;  %v8832_v32 = vld [vmem:[%s9219_s24 + $0x158] sm:$0xff]  }
0x2302   : > { %v5499_v38 = vadd.f32 %v5498_v35, %v5154_v22  ;;  %v5542_v42 = vadd.f32 %v5541_v36, %v5162_v23  ;;  %v5500_v44 = vpop.f32.mrb[133].mxu0  ;;  %v5543_v46 = vpop.f32.mrb[133].mxu1  ;;  %v8833_v7 = vld [vmem:[%s9219_s24 + $0x1d8] sm:$0xff]  }
0x2303   : > { %v5501_v51 = vadd.f32 %v5500_v44, %v5158_v26  ;;  %v5544_v52 = vadd.f32 %v5543_v46, %v5166_v40  ;;  %v5502_v27 = vpop.f32.mrb[134].mxu0  ;;  %v5545_v54 = vpop.f32.mrb[134].mxu1  ;;  %6833 = vmatprep.mubr.bf16.mxu0 %v5755_v15  ;;  %6874 = vmatprep.mubr.bf16.mxu1 %v5757_v34  ;;  %v8834_v44 = vld [vmem:[%s9219_s24 + $0x118] sm:$0xff]  }
0x2304   : > { %v5503_v19 = vadd.f32 %v5502_v27, %v5154_v22  ;;  %v5546_v59 = vadd.f32 %v5545_v54, %v5162_v23  ;;  %v5504_v60 = vpop.f32.mrb[135].mxu0  ;;  %v5547_v2 = vpop.f32.mrb[135].mxu1  ;;  %6834 = vmatmul.mubr.bf16.vlgmr.msra.gmra.mrb[144].mxu0 %v5754_v41  ;;  %6875 = vmatmul.mubr.bf16.vlgmr.msra.gmra.mrb[144].mxu1 %v5756_v43  ;;  %v5726_v13 = vmax.f32 %v5499_v38, 0.0  ;;  %v5728_v57 = vmax.f32 %v5542_v42, 0.0  ;;  %v8835_v46 = vld [vmem:[%s9219_s24 + $0x198] sm:$0xff]  }
0x2305   : > { %v5505_v5 = vadd.f32 %v5504_v60, %v5158_v26  ;;  %v5548_v6 = vadd.f32 %v5547_v2, %v5166_v40  ;;  %8137 = vmatpush3.bf16.msra.mxu0 %v8822_v9  ;;  %8159 = vmatpush3.bf16.msra.mxu1 %v8823_v37  ;;  %v5727_v47 = vmax.f32 %v5501_v51, 0.0  ;;  %v5729_v17 = vmax.f32 %v5544_v52, 0.0  ;;  %v8830_v26 = vld [vmem:[%s9219_s24 + $0x110] sm:$0xff]  }
0x2306   : > { %v5742_v62 = vmax.f32 %v5503_v19, 0.0  ;;  %v5744_v14 = vmax.f32 %v5546_v59, 0.0  ;;  %8138 = vmatprep.subr.bf16.mxu0 %v8824_v48  ;;  %8160 = vmatprep.subr.bf16.mxu1 %v8825_v49  ;;  %v8831_v40 = vld [vmem:[%s9219_s24 + $0x190] sm:$0xff]   ;;  %v5186_v9 = vrot.slane %v9928_v29, %v5153_v3  ;;  %v5190_v37 = vrot.slane %v9928_v29, %v5157_v8  ;;  %v8836_v3 = vld [vmem:[%s9219_s24 + $0x160] sm:$0xff]  }
0x2307   : > { %v5743_v18 = vmax.f32 %v5505_v5, 0.0  ;;  %v5745_v20 = vmax.f32 %v5548_v6, 0.0  ;;  %v5198_v48 = vrot.slane %v9928_v29, %v5165_v45  ;;  %v8837_v8 = vld [vmem:[%s9219_s24 + $0x1e0] sm:$0xff]  }
0x2308   : > { %v9967_v1 = vpack.c.bf16 %v5742_v62, %v5726_v13  ;;  %v9969_v22 = vpack.c.bf16 %v5744_v14, %v5728_v57  ;;  %v8839_v5 = vld [vmem:[%s9219_s24 + $0x1a0] sm:$0xff]   ;;  %v8840_v13 = vld [vmem:[%s9219_s24 + $0x168] sm:$0xff]  }
0x2309   : > { %v5759_v0 = vpack.c.bf16 %v5743_v18, %v5727_v47  ;;  %v5761_v23 = vpack.c.bf16 %v5745_v20, %v5729_v17  ;;  %8139 = vmatpush3.bf16.msra.mxu0 %v8826_v10  ;;  %8161 = vmatpush3.bf16.msra.mxu1 %v8827_v12  ;;  %v5584_v24 = vpop.f32.mrb[136].mxu0  ;;  %v5627_v21 = vpop.f32.mrb[136].mxu1  ;;  %v8841_v57 = vld [vmem:[%s9219_s24 + $0x1e8] sm:$0xff]  }
0x230a   : > { %v5585_v28 = vadd.f32 %v5584_v24, %v5170_v50  ;;  %v5628_v4 = vadd.f32 %v5627_v21, %v5178_v63  ;;  %v5586_v30 = vpop.f32.mrb[137].mxu0  ;;  %v5629_v31 = vpop.f32.mrb[137].mxu1  ;;  %8140 = vmatprep.subr.bf16.mxu0 %v8828_v16  ;;  %8162 = vmatprep.subr.bf16.mxu1 %v8829_v58  ;;  %v8842_v24 = vld [vmem:[%s9219_s24 + $0x128] sm:$0xff]  }
0x230b   : > { %v5587_v33 = vadd.f32 %v5586_v30, %v5174_v25  ;;  %v5630_v61 = vadd.f32 %v5629_v31, %v5182_v56  ;;  %v5588_v41 = vpop.f32.mrb[138].mxu0  ;;  %v5631_v43 = vpop.f32.mrb[138].mxu1  ;;  %6915 = vmatprep.mubr.bf16.mxu0 %v5759_v0  ;;  %6956 = vmatprep.mubr.bf16.mxu1 %v5761_v23  ;;  %v8843_v21 = vld [vmem:[%s9219_s24 + $0x1a8] sm:$0xff]   ;;  %v8844_v30 = vld [vmem:[%s9219_s24 + $0x170] sm:$0xff]  }
0x230c   : > { %v5589_v15 = vadd.f32 %v5588_v41, %v5170_v50  ;;  %v5632_v34 = vadd.f32 %v5631_v43, %v5178_v63  ;;  %v5590_v35 = vpop.f32.mrb[139].mxu0  ;;  %v5633_v36 = vpop.f32.mrb[139].mxu1  ;;  %v5730_v49 = vmax.f32 %v5585_v28, 0.0  ;;  %v5732_v50 = vmax.f32 %v5628_v4, 0.0 }
0x230d   : > { %v5591_v38 = vadd.f32 %v5590_v35, %v5174_v25  ;;  %v5634_v42 = vadd.f32 %v5633_v36, %v5182_v56  ;;  %8141 = vmatpush3.bf16.msra.mxu0 %v8830_v26  ;;  %8163 = vmatpush3.bf16.msra.mxu1 %v8831_v40  ;;  %v5731_v27 = vmax.f32 %v5587_v33, 0.0  ;;  %v5733_v54 = vmax.f32 %v5630_v61, 0.0  ;;  %v8838_v25 = vld [vmem:[%s9219_s24 + $0x120] sm:$0xff]   ;;  %v8847_v35 = vld [vmem:[%s9219_s24 + $0x1b0] sm:$0xff]   ;;  %v8848_v36 = vld [vmem:[%s9219_s24 + $0x178] sm:$0xff]  }
0x230e   : > { %v5746_v51 = vmax.f32 %v5589_v15, 0.0  ;;  %v5748_v52 = vmax.f32 %v5632_v34, 0.0  ;;  %8142 = vmatprep.subr.bf16.mxu0 %v8832_v32  ;;  %8164 = vmatprep.subr.bf16.mxu1 %v8833_v7  ;;  %v8846_v34 = vld [vmem:[%s9219_s24 + $0x130] sm:$0xff]  }
0x230f   : > { %v5747_v63 = vmax.f32 %v5591_v38, 0.0  ;;  %v5749_v19 = vmax.f32 %v5634_v42, 0.0  ;;  %v8851_v38 = vld [vmem:[%s9219_s24 + $0x1b8] sm:$0xff]   ;;  %v8852_v42 = vld [vmem:[%s9219_s24 + $0x240] sm:$0xff]  }
0x2310   : > { %v9988_v59 = vpack.c.bf16 %v5746_v51, %v5730_v49  ;;  %v9990_v53 = vpack.c.bf16 %v5748_v52, %v5732_v50  ;;  %v8856_v49 = vld [vmem:[%s9219_s24 + $0x248] sm:$0xff]  }
0x2311   : > { %v9992_v29 = vpack.c.bf16 %v5747_v63, %v5731_v27  ;;  %v9994_v45 = vpack.c.bf16 %v5749_v19, %v5733_v54  ;;  %8143 = vmatpush3.bf16.msra.mxu0 %v8834_v44  ;;  %8165 = vmatpush3.bf16.msra.mxu1 %v8835_v46  ;;  %v5670_v60 = vpop.f32.mrb[140].mxu0  ;;  %v5713_v2 = vpop.f32.mrb[140].mxu1  ;;  %v8853_v44 = vld [vmem:[%s9219_s24 + $0x2c0] sm:$0xff]   ;;  %v8857_v50 = vld [vmem:[%s9219_s24 + $0x2c8] sm:$0xff]   ;;  %v8864_v27 = vld [vmem:[%s9219_s24 + $0x258] sm:$0xff]  }
0x2312   : > { %v5671_v6 = vadd.f32 %v5670_v60, %v5186_v9  ;;  %v5714_v10 = vadd.f32 %v5713_v2, %v9931_v55  ;;  %v5672_v12 = vpop.f32.mrb[141].mxu0  ;;  %v5715_v56 = vpop.f32.mrb[141].mxu1  ;;  %8144 = vmatprep.subr.bf16.mxu0 %v8836_v3  ;;  %8166 = vmatprep.subr.bf16.mxu1 %v8837_v8  ;;  %v8854_v46 = vld [vmem:[%s9219_s24 + $0x200] sm:$0xff]   ;;  %v8858_v51 = vld [vmem:[%s9219_s24 + $0x208] sm:$0xff]   ;;  %v8860_v3 = vld [vmem:[%s9219_s24 + $0x250] sm:$0xff]  }
0x2313   : > { %v5673_v62 = vadd.f32 %v5672_v12, %v5190_v37  ;;  %v5716_v14 = vadd.f32 %v5715_v56, %v5198_v48  ;;  %v5674_v16 = vpop.f32.mrb[142].mxu0  ;;  %v5717_v58 = vpop.f32.mrb[142].mxu1  ;;  %v8859_v52 = vld [vmem:[%s9219_s24 + $0x288] sm:$0xff]   ;;  %v8863_v8 = vld [vmem:[%s9219_s24 + $0x290] sm:$0xff]   ;;  %v8865_v54 = vld [vmem:[%s9219_s24 + $0x2d8] sm:$0xff]  }
0x2314   : > { %v5675_v47 = vadd.f32 %v5674_v16, %v5186_v9  ;;  %v5718_v17 = vadd.f32 %v5717_v58, %v9931_v55  ;;  %v5676_v18 = vpop.f32.mrb[143].mxu0  ;;  %v5719_v20 = vpop.f32.mrb[143].mxu1  ;;  %v5734_v26 = vmax.f32 %v5671_v6, 0.0  ;;  %v5736_v40 = vmax.f32 %v5714_v10, 0.0  ;;  %v8845_v55 = vld [vmem:[%s9219_s24 + $0x1f0] sm:$0xff]   ;;  %v8849_v9 = vld [vmem:[%s9219_s24 + $0x1f8] sm:$0xff]  }
0x2315   : > { %v5677_v0 = vadd.f32 %v5676_v18, %v5190_v37  ;;  %v5720_v23 = vadd.f32 %v5719_v20, %v5198_v48  ;;  %8145 = vmatpush3.bf16.msra.mxu0 %v8838_v25  ;;  %8167 = vmatpush3.bf16.msra.mxu1 %v8839_v5  ;;  %v5735_v31 = vmax.f32 %v5673_v62, 0.0  ;;  %v5737_v32 = vmax.f32 %v5716_v14, 0.0  ;;  %v8850_v37 = vld [vmem:[%s9219_s24 + $0x138] sm:$0xff]   ;;  %v8855_v48 = vld [vmem:[%s9219_s24 + $0x280] sm:$0xff]   ;;  %v8872_v25 = vld [vmem:[%s9219_s24 + $0x268] sm:$0xff]  }
0x2316   : > { %v5750_v28 = vmax.f32 %v5675_v47, 0.0  ;;  %v5752_v4 = vmax.f32 %v5718_v17, 0.0  ;;  %8146 = vmatprep.subr.bf16.mxu0 %v8840_v13  ;;  %8168 = vmatprep.subr.bf16.mxu1 %v8841_v57  ;;  %v8866_v63 = vld [vmem:[%s9219_s24 + $0x218] sm:$0xff]   ;;  %v8870_v60 = vld [vmem:[%s9219_s24 + $0x220] sm:$0xff]   ;;  %v8873_v5 = vld [vmem:[%s9219_s24 + $0x2e8] sm:$0xff]  }
0x2317   : > { %v5751_v7 = vmax.f32 %v5677_v0, 0.0  ;;  %v5753_v33 = vmax.f32 %v5720_v23, 0.0  ;;  %v8867_v19 = vld [vmem:[%s9219_s24 + $0x298] sm:$0xff]   ;;  %v8871_v2 = vld [vmem:[%s9219_s24 + $0x2a0] sm:$0xff]   ;;  %v8874_v6 = vld [vmem:[%s9219_s24 + $0x228] sm:$0xff]  }
0x2318   : > { %v10006_v61 = vpack.c.bf16 %v5750_v28, %v5734_v26  ;;  %v10008_v41 = vpack.c.bf16 %v5752_v4, %v5736_v40  ;;  %v8875_v10 = vld [vmem:[%s9219_s24 + $0x2a8] sm:$0xff]   ;;  %v8876_v12 = vld [vmem:[%s9219_s24 + $0x270] sm:$0xff]   ;;  %v8880_v62 = vld [vmem:[%s9219_s24 + $0x278] sm:$0xff]  }
0x2319   : > { %v10010_v43 = vpack.c.bf16 %v5751_v7, %v5735_v31  ;;  %v10012_v15 = vpack.c.bf16 %v5753_v33, %v5737_v32  ;;  %8147 = vmatpush3.bf16.msra.mxu0 %v8842_v24  ;;  %8169 = vmatpush3.bf16.msra.mxu1 %v8843_v21  ;;  %v8877_v56 = vld [vmem:[%s9219_s24 + $0x2f0] sm:$0xff]   ;;  %v8881_v14 = vld [vmem:[%s9219_s24 + $0x2f8] sm:$0xff]   ;;  %v8884_v47 = vld [vmem:[%s9219_s24 + $0x340] sm:$0xff]  }
0x231a   : > { %8148 = vmatprep.subr.bf16.mxu0 %v8844_v30  ;;  %8170 = vmatprep.subr.bf16.mxu1 %v8845_v55  ;;  %v8878_v13 = vld [vmem:[%s9219_s24 + $0x230] sm:$0xff]   ;;  %v8882_v16 = vld [vmem:[%s9219_s24 + $0x238] sm:$0xff]   ;;  %v8885_v17 = vld [vmem:[%s9219_s24 + $0x3c0] sm:$0xff]  }
0x231b   : > { %v8879_v57 = vld [vmem:[%s9219_s24 + $0x2b0] sm:$0xff]   ;;  %v8883_v58 = vld [vmem:[%s9219_s24 + $0x2b8] sm:$0xff]   ;;  %v8886_v18 = vld [vmem:[%s9219_s24 + $0x300] sm:$0xff]  }
0x231c   : > { %v8887_v20 = vld [vmem:[%s9219_s24 + $0x380] sm:$0xff]   ;;  %v8888_v0 = vld [vmem:[%s9219_s24 + $0x348] sm:$0xff]   ;;  %v8892_v26 = vld [vmem:[%s9219_s24 + $0x350] sm:$0xff]  }
0x231d   : > { %8149 = vmatpush3.bf16.msra.mxu0 %v8846_v34  ;;  %8171 = vmatpush3.bf16.msra.mxu1 %v8847_v35  ;;  %v8889_v23 = vld [vmem:[%s9219_s24 + $0x3c8] sm:$0xff]   ;;  %v8895_v40 = vld [vmem:[%s9219_s24 + $0x390] sm:$0xff]   ;;  %v8896_v28 = vld [vmem:[%s9219_s24 + $0x358] sm:$0xff]  }
0x231e   : > { %8150 = vmatprep.subr.bf16.mxu0 %v8848_v36  ;;  %8172 = vmatprep.subr.bf16.mxu1 %v8849_v9  ;;  %v8890_v24 = vld [vmem:[%s9219_s24 + $0x308] sm:$0xff]   ;;  %v8897_v4 = vld [vmem:[%s9219_s24 + $0x3d8] sm:$0xff]   ;;  %v8900_v31 = vld [vmem:[%s9219_s24 + $0x360] sm:$0xff]  }
0x231f   : > { %v8891_v21 = vld [vmem:[%s9219_s24 + $0x388] sm:$0xff]   ;;  %v8898_v30 = vld [vmem:[%s9219_s24 + $0x318] sm:$0xff]   ;;  %v8901_v32 = vld [vmem:[%s9219_s24 + $0x3e0] sm:$0xff]  }
0x2320   : > { %v8899_v55 = vld [vmem:[%s9219_s24 + $0x398] sm:$0xff]   ;;  %v8902_v7 = vld [vmem:[%s9219_s24 + $0x320] sm:$0xff]   ;;  %v8906_v34 = vld [vmem:[%s9219_s24 + $0x328] sm:$0xff]  }
0x2321   : > { %8151 = vmatpush3.bf16.msra.mxu0 %v8850_v37  ;;  %8173 = vmatpush3.bf16.msra.mxu1 %v8851_v38  ;;  %v8903_v33 = vld [vmem:[%s9219_s24 + $0x3a0] sm:$0xff]   ;;  %v8907_v35 = vld [vmem:[%s9219_s24 + $0x3a8] sm:$0xff]   ;;  %v8908_v36 = vld [vmem:[%s9219_s24 + $0x370] sm:$0xff]  }
0x2322   : > { %8180 = vmatprep.subr.bf16.mxu0 %v8852_v42  ;;  %8202 = vmatprep.subr.bf16.mxu1 %v8853_v44  ;;  %v8909_v9 = vld [vmem:[%s9219_s24 + $0x3f0] sm:$0xff]   ;;  %v8912_v42 = vld [vmem:[%s9219_s24 + $0x378] sm:$0xff]  }
0x2323   : > { %v8910_v37 = vld [vmem:[%s9219_s24 + $0x330] sm:$0xff]   ;;  %v8913_v44 = vld [vmem:[%s9219_s24 + $0x3f8] sm:$0xff]  }
0x2324   : > { %6916 = vmatmul.mubr.bf16.vlgmr.msra.gmra.mrb[148].mxu0 %v9967_v1  ;;  %6957 = vmatmul.mubr.bf16.vlgmr.msra.gmra.mrb[148].mxu1 %v9969_v22  ;;  %v8861_v1 = vld [vmem:[%s9219_s24 + $0x2d0] sm:$0xff]  }
0x2325   : > { %8181 = vmatpush3.bf16.msra.mxu0 %v8854_v46  ;;  %6997 = vmatprep.mubr.bf16.mxu0 %v9992_v29  ;;  %v8862_v22 = vld [vmem:[%s9219_s24 + $0x210] sm:$0xff]   ;;  %v8868_v29 = vld [vmem:[%s9219_s24 + $0x260] sm:$0xff]   ;;  %v8914_v46 = vld [vmem:[%s9219_s24 + $0x338] sm:$0xff]  }
0x2326   : > { %8203 = vmatpush3.bf16.msra.mxu1 %v8855_v48  ;;  %7038 = vmatprep.mubr.bf16.mxu1 %v9994_v45  ;;  %v8869_v45 = vld [vmem:[%s9219_s24 + $0x2e0] sm:$0xff]   ;;  %v8911_v38 = vld [vmem:[%s9219_s24 + $0x3b0] sm:$0xff]   ;;  %v8915_v48 = vld [vmem:[%s9219_s24 + $0x3b8] sm:$0xff]  }
0x2327   : > { %8182 = vmatprep.subr.bf16.mxu0 %v8856_v49  ;;  %8204 = vmatprep.subr.bf16.mxu1 %v8857_v50 }
0x2329   : > { %8183 = vmatpush3.bf16.msra.mxu0 %v8858_v51  ;;  %v7785_v51 = vld [vmem:[%s10227_s27] ss:$0 sm:$0xff] }
0x232a   : > { %8205 = vmatpush3.bf16.msra.mxu1 %v8859_v52  ;;  %8184 = vmatprep.subr.bf16.mxu0 %v8860_v3 }
0x232b   : > { %8206 = vmatprep.subr.bf16.mxu1 %v8861_v1 }
0x232d   : > { %8185 = vmatpush3.bf16.msra.mxu0 %v8862_v22 }
0x232e   : > { %8207 = vmatpush3.bf16.msra.mxu1 %v8863_v8  ;;  %8186 = vmatprep.subr.bf16.mxu0 %v8864_v27 }
0x232f   : > { %8208 = vmatprep.subr.bf16.mxu1 %v8865_v54 }
0x2331   : > { %8187 = vmatpush3.bf16.msra.mxu0 %v8866_v63 }
0x2332   : > { %8209 = vmatpush3.bf16.msra.mxu1 %v8867_v19  ;;  %8188 = vmatprep.subr.bf16.mxu0 %v8868_v29 }
0x2333   : > { %8210 = vmatprep.subr.bf16.mxu1 %v8869_v45 }
0x2335   : > { %8189 = vmatpush3.bf16.msra.mxu0 %v8870_v60 }
0x2336   : > { %8211 = vmatpush3.bf16.msra.mxu1 %v8871_v2  ;;  %8190 = vmatprep.subr.bf16.mxu0 %v8872_v25 }
0x2337   : > { %8212 = vmatprep.subr.bf16.mxu1 %v8873_v5 }
0x2339   : > { %8191 = vmatpush3.bf16.msra.mxu0 %v8874_v6 }
0x233a   : > { %8213 = vmatpush3.bf16.msra.mxu1 %v8875_v10  ;;  %8192 = vmatprep.subr.bf16.mxu0 %v8876_v12 }
0x233b   : > { %8214 = vmatprep.subr.bf16.mxu1 %v8877_v56 }
0x233d   : > { %8193 = vmatpush3.bf16.msra.mxu0 %v8878_v13 }
0x233e   : > { %8215 = vmatpush3.bf16.msra.mxu1 %v8879_v57  ;;  %8194 = vmatprep.subr.bf16.mxu0 %v8880_v62 }
0x233f   : > { %8216 = vmatprep.subr.bf16.mxu1 %v8881_v14 }
0x2341   : > { %8195 = vmatpush3.bf16.msra.mxu0 %v8882_v16 }
0x2342   : > { %8217 = vmatpush3.bf16.msra.mxu1 %v8883_v58  ;;  %8224 = vmatprep.subr.bf16.mxu0 %v8884_v47 }
0x2343   : > { %8246 = vmatprep.subr.bf16.mxu1 %v8885_v17 }
0x2344   : > { %6998 = vmatmul.mubr.bf16.vlgmr.msra.gmra.mrb[152].mxu0 %v9988_v59  ;;  %v8893_v59 = vld [vmem:[%s9219_s24 + $0x3d0] sm:$0xff]  }
0x2345   : > { %7039 = vmatmul.mubr.bf16.vlgmr.msra.gmra.mrb[152].mxu1 %v9990_v53  ;;  %8225 = vmatpush3.bf16.msra.mxu0 %v8886_v18  ;;  %v8894_v53 = vld [vmem:[%s9219_s24 + $0x310] sm:$0xff]  }
0x2346   : > { %7079 = vmatprep.mubr.bf16.mxu0 %v10010_v43  ;;  %8247 = vmatpush3.bf16.msra.mxu1 %v8887_v20  ;;  %v8904_v43 = vld [vmem:[%s9219_s24 + $0x368] sm:$0xff]  }
0x2347   : > { %7120 = vmatprep.mubr.bf16.mxu1 %v10012_v15  ;;  %8226 = vmatprep.subr.bf16.mxu0 %v8888_v0  ;;  %v8905_v15 = vld [vmem:[%s9219_s24 + $0x3e8] sm:$0xff]  }
0x2348   : > { %8248 = vmatprep.subr.bf16.mxu1 %v8889_v23 }
0x2349   : > { %8227 = vmatpush3.bf16.msra.mxu0 %v8890_v24 }
0x234a   : > { %8249 = vmatpush3.bf16.msra.mxu1 %v8891_v21  ;;  %8228 = vmatprep.subr.bf16.mxu0 %v8892_v26 }
0x234b   : > { %8250 = vmatprep.subr.bf16.mxu1 %v8893_v59 }
0x234d   : > { %8229 = vmatpush3.bf16.msra.mxu0 %v8894_v53 }
0x234e   : > { %8251 = vmatpush3.bf16.msra.mxu1 %v8895_v40  ;;  %8230 = vmatprep.subr.bf16.mxu0 %v8896_v28 }
0x234f   : > { %8252 = vmatprep.subr.bf16.mxu1 %v8897_v4 }
0x2351   : > { %8231 = vmatpush3.bf16.msra.mxu0 %v8898_v30 }
0x2352   : > { %8253 = vmatpush3.bf16.msra.mxu1 %v8899_v55  ;;  %8232 = vmatprep.subr.bf16.mxu0 %v8900_v31 }
0x2353   : > { %8254 = vmatprep.subr.bf16.mxu1 %v8901_v32 }
0x2355   : > { %8233 = vmatpush3.bf16.msra.mxu0 %v8902_v7 }
0x2356   : > { %8255 = vmatpush3.bf16.msra.mxu1 %v8903_v33  ;;  %8234 = vmatprep.subr.bf16.mxu0 %v8904_v43 }
0x2357   : > { %8256 = vmatprep.subr.bf16.mxu1 %v8905_v15 }
0x2359   : > { %8235 = vmatpush3.bf16.msra.mxu0 %v8906_v34 }
0x235a   : > { %8257 = vmatpush3.bf16.msra.mxu1 %v8907_v35  ;;  %8236 = vmatprep.subr.bf16.mxu0 %v8908_v36 }
0x235b   : > { %8258 = vmatprep.subr.bf16.mxu1 %v8909_v9 }
0x235d   : > { %8237 = vmatpush3.bf16.msra.mxu0 %v8910_v37 }
0x235e   : > { %8259 = vmatpush3.bf16.msra.mxu1 %v8911_v38  ;;  %8238 = vmatprep.subr.bf16.mxu0 %v8912_v42 }
0x235f   : > { %8260 = vmatprep.subr.bf16.mxu1 %v8913_v44 }
0x2361   : > { %8239 = vmatpush3.bf16.msra.mxu0 %v8914_v46 }
0x2362   : > { %8261 = vmatpush3.bf16.msra.mxu1 %v8915_v48 }
0x2364   : > { %7080 = vmatmul.mubr.bf16.vlgmr.msra.gmra.mrb[156].mxu0 %v10006_v61 }
0x2365   : > { %7121 = vmatmul.mubr.bf16.vlgmr.msra.gmra.mrb[156].mxu1 %v10008_v41 }
0x23d7   : > { %v8108_v49 = vpop.f32.mrb[144].mxu0  ;;  %v8130_v50 = vpop.f32.mrb[144].mxu1 }
0x23d8   : > { %v8109_v52 = vpop.f32.mrb[145].mxu0  ;;  %v8131_v3 = vpop.f32.mrb[145].mxu1 }
0x23d9   : > { %v8110_v1 = vadd.f32 %v8109_v52, %v8108_v49  ;;  %v8132_v22 = vadd.f32 %v8131_v3, %v8130_v50  ;;  %v8111_v8 = vpop.f32.mrb[146].mxu0  ;;  %v8133_v27 = vpop.f32.mrb[146].mxu1 }
0x23da   : > { %v8112_v54 = vpop.f32.mrb[147].mxu0  ;;  %v8134_v63 = vpop.f32.mrb[147].mxu1 }
0x23db   : > { %v6836_v19 = vadd.f32 %v8110_v1, %v7785_v51  ;;  %v8113_v29 = vadd.f32 %v8112_v54, %v8111_v8  ;;  %v8135_v61 = vadd.f32 %v8134_v63, %v8133_v27 }
0x23dd   : > { %v6877_v45 = vadd.f32 %v8132_v22, %v6836_v19  ;;  %v6839_v41 = vadd.f32 %v8113_v29, %v7785_v51 }
0x23df   : > { %v6880_v60 = vadd.f32 %v8135_v61, %v6839_v41 }
0x23f7   : > { %v8152_v2 = vpop.f32.mrb[148].mxu0  ;;  %v8174_v25 = vpop.f32.mrb[148].mxu1 }
0x23f8   : > { %v8153_v5 = vpop.f32.mrb[149].mxu0  ;;  %v8175_v6 = vpop.f32.mrb[149].mxu1 }
0x23f9   : > { %v8154_v10 = vadd.f32 %v8153_v5, %v8152_v2  ;;  %v8176_v12 = vadd.f32 %v8175_v6, %v8174_v25  ;;  %v8155_v56 = vpop.f32.mrb[150].mxu0  ;;  %v8177_v13 = vpop.f32.mrb[150].mxu1 }
0x23fa   : > { %v8156_v57 = vpop.f32.mrb[151].mxu0  ;;  %v8178_v62 = vpop.f32.mrb[151].mxu1 }
0x23fb   : > { %v6918_v14 = vadd.f32 %v8154_v10, %v6877_v45  ;;  %v8157_v16 = vadd.f32 %v8156_v57, %v8155_v56  ;;  %v8179_v58 = vadd.f32 %v8178_v62, %v8177_v13  ;;  %v7915_v57 = vld [vmem:[%s1053_s3] ss:$0 sm:$0xff] }
0x23fd   : > { %v6959_v47 = vadd.f32 %v8176_v12, %v6918_v14  ;;  %v6921_v17 = vadd.f32 %v8157_v16, %v6880_v60  ;;  %v7914_v12 = vld [vmem:[%s1050_s2] ss:$0 sm:$0xff] }
0x23ff   : > { %v6962_v18 = vadd.f32 %v8179_v58, %v6921_v17  ;;  %v8994_v17 = vld [vmem:[%s10231_s9] sm:$0xff] (!%p7916_p5)  }
0x2417   : > { %v8196_v20 = vpop.f32.mrb[152].mxu0 }
0x2418   : > { %v8218_v0 = vpop.f32.mrb[152].mxu1  ;;  %v8197_v23 = vpop.f32.mrb[153].mxu0 }
0x2419   : > { %v8198_v24 = vadd.f32 %v8197_v23, %v8196_v20  ;;  %v8219_v21 = vpop.f32.mrb[153].mxu1  ;;  %v8199_v26 = vpop.f32.mrb[154].mxu0  ;;  %v8995_v20 = vld [vmem:[%s10231_s9 + $0x8] sm:$0xff] (!%p7916_p5)   ;;  %v7917_v23 = vld [vmem:[%s10232_s26] ss:$0 sm:$0xff] (!%p7916_p5) }
0x241a   : > { %v8220_v59 = vadd.f32 %v8219_v21, %v8218_v0  ;;  %v8221_v53 = vpop.f32.mrb[154].mxu1  ;;  %v8200_v40 = vpop.f32.mrb[155].mxu0 }
0x241b   : > { %v7000_v28 = vadd.f32 %v8198_v24, %v6959_v47  ;;  %v8201_v4 = vadd.f32 %v8200_v40, %v8199_v26  ;;  %v8222_v30 = vpop.f32.mrb[155].mxu1 }
0x241c   : > { %v8223_v55 = vadd.f32 %v8222_v30, %v8221_v53 }
0x241d   : > { %v7041_v31 = vadd.f32 %v8220_v59, %v7000_v28  ;;  %v7003_v32 = vadd.f32 %v8201_v4, %v6962_v18  ;;  %v9008_v18 = vmov (!%p7916_p5), 0.0  }
0x241e   : > { %8713 = vmatprep.subr.bf16.mxu0 (!%p7916_p5), %v9008_v18  ;;  %8717 = vmatprep.mubr.msk.bf16.mxu0 (!%p7916_p5), %vm9009_vm8, %v9008_v18 }
0x241f   : > { %v7044_v7 = vadd.f32 %v8223_v55, %v7003_v32  ;;  %8714 = vmatpush3.bf16.msra.mxu0 (!%p7916_p5), %v8994_v17 }
0x2420   : > { %8715 = vmatprep.subr.bf16.mxu0 (!%p7916_p5), %v9008_v18 }
0x2423   : > { %8716 = vmatpush3.bf16.msra.mxu0 (!%p7916_p5), %v8995_v20 }
0x2437   : > { %v8240_v33 = vpop.f32.mrb[156].mxu0 }
0x2438   : > { %v8262_v43 = vpop.f32.mrb[156].mxu1  ;;  %v8241_v15 = vpop.f32.mrb[157].mxu0 }
0x2439   : > { %v8242_v34 = vadd.f32 %v8241_v15, %v8240_v33  ;;  %v8263_v35 = vpop.f32.mrb[157].mxu1  ;;  %v8243_v36 = vpop.f32.mrb[158].mxu0 }
0x243a   : > { %v8264_v9 = vadd.f32 %v8263_v35, %v8262_v43  ;;  %v8265_v37 = vpop.f32.mrb[158].mxu1  ;;  %v8244_v38 = vpop.f32.mrb[159].mxu0 }
0x243b   : > { %v7082_v42 = vadd.f32 %v8242_v34, %v7041_v31  ;;  %v8245_v44 = vadd.f32 %v8244_v38, %v8243_v36  ;;  %v8266_v46 = vpop.f32.mrb[159].mxu1 }
0x243c   : > { %v8267_v48 = vadd.f32 %v8266_v46, %v8265_v37 }
0x243d   : > { %v7123_v49 = vadd.f32 %v8264_v9, %v7082_v42  ;;  %v7085_v50 = vadd.f32 %v8245_v44, %v7044_v7 }
0x243f   : > { %v7126_v51 = vadd.f32 %v8267_v48, %v7085_v50  ;;  %v7129_v52 = vadd.f32 %v7123_v49, %v9844_v11 }
0x2441   : > { %v7133_v3 = vsel %vm1231_vm4, %v7129_v52, 0.0  ;;  %v7130_v1 = vadd.f32 %v7126_v51, %v9846_v39 }
0x2442   : > { %7134 = vadd.xlane.f32.xlu0 %v7133_v3 }
0x2443   : > { %v7136_v22 = vsel %vm1231_vm4, %v7130_v1, 0.0 }
0x2444   : > { %7137 = vadd.xlane.f32.xlu1 %v7136_v22 }
0x24cf   : > { %v7135_v8 = vpop.xlane.xlu0 %7134 }
0x24d0   : > { %v7139_v27 = vmul.f32 0.03125, %v7135_v8 }
0x24d1   : > { %v7138_v54 = vpop.xlane.xlu1 %7137 }
0x24d2   : > { %v7141_v63 = vsub.f32 %v7129_v52, %v7139_v27  ;;  %v7140_v19 = vmul.f32 0.03125, %v7138_v54 }
0x24d4   : > { %v7142_v29 = vsub.f32 %v7130_v1, %v7140_v19  ;;  %v7143_v61 = vmul.f32 %v7141_v63, %v7141_v63 }
0x24d6   : > { %v7145_v45 = vsel %vm1231_vm4, %v7143_v61, 0.0  ;;  %v7144_v41 = vmul.f32 %v7142_v29, %v7142_v29 }
0x24d7   : > { %7146 = vadd.xlane.f32.xlu0 %v7145_v45 }
0x24d8   : > { %v7148_v11 = vsel %vm1231_vm4, %v7144_v41, 0.0 }
0x24d9   : > { %7149 = vadd.xlane.f32.xlu1 %v7148_v11 }
0x2564   : > { %v7147_v39 = vpop.xlane.xlu0 %7146 }
0x2565   : > { %v7151_v60 = vmul.f32 0.03125, %v7147_v39 }
0x2566   : > { %v7150_v2 = vpop.xlane.xlu1 %7149 }
0x2567   : > { %v7153_v25 = vadd.f32 1e-05, %v7151_v60  ;;  %v7152_v5 = vmul.f32 0.03125, %v7150_v2 }
0x2569   : > { %8988 = vrsqrt.f32 %v7153_v25  ;;  %v7154_v6 = vadd.f32 1e-05, %v7152_v5 }
0x256b   : > { %8990 = vrsqrt.f32 %v7154_v6 }
0x2573   : > { %v8989_v10 = vpop.eup %8988 }
0x2574   : > { %v7157_v56 = vmul.f32 %v8989_v10, %v7141_v63 }
0x2575   : > { %v8991_v13 = vpop.eup %8990 }
0x2576   : > { %v7165_v62 = vmul.f32 %v7914_v12, %v7157_v56  ;;  %v7158_v14 = vmul.f32 %v8991_v13, %v7142_v29  ;;  %7180 = sbr.rel (%p7916_p5) target bundleno = 9815 (0x2657), region = 132 }
0x2578   : > { %v7173_v16 = vadd.f32 %v7915_v57, %v7165_v62  ;;  %v7166_v58 = vmul.f32 %v7914_v12, %v7158_v14 }
0x257a   : > { %7175 = vst.msk [vmem:[#allocation2] sm:$0xff] %vm1231_vm4, %v7173_v16  ;;  %v7174_v47 = vadd.f32 %v7915_v57, %v7166_v58 }
0x257c   : > { %7176 = vst.msk [vmem:[#allocation2 + $0x8] sm:$0xff] %vm1231_vm4, %v7174_v47  ;;  %v7181_v0 = vpack.c.bf16 (!%p7916_p5), %v7174_v47, %v7173_v16 }
0x257e   : > { %8718 = vmatmul.mubr.msk.bf16.vlgmr.msra.gmra.mrb[0].mxu0 %vm1231_vm4, %v7181_v0 }
0x2651   : > { %v7242_v24 = vpop.f32.mrb[0].mxu0 }
0x2652   : > { %v7243_v21 = vadd.f32 %v7917_v23, %v7242_v24  ;;  %v8719_v26 = vpop.f32.mrb[1].mxu0 }
0x2653   : > { %v7245_v59 = vpop.f32.mrb[2].mxu0 }
0x2654   : > { %7249 = vst [vmem:[%s10233_s6] sm:$0xff] %v7243_v21  ;;  %v7246_v53 = vadd.f32 %v7917_v23, %v7245_v59  ;;  %v8720_v40 = vpop.f32.mrb[3].mxu0 }
0x2656   : > { %7250 = vst [vmem:[%s10233_s6 + $0x8] sm:$0xff] %v7246_v53 }
0x2657 PF: > { %s10234_s28 = sld [smem:[#allocation5_spill]] }
0x265d   : > { %s36_s27 = sadd.s32 1, %s10234_s28  }
0x265e   : > { %p33_p6 = scmp.ge.s32.totalorder %s36_s27, 4  }
0x2660   :  { %35 = sbr.rel (!%p33_p6) target bundleno = 23 (0x17), region = 259 }

</bundles_post_ra>
